<compile_context>
chip_gen: v6e
topology: v6e:2x2x1
jax: 0.10.0
libtpu: 0.0.40
codegen_flags: <defaults>
</compile_context>

<pallas_src>
import functools

import jax
import jax.numpy as jnp
from jax.experimental import pallas as pl
from jax.experimental.pallas import tpu as pltpu

N_CLASS = 21


def _round_up(x, m):
    return ((x + m - 1) // m) * m


@functools.lru_cache(maxsize=None)
def _vmem_budget():
    """Returns (vmem_limit_bytes, tile_budget_bytes), TPU-generation aware."""
    cap = None
    try:
        cap = getattr(pltpu.get_tpu_info(), "vmem_capacity_bytes", None)
    except Exception:
        cap = None
    if not cap:
        cap = 64 * 1024 * 1024                      # conservative (v7x-sized)
    if cap >= 128 * 1024 * 1024:                    # v5e / v6e: 128 MiB VMEM
        return 100 * 1024 * 1024, 64 * 1024 * 1024
    return 48 * 1024 * 1024, 36 * 1024 * 1024       # v7x: 64 MiB per TC


# ----------------------------------------------------------------------------
# Pallas kernel 1: tiled matmul, bf16 operands, f32 accumulator,
#                  fused bias (+ optional ReLU) epilogue.
# ----------------------------------------------------------------------------
def _matmul_kernel(a_ref, b_ref, bias_ref, o_ref, acc_ref, *, apply_relu):
    @pl.when(pl.program_id(2) == 0)
    def _():
        acc_ref[...] = jnp.zeros_like(acc_ref)

    acc_ref[...] += jnp.dot(a_ref[...], b_ref[...],
                            preferred_element_type=jnp.float32)

    @pl.when(pl.program_id(2) == pl.num_programs(2) - 1)
    def _():
        r = acc_ref[...] + bias_ref[...]
        if apply_relu:
            r = jnp.maximum(r, 0.0)
        o_ref[...] = r.astype(o_ref.dtype)


def _largest_divisor_tile(dim, unit, cap):
    """Largest multiple of `unit` that divides `dim` exactly and is <= cap."""
    c = (min(cap, dim) // unit) * unit
    while c >= unit:
        if dim % c == 0:
            return c
        c -= unit
    return unit


def _pick_gemm_tiles(M, K, N, budget, out_bytes):
    cap = 4096 if budget >= 56 * 1024 * 1024 else 2048
    # K tile: exact divisor (no zero-padded / ragged K -- reduction must be exact).
    tk = _largest_divisor_tile(K, 128, cap) if K % 128 == 0 else K
    # N tile: prefer 256-multiples (2x256 MXU on v6e/v7x), then 128, else full N.
    if N % 256 == 0:
        tn = _largest_divisor_tile(N, 256, cap)
    elif N % 128 == 0:
        tn = _largest_divisor_tile(N, 128, cap)
    else:
        tn = N

    def fits(tm_, tk_, tn_):
        vmem = (2 * (tm_ * tk_ * 2 + tk_ * tn_ * 2 + tn_ * 4)   # A, B (bf16), bias (f32)
                + 2 * tm_ * tn_ * out_bytes                      # double-buffered out
                + tm_ * tn_ * 4)                                 # f32 accumulator
        return vmem <= budget

    # Shrink K/N tiles first so even the smallest M tile fits the budget.
    while not fits(8, tk, tn):
        if tn % 256 == 0 and N % (tn // 2) == 0:
            tn //= 2
        elif tk % 256 == 0 and K % (tk // 2) == 0:
            tk //= 2
        else:
            break

    mr = _round_up(M, 8)
    tm = 8
    for cand in (1024, 512, 256, 128, 64, 32, 16, 8):
        t = min(cand, mr)
        if fits(t, tk, tn):
            tm = t
            break

    # v7x megacore: make sure there are >=2 independent (parallel) grid blocks.
    if pl.cdiv(M, tm) * pl.cdiv(N, tn) < 2:
        if M > 8:
            tm = max(8, _round_up(-(-M // 2), 8))
        elif tn % 256 == 0 and N % (tn // 2) == 0:
            tn //= 2
    return tm, tn, tk


def pallas_matmul_bias_act(a, b, bias, relu, out_dtype=jnp.float32):
    """out = act(a @ b + bias);  a:(M,K), b:(K,N), bias:(1,N) or (N,).
    Operands are cast to bf16 for the MXU; accumulation/epilogue stay f32."""
    M, K = a.shape
    K2, N = b.shape
    assert K == K2
    if a.dtype != jnp.bfloat16:
        a = a.astype(jnp.bfloat16)
    if b.dtype != jnp.bfloat16:
        b = b.astype(jnp.bfloat16)
    bias = jnp.asarray(bias, jnp.float32).reshape(1, N)
    if K < 8:                      # degenerate K (tiny upscore GEMMs): pad to 8
        a = jnp.pad(a, ((0, 0), (0, 8 - K)))
        b = jnp.pad(b, ((0, 8 - K), (0, 0)))
        K = 8

    vmem_limit, budget = _vmem_budget()
    out_bytes = jnp.dtype(out_dtype).itemsize
    tm, tn, tk = _pick_gemm_tiles(M, K, N, budget, out_bytes)

    cost = pl.CostEstimate(flops=2 * M * K * N, transcendentals=0,
                           bytes_accessed=int(M * K * 2 + K * N * 2 + M * N * out_bytes))
    out = pl.pallas_call(
        functools.partial(_matmul_kernel, apply_relu=relu),
        out_shape=jax.ShapeDtypeStruct((M, N), out_dtype),
        grid_spec=pltpu.PrefetchScalarGridSpec(
            num_scalar_prefetch=0,
            grid=(pl.cdiv(M, tm), pl.cdiv(N, tn), K // tk),
            in_specs=[
                pl.BlockSpec((tm, tk), lambda i, j, k: (i, k)),
                pl.BlockSpec((tk, tn), lambda i, j, k: (k, j)),
                pl.BlockSpec((1, tn), lambda i, j, k: (0, j)),
            ],
            out_specs=pl.BlockSpec((tm, tn), lambda i, j, k: (i, j)),
            scratch_shapes=[pltpu.VMEM((tm, tn), jnp.float32)],
        ),
        compiler_params=pltpu.CompilerParams(
            dimension_semantics=("parallel", "parallel", "arbitrary"),
            vmem_limit_bytes=vmem_limit),
        cost_estimate=cost,
    )(a, b, bias)
    return out


# ----------------------------------------------------------------------------
# Pallas kernel 2: direct 3x3 conv (no im2col materialization in HBM).
# The zero-padded feature map stays resident in VMEM; the KH*KW taps are
# accumulated in-kernel as row-shifted GEMMs on the width-padded output grid.
# ----------------------------------------------------------------------------
def _direct_conv_kernel(f_ref, w_ref, b_ref, o_ref, acc_ref, *, taps, cin, tm, relu):
    base = pl.program_id(2) * tm
    for t, s in enumerate(taps):
        a = f_ref[0, pl.ds(base + s, tm), :]            # (tm, cin) bf16
        w = w_ref[pl.ds(t * cin, cin), :]                # (cin, tco) bf16
        contrib = jnp.dot(a, w, preferred_element_type=jnp.float32)
        if t == 0:
            acc_ref[...] = contrib
        else:
            acc_ref[...] += contrib
    r = acc_ref[...] + b_ref[...]
    if relu:
        r = jnp.maximum(r, 0.0)
    o_ref[0, :, :] = r.astype(o_ref.dtype)


def _conv2d_direct(x, w_mat, bias, kh, kw, padding, relu, out_dtype):
    """Direct conv.  Returns None if the feature map does not fit VMEM."""
    NB, H, W, Cin = x.shape
    Cout = w_mat.shape[1]
    p = padding
    OH = H + 2 * p - kh + 1
    OW = W + 2 * p - kw + 1
    Wp = OW + kw - 1
    M = OH * Wp                                      # width-padded output rows

    vmem_limit, budget = _vmem_budget()
    if Cout % 256 == 0:
        tco = 256
    elif Cout % 128 == 0:
        tco = 128
    else:
        tco = Cout
    tm = min(512, _round_up(M, 8))
    if NB * pl.cdiv(Cout, tco) * pl.cdiv(M, tm) < 2 and M > 8:
        tm = _round_up(-(-M // 2), 8)                # keep both v7x cores busy
    n_mblk = pl.cdiv(M, tm)

    rows_needed = n_mblk * tm + (kh - 1) * Wp + (kw - 1)
    Hp2 = -(-rows_needed // Wp)                      # pad extra zero rows at bottom
    Rp = Hp2 * Wp
    out_bytes = jnp.dtype(out_dtype).itemsize
    footprint = (2 * Rp * Cin * 2 + 2 * kh * kw * Cin * tco * 2 + 2 * 4 * tco
                 + 2 * tm * tco * out_bytes + tm * tco * 4)
    if footprint > budget:
        # TODO(synk): row-slab manual-DMA double-buffered path for large maps.
        return None

    xp = jnp.pad(x, ((0, 0), (p, Hp2 - H - p), (p, p), (0, 0)))
    f = xp.reshape(NB, Rp, Cin)
    taps = tuple(dy * Wp + dx for dy in range(kh) for dx in range(kw))

    out = pl.pallas_call(
        functools.partial(_direct_conv_kernel, taps=taps, cin=Cin, tm=tm, relu=relu),
        out_shape=jax.ShapeDtypeStruct((NB, M, Cout), out_dtype),
        grid_spec=pltpu.PrefetchScalarGridSpec(
            num_scalar_prefetch=0,
            grid=(NB, pl.cdiv(Cout, tco), n_mblk),
            in_specs=[
                pl.BlockSpec((1, Rp, Cin), lambda b, j, i: (b, 0, 0)),      # resident map
                pl.BlockSpec((kh * kw * Cin, tco), lambda b, j, i: (0, j)),
                pl.BlockSpec((1, tco), lambda b, j, i: (0, j)),
            ],
            out_specs=pl.BlockSpec((1, tm, tco), lambda b, j, i: (b, i, j)),
            scratch_shapes=[pltpu.VMEM((tm, tco), jnp.float32)],
        ),
        compiler_params=pltpu.CompilerParams(
            dimension_semantics=("parallel", "parallel", "parallel"),
            vmem_limit_bytes=vmem_limit),
    )(f, w_mat, bias)
    # Drop the kw-1 garbage columns of the width-padded grid.
    return out.reshape(NB, OH, Wp, Cout)[:, :, :OW, :]


def _conv2d_im2col(x, w_mat, bias, kh, kw, padding, relu, out_dtype):
    """Fallback / small-layer path: im2col (bf16) + Pallas GEMM."""
    NB, H, W, Cin = x.shape
    Cout = w_mat.shape[1]
    p = padding
    xp = jnp.pad(x, ((0, 0), (p, p), (p, p), (0, 0))) if p else x
    OH = H + 2 * p - kh + 1
    OW = W + 2 * p - kw + 1
    if kh == 1 and kw == 1:
        a = xp.reshape(NB * OH * OW, Cin)
    elif OH == 1 and OW == 1:                       # fc6: patches == whole input
        a = xp.reshape(NB, kh * kw * Cin)
    else:
        patches = jnp.concatenate(
            [xp[:, dy:dy + OH, dx:dx + OW, :] for dy in range(kh) for dx in range(kw)],
            axis=-1)
        a = patches.reshape(NB * OH * OW, kh * kw * Cin)
    y = pallas_matmul_bias_act(a, w_mat, bias, relu, out_dtype=out_dtype)
    return y.reshape(NB, OH, OW, Cout)


def conv2d(x, w_mat, bias, kh, kw, padding, relu, out_dtype=jnp.bfloat16):
    """x: (N,H,W,Cin) bf16;  w_mat: (KH*KW*Cin, Cout) bf16;  bias: (1,Cout) f32."""
    NB, H, W, Cin = x.shape
    OH = H + 2 * padding - kh + 1
    OW = W + 2 * padding - kw + 1
    if kh > 1 and min(OH, OW) > 1 and Cin % 8 == 0:
        try:
            y = _conv2d_direct(x, w_mat, bias, kh, kw, padding, relu, out_dtype)
            if y is not None:
                return y
        except Exception:
            pass  # fall back to the proven im2col GEMM path
    return _conv2d_im2col(x, w_mat, bias, kh, kw, padding, relu, out_dtype)


# ----------------------------------------------------------------------------
# Pallas kernel 3: 2x2 ceil-mode max-pool over a pure-reshape view.
# ----------------------------------------------------------------------------
def _pool2x2_kernel(x_ref, o_ref, *, c):
    a = jnp.maximum(x_ref[:, 0, :, :], x_ref[:, 1, :, :])   # max over the H pair
    o_ref[...] = jnp.maximum(a[:, :, :c], a[:, :, c:])       # max over the W pair


def _max4_kernel(a_ref, b_ref, c_ref, d_ref, o_ref):
    o_ref[...] = jnp.maximum(jnp.maximum(a_ref[...], b_ref[...]),
                             jnp.maximum(c_ref[...], d_ref[...]))


def _maxpool_fallback(x):
    """Original 4-corner pool (x already even / -inf padded)."""
    NB, H, W, C = x.shape
    OH, OW = H // 2, W // 2
    corners = (x[:, 0::2, 0::2, :], x[:, 0::2, 1::2, :],
               x[:, 1::2, 0::2, :], x[:, 1::2, 1::2, :])
    M = NB * OH * OW
    TM = min(1024, _round_up(M, 16))
    Mp = _round_up(M, TM)

    def flat(t):
        return jnp.pad(t.reshape(M, C), ((0, Mp - M), (0, 0)))

    out = pl.pallas_call(
        _max4_kernel,
        out_shape=jax.ShapeDtypeStruct((Mp, C), x.dtype),
        grid_spec=pltpu.PrefetchScalarGridSpec(
            num_scalar_prefetch=0,
            grid=(Mp // TM,),
            in_specs=[pl.BlockSpec((TM, C), lambda i: (i, 0))] * 4,
            out_specs=pl.BlockSpec((TM, C), lambda i: (i, 0)),
        ),
        compiler_params=pltpu.CompilerParams(
            dimension_semantics=("parallel",),
            vmem_limit_bytes=_vmem_budget()[0]),
    )(*[flat(t) for t in corners])
    return out[:M].reshape(NB, OH, OW, C)


def maxpool2x2_ceil(x):
    """2x2 / stride 2 max pool, ceil_mode=True.  x: (N,H,W,C)."""
    NB, H, W, C = x.shape
    OH, OW = -(-H // 2), -(-W // 2)
    Hp, Wp = 2 * OH, 2 * OW
    if (Hp, Wp) != (H, W):
        x = jnp.pad(x, ((0, 0), (0, Hp - H), (0, Wp - W), (0, 0)),
                    constant_values=-jnp.inf)
    vmem_limit, budget = _vmem_budget()
    xin = x.reshape(NB * OH, 2, OW, 2 * C)          # pure reshape, no gathers
    M = NB * OH
    bytes_per = x.dtype.itemsize
    mr = _round_up(M, 8)
    tm = min(8, mr)
    for cand in (512, 256, 128, 64, 32, 16, 8):
        t = min(cand, mr)
        if 2 * (t * 2 * OW * 2 * C + t * OW * C) * bytes_per <= budget:
            tm = t
            break
    try:
        out = pl.pallas_call(
            functools.partial(_pool2x2_kernel, c=C),
            out_shape=jax.ShapeDtypeStruct((M, OW, C), x.dtype),
            grid_spec=pltpu.PrefetchScalarGridSpec(
                num_scalar_prefetch=0,
                grid=(pl.cdiv(M, tm),),
                in_specs=[pl.BlockSpec((tm, 2, OW, 2 * C), lambda i: (i, 0, 0, 0))],
                out_specs=pl.BlockSpec((tm, OW, C), lambda i: (i, 0, 0)),
            ),
            compiler_params=pltpu.CompilerParams(
                dimension_semantics=("parallel",),
                vmem_limit_bytes=vmem_limit),
        )(xin)
        return out.reshape(NB, OH, OW, C)
    except Exception:
        return _maxpool_fallback(x)


# ----------------------------------------------------------------------------
# Bilinear ConvTranspose2d (upscore): channel-diagonal + separable -> two GEMMs.
# The final 19-pixel crop is fused by restricting the operator rows (exact).
# ----------------------------------------------------------------------------
def _bilinear_matrix(ksize, stride, length_in):
    factor = (ksize + 1) // 2
    center = (factor - 1) if (ksize % 2 == 1) else (factor - 0.5)
    og = jnp.arange(ksize, dtype=jnp.float32)
    filt = 1.0 - jnp.abs(og - center) / factor
    length_out = (length_in - 1) * stride + ksize
    o = jnp.arange(length_out)[:, None]
    i = jnp.arange(length_in)[None, :]
    k = o - i * stride
    valid = (k >= 0) & (k < ksize)
    return jnp.where(valid, filt[jnp.clip(k, 0, ksize - 1)], 0.0)   # (Lout, Lin)


def upscore_bilinear_cropped(x, out_h, out_w, ksize=64, stride=32, crop=19):
    """ConvTranspose2d(C,C,64,stride=32,bias=False) with bilinear diagonal weight,
    followed by the [crop:crop+out] spatial crop.  x: (N,H,W,C) -> (N,out_h,out_w,C)."""
    NB, H, W, C = x.shape
    Uh = _bilinear_matrix(ksize, stride, H)[crop:crop + out_h]      # (out_h, H)
    Uw = _bilinear_matrix(ksize, stride, W)[crop:crop + out_w]      # (out_w, W)
    # contract W:  y1[(nb,h,c), ow] = sum_w x[nb,h,w,c] * Uw[ow,w]
    a1 = jnp.transpose(x, (0, 1, 3, 2)).reshape(NB * H * C, W)
    y1 = pallas_matmul_bias_act(a1, jnp.transpose(Uw),
                                jnp.zeros((1, out_w), jnp.float32),
                                relu=False, out_dtype=jnp.float32)
    # contract H:  y2[(nb,c,ow), oh] = sum_h y1[(nb,h,c), ow] * Uh[oh,h]
    a2 = jnp.transpose(y1.reshape(NB, H, C, out_w), (0, 2, 3, 1)).reshape(NB * C * out_w, H)
    y2 = pallas_matmul_bias_act(a2, jnp.transpose(Uh),
                                jnp.zeros((1, out_h), jnp.float32),
                                relu=False, out_dtype=jnp.float32)
    return jnp.transpose(y2.reshape(NB, C, out_w, out_h), (0, 3, 2, 1))


# ----------------------------------------------------------------------------
# Parameter construction (deterministic, shapes per FCN32s.__init__).
# Weights are stored pre-reshaped as (KH*KW*Cin, Cout) bf16, bias as (1,Cout) f32.
# ----------------------------------------------------------------------------
_CONV_DEFS = [
    # name, cin, cout, k, pad, relu
    ("conv1_1", 3, 64, 3, 100, True),
    ("conv1_2", 64, 64, 3, 1, True),
    ("conv2_1", 64, 128, 3, 1, True),
    ("conv2_2", 128, 128, 3, 1, True),
    ("conv3_1", 128, 256, 3, 1, True),
    ("conv3_2", 256, 256, 3, 1, True),
    ("conv3_3", 256, 256, 3, 1, True),
    ("conv4_1", 256, 512, 3, 1, True),
    ("conv4_2", 512, 512, 3, 1, True),
    ("conv4_3", 512, 512, 3, 1, True),
    ("conv5_1", 512, 512, 3, 1, True),
    ("conv5_2", 512, 512, 3, 1, True),
    ("conv5_3", 512, 512, 3, 1, True),
    ("fc6", 512, 4096, 7, 0, True),
    ("fc7", 4096, 4096, 1, 0, True),
    ("score_fr", 4096, N_CLASS, 1, 0, False),
]


def make_params(key):
    params = {}
    keys = jax.random.split(key, len(_CONV_DEFS))
    for (name, cin, cout, k, _pad, _relu), kk in zip(_CONV_DEFS, keys):
        fan_in = k * k * cin
        w = jax.random.normal(kk, (k, k, cin, cout), jnp.float32) * (fan_in ** -0.5)
        params[name] = (w.reshape(k * k * cin, cout).astype(jnp.bfloat16),
                        jnp.zeros((1, cout), jnp.float32))
    return params


# ----------------------------------------------------------------------------
# FCN32s forward (input NCHW like PyTorch, output NCHW (n, n_class, H, W)).
# ----------------------------------------------------------------------------
def fcn32s_forward(x_nchw, params):
    x = jnp.transpose(x_nchw, (0, 2, 3, 1)).astype(jnp.bfloat16)   # -> NHWC bf16
    H_in, W_in = x.shape[1], x.shape[2]
    cfg = {d[0]: d for d in _CONV_DEFS}

    def conv(h, name, out_dtype=jnp.bfloat16):
        _, _, _, k, pad, relu = cfg[name]
        w, b = params[name]
        return conv2d(h, w, b, k, k, pad, relu, out_dtype=out_dtype)

    h = conv(x, "conv1_1")
    h = conv(h, "conv1_2")
    h = maxpool2x2_ceil(h)
    h = conv(h, "conv2_1")
    h = conv(h, "conv2_2")
    h = maxpool2x2_ceil(h)
    h = conv(h, "conv3_1")
    h = conv(h, "conv3_2")
    h = conv(h, "conv3_3")
    h = maxpool2x2_ceil(h)
    h = conv(h, "conv4_1")
    h = conv(h, "conv4_2")
    h = conv(h, "conv4_3")
    h = maxpool2x2_ceil(h)
    h = conv(h, "conv5_1")
    h = conv(h, "conv5_2")
    h = conv(h, "conv5_3")
    h = maxpool2x2_ceil(h)
    h = conv(h, "fc6")
    # TODO(synk): Dropout2d (drop6/drop7) treated as eval-mode identity; training-mode
    # stochastic channel dropout is not implemented.
    h = conv(h, "fc7")
    h = conv(h, "score_fr", out_dtype=jnp.float32)
    h = upscore_bilinear_cropped(h, H_in, W_in, ksize=64, stride=32, crop=19)
    return jnp.transpose(h, (0, 3, 1, 2))   # -> NCHW (n, n_class, H, W)


if __name__ == "__main__":
    key = jax.random.PRNGKey(0)
    k_params, k_x = jax.random.split(key)
    params = make_params(k_params)
    # Input [n, 3, H, W]; 16x16 is the smallest size the 100-padded VGG trunk
    # + 7x7 fc6 supports cleanly, and keeps total work / grid steps minimal.
    x = jax.random.normal(k_x, (1, 3, 16, 16), jnp.float32)
    out = fcn32s_forward(x, params)
    out = jax.block_until_ready(out)
    assert out.shape == (1, N_CLASS, 16, 16), out.shape
    print("KERNEL_OK")
</pallas_src>

<mosaic_0001>
module attributes {stable_mosaic.version = 11 : i64} {
  func.func @_matmul_kernel(%arg0: i32, %arg1: i32, %arg2: i32, %arg3: memref<1024x27xbf16, #tpu.memory_space<vmem>>, %arg4: memref<27x64xbf16, #tpu.memory_space<vmem>>, %arg5: memref<1x64xf32, #tpu.memory_space<vmem>>, %arg6: memref<1024x64xbf16, #tpu.memory_space<vmem>>, %arg7: memref<1024x64xf32, #tpu.memory_space<vmem>>) attributes {dimension_semantics = [#tpu.dimension_semantics<parallel>, #tpu.dimension_semantics<parallel>, #tpu.dimension_semantics<arbitrary>], iteration_bounds = array<i64: 45, 1, 1>, scalar_prefetch = 0 : i64, scratch_operands = 1 : i64, tpu.core_type = #tpu.core_type<tc>, window_params = [{transform_indices = @transform_0, window_bounds = array<i64: 1024, 27>}, {transform_indices = @transform_1, window_bounds = array<i64: 27, 64>}, {transform_indices = @transform_2, window_bounds = array<i64: 1, 64>}, {transform_indices = @transform_3, window_bounds = array<i64: 1024, 64>}]} {
    %c0_i32 = arith.constant 0 : i32
    %0 = arith.cmpi eq, %arg2, %c0_i32 : i32
    %1 = arith.extui %0 : i1 to i32
    %c0_i32_0 = arith.constant 0 : i32
    %2 = arith.cmpi ne, %1, %c0_i32_0 : i32
    scf.if %2 {
      %cst_10 = arith.constant 0.000000e+00 : f32
      %12 = vector.broadcast %cst_10 : f32 to vector<1024x64xf32>
      %c0_11 = arith.constant 0 : index
      %c0_12 = arith.constant 0 : index
      %13 = vector.load %arg7[%c0_11, %c0_12] : memref<1024x64xf32, #tpu.memory_space<vmem>>, vector<1024x64xf32>
      tpu.vector_store %arg7[%c0_11, %c0_12], %12 {strides = array<i32>} : memref<1024x64xf32, #tpu.memory_space<vmem>>, vector<1024x64xf32>,
    } else {
    }
    %c0 = arith.constant 0 : index
    %c0_1 = arith.constant 0 : index
    %3 = vector.load %arg7[%c0, %c0_1] : memref<1024x64xf32, #tpu.memory_space<vmem>>, vector<1024x64xf32>
    %c0_2 = arith.constant 0 : index
    %c0_3 = arith.constant 0 : index
    %4 = vector.load %arg3[%c0_2, %c0_3] : memref<1024x27xbf16, #tpu.memory_space<vmem>>, vector<1024x27xbf16>
    %c0_4 = arith.constant 0 : index
    %c0_5 = arith.constant 0 : index
    %5 = vector.load %arg4[%c0_4, %c0_5] : memref<27x64xbf16, #tpu.memory_space<vmem>>, vector<27x64xbf16>
    %cst = arith.constant dense<0.000000e+00> : vector<1024x64xf32>
    %6 = tpu.matmul %4, %5, %cst {dimension_numbers = #tpu.dot_dimension_numbers<[1], [0], [0], [1], [0, 0, 1, 1], [], []>} : vector<1024x27xbf16>, vector<27x64xbf16>, vector<1024x64xf32> -> vector<1024x64xf32>
    %7 = arith.addf %3, %6 : vector<1024x64xf32>
    %c0_6 = arith.constant 0 : index
    %c0_7 = arith.constant 0 : index
    %8 = vector.load %arg7[%c0_6, %c0_7] : memref<1024x64xf32, #tpu.memory_space<vmem>>, vector<1024x64xf32>
    tpu.vector_store %arg7[%c0_6, %c0_7], %7 {strides = array<i32>} : memref<1024x64xf32, #tpu.memory_space<vmem>>, vector<1024x64xf32>,
    %c0_i32_8 = arith.constant 0 : i32
    %9 = arith.cmpi eq, %arg2, %c0_i32_8 : i32
    %10 = arith.extui %9 : i1 to i32
    %c0_i32_9 = arith.constant 0 : i32
    %11 = arith.cmpi ne, %10, %c0_i32_9 : i32
    scf.if %11 {
      %c0_10 = arith.constant 0 : index
      %c0_11 = arith.constant 0 : index
      %12 = vector.load %arg7[%c0_10, %c0_11] : memref<1024x64xf32, #tpu.memory_space<vmem>>, vector<1024x64xf32>
      %c0_12 = arith.constant 0 : index
      %c0_13 = arith.constant 0 : index
      %13 = vector.load %arg5[%c0_12, %c0_13] : memref<1x64xf32, #tpu.memory_space<vmem>>, vector<1x64xf32>
      %14 = vector.broadcast %13 : vector<1x64xf32> to vector<1024x64xf32>
      %15 = arith.addf %12, %14 : vector<1024x64xf32>
      %cst_14 = arith.constant 0.000000e+00 : f32
      %16 = vector.broadcast %cst_14 : f32 to vector<1024x64xf32>
      %17 = arith.maximumf %15, %16 : vector<1024x64xf32>
      %18 = arith.truncf %17 : vector<1024x64xf32> to vector<1024x64xbf16>
      %c0_15 = arith.constant 0 : index
      %c0_16 = arith.constant 0 : index
      %19 = vector.load %arg6[%c0_15, %c0_16] : memref<1024x64xbf16, #tpu.memory_space<vmem>>, vector<1024x64xbf16>
      tpu.vector_store %arg6[%c0_15, %c0_16], %18 {strides = array<i32>} : memref<1024x64xbf16, #tpu.memory_space<vmem>>, vector<1024x64xbf16>,
    } else {
    }
    return
  }
  func.func @transform_0(%arg0: i32, %arg1: i32, %arg2: i32) -> (i32, i32) {
    %c0_i32 = arith.constant 0 : i32
    return %arg0, %arg2 : i32, i32
  }
  func.func @transform_1(%arg0: i32, %arg1: i32, %arg2: i32) -> (i32, i32) {
    %c0_i32 = arith.constant 0 : i32
    return %arg2, %arg1 : i32, i32
  }
  func.func @transform_2(%arg0: i32, %arg1: i32, %arg2: i32) -> (i32, i32) {
    %c0_i32 = arith.constant 0 : i32
    %c0_i32_0 = arith.constant 0 : i32
    return %c0_i32, %arg1 : i32, i32
  }
  func.func @transform_3(%arg0: i32, %arg1: i32, %arg2: i32) -> (i32, i32) {
    %c0_i32 = arith.constant 0 : i32
    return %arg0, %arg1 : i32, i32
  }
}

</mosaic_0001>

<bundles_post_ra>
// kernel: tpu_custom_call.1
= control target key start
LH: loop header
LB: loop body
LE: loop exit
PB: predicated region body
PF: predicated region fallthrough
CT: control target
= control target key end

     0   :  { %s4467_s12 = smov 0   ;;  %s4469_s13 = smov 0   ;;  %s5742_s0 = inlined_call_operand.vmem [shape: bf16[45796,27], index: 0, kind: input, shape index: {}]   ;;  %s5743_s1 = inlined_call_operand.vmem [shape: bf16[27,64], index: 1, kind: input, shape index: {}]   ;;  %s5744_s2 = inlined_call_operand.vmem [shape: f32[1,64], index: 2, kind: input, shape index: {}]   ;;  %s5745_s3 = inlined_call_operand.vmem [shape: bf16[45796,64], index: 3, kind: output, shape index: {}]  }
   0x1   :  { %s4471_s14 = smov 0   ;;  %s4473_s15 = smov 0  }
   0x2   :  { %s4475_s16 = smov 0  }
   0x3 LB: > { %s3548_s17 = sadd.s32 4294967295, %s4411_s16   ;;  %s32_s18 = sadd.s32 1, %s4407_s15  ;;  %s4411_s16 = sphi %s4475_s16, %s13_s16   ;;  %s4407_s15 = sphi %s4473_s15, %s5753_s15   ;;  %s4403_s14 = sphi %s4471_s14, %s5752_s14   ;;  %s4399_s13 = sphi %s4469_s13, %s5751_s13   ;;  %s4395_s12 = sphi %s4467_s12, %s5750_s12  }
   0x4   : > { %p34_p0 = scmp.ge.s32.totalorder %s32_s18, 45  ;;  %s123_s19 = sadd.s32 1, %s4399_s13 }
   0x5   : > { %p133_p1 = scmp.ne.s32.totalorder %s4399_s13, %s4395_s12  ;;  %p134_p2 = scmp.eq.s32.totalorder %s3548_s17, 44 }
   0x6   : > { %s5755_s18 = smov (%p34_p0, %s32_s18), 0  ;;  %p3554_p4 = scmp.ge.s32.totalorder %s4411_s16, 1 }
   0x7   : > { %p4499_p3 = por %p134_p2, %p133_p1  ;;  %s118_s21 = ssub.s32 %s4407_s15, %s5755_s18 }
   0x8   : > { %p196_p5 = scmp.lt.s32.totalorder %s4411_s16, 46  ;;  %p121_p6 = scmp.eq.s32.totalorder %s118_s21, 0 }
   0xa   : > { %p197_p7 = pnand %p3554_p4, %p196_p5 }
   0xb   : > { %s4508_s22 = scalar_select %p121_p6, %s4399_s13, %s123_s19  }
   0xc   : > { %200 = sbr.rel (%p197_p7) target bundleno = 467 (0x1d3), region = 32  ;;  %s4514_s25 = sshll.u32 (!%p197_p7), %s4403_s14, 7 }
   0xd   : > { %p242_p8 = scmp.lt.s32.totalorder (!%p197_p7), %s4514_s25, 5724  ;;  %s234_s6 = sand.u32 (!%p197_p7), 1, %s4395_s12  }
   0xe   : > { %s4935_s9 = sshll.u32 (!%p197_p7), %s234_s6, 9 }
   0xf   : > { %s4950_s10 = scalar_lea.vmem (!%p197_p7), [#allocation3], %s4935_s9  }
  0x11   : > { %v4273_v0 = vld [vmem:[%s5743_s1 + $0x8] sm:$0x3f]   ;;  %vm1189_vm0 = vcmask 1044480   ;;  %vm1190_vm1 = vcmask 1045504   ;;  %v4445_v1 = vmov 65535   ;;  %v4520_v5 = vld [vmem:[%s5743_s1] sm:$0xff]  }
  0x12   : > { %v1191_v2 = vsel %vm1189_vm0, 4294967295, %v4445_v1  ;;  %s4523_s28 = scalar_select %p242_p8, %s4514_s25, 5724  ;;  %vm276_vm2 = vcmask 523264   ;;  %v4446_v6 = vmov 0.0   ;;  %vm996_vm3 = vcmask 220160  }
  0x13   : > { %v1192_v3 = vsel %vm1190_vm1, %v1191_v2, 0  ;;  %279 = vst.msk [vmem:[#allocation2 + $0x10] sm:$0xff] %vm276_vm2, %v4446_v6  ;;  %277 = vst.msk [vmem:[#allocation2] sm:$0xff] %vm276_vm2, %v4446_v6  ;;  %vm2904_vm4 = vcmask 519168   ;;  %s3041_s21 = ssub.s32 (%p4499_p3), 5725, %s4514_s25  ;;  %s3962_s23 = sshll.u32 (%p4499_p3), %s4403_s14, 9 }
  0x14   : > { %v1194_v4 = vand.u32 %v4273_v0, %v1192_v3  ;;  %s3557_s29 = sshll.u32 %s4523_s28, 2  ;;  %278 = vst.msk [vmem:[#allocation2 + $0x8] sm:$0xff] %vm276_vm2, %v4446_v6  ;;  %280 = vst.msk [vmem:[#allocation2 + $0x18] sm:$0xff] %vm276_vm2, %v4446_v6  ;;  %p3042_p9 = scmp.lt.s32.totalorder (%p4499_p3), %s3041_s21, 128 }
  0x15   : > { %281 = vst.msk [vmem:[#allocation2 + $0x20] sm:$0xff] %vm276_vm2, %v4446_v6  ;;  %282 = vst.msk [vmem:[#allocation2 + $0x28] sm:$0xff] %vm276_vm2, %v4446_v6  ;;  %s4789_s5 = scalar_lea.vmem %s5742_s0, %s3557_s29  ;;  %s5545_s27 = scalar_lea.vmem (%p4499_p3), %s5745_s3, %s3962_s23  }
  0x16   : > { %4031 = vmatprep.subr.bf16.mxu0 %v1194_v4  ;;  %4163 = vmatprep.subr.bf16.mxu1 %v1194_v4  ;;  %283 = vst.msk [vmem:[#allocation2 + $0x30] sm:$0xff] %vm276_vm2, %v4446_v6  ;;  %284 = vst.msk [vmem:[#allocation2 + $0x38] sm:$0xff] %vm276_vm2, %v4446_v6  ;;  %v4275_v7 = vld [vmem:[%s4789_s5] sm:$0xff]   ;;  %v4277_v9 = vld [vmem:[%s4789_s5 + $0x8] sm:$0xff]  }
  0x17   : > { %4032 = vmatpush3.bf16.msra.mxu0 %v1194_v4  ;;  %4165 = vmatpush3.bf16.msra.mxu1 %v1194_v4  ;;  %285 = vst.msk [vmem:[#allocation2 + $0x40] sm:$0xff] %vm276_vm2, %v4446_v6  ;;  %286 = vst.msk [vmem:[#allocation2 + $0x48] sm:$0xff] %vm276_vm2, %v4446_v6  ;;  %v4276_v8 = vld [vmem:[%s4789_s5 + $0x100] sm:$0xff]   ;;  %v4278_v10 = vld [vmem:[%s4789_s5 + $0x108] sm:$0xff]  }
  0x18   : > { %287 = vst.msk [vmem:[#allocation2 + $0x50] sm:$0xff] %vm276_vm2, %v4446_v6  ;;  %288 = vst.msk [vmem:[#allocation2 + $0x58] sm:$0xff] %vm276_vm2, %v4446_v6  ;;  %4033 = vmatprep.subr.bf16.mxu0 %v4520_v5  ;;  %4164 = vmatprep.subr.bf16.mxu1 %v4520_v5  ;;  %v4279_v11 = vld [vmem:[%s4789_s5 + $0x10] sm:$0xff]   ;;  %v4281_v13 = vld [vmem:[%s4789_s5 + $0x18] sm:$0xff]  }
  0x19   : > { %289 = vst.msk [vmem:[#allocation2 + $0x60] sm:$0xff] %vm276_vm2, %v4446_v6  ;;  %290 = vst.msk [vmem:[#allocation2 + $0x68] sm:$0xff] %vm276_vm2, %v4446_v6  ;;  %4035 = vmatprep.mubr.msk.bf16.mxu0 %vm996_vm3, %v4275_v7  ;;  %4099 = vmatprep.mubr.msk.bf16.mxu1 %vm996_vm3, %v4276_v8  ;;  %v4280_v12 = vld [vmem:[%s4789_s5 + $0x110] sm:$0xff]   ;;  %v4282_v14 = vld [vmem:[%s4789_s5 + $0x118] sm:$0xff]  }
  0x1a   : > { %291 = vst.msk [vmem:[#allocation2 + $0x70] sm:$0xff] %vm276_vm2, %v4446_v6  ;;  %292 = vst.msk [vmem:[#allocation2 + $0x78] sm:$0xff] %vm276_vm2, %v4446_v6  ;;  %v4283_v15 = vld [vmem:[%s4789_s5 + $0x20] sm:$0xff]   ;;  %v4285_v17 = vld [vmem:[%s4789_s5 + $0x28] sm:$0xff]  }
  0x1b   : > { %293 = vst.msk [vmem:[#allocation2 + $0x80] sm:$0xff] %vm276_vm2, %v4446_v6  ;;  %294 = vst.msk [vmem:[#allocation2 + $0x88] sm:$0xff] %vm276_vm2, %v4446_v6  ;;  %4034 = vmatpush3.bf16.msra.mxu0 %v4520_v5  ;;  %4166 = vmatpush3.bf16.msra.mxu1 %v4520_v5  ;;  %v4284_v16 = vld [vmem:[%s4789_s5 + $0x120] sm:$0xff]   ;;  %v4286_v18 = vld [vmem:[%s4789_s5 + $0x128] sm:$0xff]  }
  0x1c   : > { %295 = vst.msk [vmem:[#allocation2 + $0x90] sm:$0xff] %vm276_vm2, %v4446_v6  ;;  %296 = vst.msk [vmem:[#allocation2 + $0x98] sm:$0xff] %vm276_vm2, %v4446_v6  ;;  %v4287_v19 = vld [vmem:[%s4789_s5 + $0x30] sm:$0xff]   ;;  %v4289_v21 = vld [vmem:[%s4789_s5 + $0x38] sm:$0xff]  }
  0x1d   : > { %297 = vst.msk [vmem:[#allocation2 + $0xa0] sm:$0xff] %vm276_vm2, %v4446_v6  ;;  %298 = vst.msk [vmem:[#allocation2 + $0xa8] sm:$0xff] %vm276_vm2, %v4446_v6  ;;  %v4288_v20 = vld [vmem:[%s4789_s5 + $0x130] sm:$0xff]   ;;  %v4290_v22 = vld [vmem:[%s4789_s5 + $0x138] sm:$0xff]  }
  0x1e   : > { %299 = vst.msk [vmem:[#allocation2 + $0xb0] sm:$0xff] %vm276_vm2, %v4446_v6  ;;  %300 = vst.msk [vmem:[#allocation2 + $0xb8] sm:$0xff] %vm276_vm2, %v4446_v6  ;;  %4036 = vmatmul.mubr.msk.bf16.vlgmr.msra.gmra.mxu0 %vm996_vm3, %v4277_v9  ;;  %4100 = vmatmul.mubr.msk.bf16.vlgmr.msra.gmra.mxu1 %vm996_vm3, %v4278_v10  ;;  %v4291_v23 = vld [vmem:[%s4789_s5 + $0x40] sm:$0xff]   ;;  %v4293_v25 = vld [vmem:[%s4789_s5 + $0x48] sm:$0xff]  }
  0x1f   : > { %301 = vst.msk [vmem:[#allocation2 + $0xc0] sm:$0xff] %vm276_vm2, %v4446_v6  ;;  %302 = vst.msk [vmem:[#allocation2 + $0xc8] sm:$0xff] %vm276_vm2, %v4446_v6  ;;  %4039 = vmatprep.mubr.msk.bf16.mxu0 %vm996_vm3, %v4279_v11  ;;  %4103 = vmatprep.mubr.msk.bf16.mxu1 %vm996_vm3, %v4280_v12  ;;  %v4292_v24 = vld [vmem:[%s4789_s5 + $0x140] sm:$0xff]   ;;  %v4294_v26 = vld [vmem:[%s4789_s5 + $0x148] sm:$0xff]  }
  0x20   : > { %303 = vst.msk [vmem:[#allocation2 + $0xd0] sm:$0xff] %vm276_vm2, %v4446_v6  ;;  %304 = vst.msk [vmem:[#allocation2 + $0xd8] sm:$0xff] %vm276_vm2, %v4446_v6  ;;  %v4295_v27 = vld [vmem:[%s4789_s5 + $0x50] sm:$0xff]   ;;  %v4297_v29 = vld [vmem:[%s4789_s5 + $0x58] sm:$0xff]  }
  0x21   : > { %305 = vst.msk [vmem:[#allocation2 + $0xe0] sm:$0xff] %vm276_vm2, %v4446_v6  ;;  %306 = vst.msk [vmem:[#allocation2 + $0xe8] sm:$0xff] %vm276_vm2, %v4446_v6  ;;  %v4296_v28 = vld [vmem:[%s4789_s5 + $0x150] sm:$0xff]   ;;  %v4298_v30 = vld [vmem:[%s4789_s5 + $0x158] sm:$0xff]  }
  0x22   : > { %307 = vst.msk [vmem:[#allocation2 + $0xf0] sm:$0xff] %vm276_vm2, %v4446_v6  ;;  %308 = vst.msk [vmem:[#allocation2 + $0xf8] sm:$0xff] %vm276_vm2, %v4446_v6  ;;  %v4299_v31 = vld [vmem:[%s4789_s5 + $0x60] sm:$0xff]   ;;  %v4301_v33 = vld [vmem:[%s4789_s5 + $0x68] sm:$0xff]  }
  0x23   : > { %309 = vst.msk [vmem:[#allocation2 + $0x100] sm:$0xff] %vm276_vm2, %v4446_v6  ;;  %310 = vst.msk [vmem:[#allocation2 + $0x108] sm:$0xff] %vm276_vm2, %v4446_v6  ;;  %v4300_v32 = vld [vmem:[%s4789_s5 + $0x160] sm:$0xff]   ;;  %v4302_v34 = vld [vmem:[%s4789_s5 + $0x168] sm:$0xff]  }
  0x24   : > { %311 = vst.msk [vmem:[#allocation2 + $0x110] sm:$0xff] %vm276_vm2, %v4446_v6  ;;  %312 = vst.msk [vmem:[#allocation2 + $0x118] sm:$0xff] %vm276_vm2, %v4446_v6  ;;  %v4303_v35 = vld [vmem:[%s4789_s5 + $0x70] sm:$0xff]   ;;  %v4305_v37 = vld [vmem:[%s4789_s5 + $0x78] sm:$0xff]  }
  0x25   : > { %313 = vst.msk [vmem:[#allocation2 + $0x120] sm:$0xff] %vm276_vm2, %v4446_v6  ;;  %314 = vst.msk [vmem:[#allocation2 + $0x128] sm:$0xff] %vm276_vm2, %v4446_v6  ;;  %v4304_v36 = vld [vmem:[%s4789_s5 + $0x170] sm:$0xff]   ;;  %v4306_v38 = vld [vmem:[%s4789_s5 + $0x178] sm:$0xff]  }
  0x26   : > { %315 = vst.msk [vmem:[#allocation2 + $0x130] sm:$0xff] %vm276_vm2, %v4446_v6  ;;  %316 = vst.msk [vmem:[#allocation2 + $0x138] sm:$0xff] %vm276_vm2, %v4446_v6  ;;  %4040 = vmatmul.mubr.msk.bf16.gmra.mxu0 %vm996_vm3, %v4281_v13  ;;  %4104 = vmatmul.mubr.msk.bf16.gmra.mxu1 %vm996_vm3, %v4282_v14  ;;  %v4307_v39 = vld [vmem:[%s4789_s5 + $0x80] sm:$0xff]   ;;  %v4309_v41 = vld [vmem:[%s4789_s5 + $0x88] sm:$0xff]  }
  0x27   : > { %317 = vst.msk [vmem:[#allocation2 + $0x140] sm:$0xff] %vm276_vm2, %v4446_v6  ;;  %318 = vst.msk [vmem:[#allocation2 + $0x148] sm:$0xff] %vm276_vm2, %v4446_v6  ;;  %4043 = vmatprep.mubr.msk.bf16.mxu0 %vm996_vm3, %v4283_v15  ;;  %4107 = vmatprep.mubr.msk.bf16.mxu1 %vm996_vm3, %v4284_v16  ;;  %v4308_v40 = vld [vmem:[%s4789_s5 + $0x180] sm:$0xff]   ;;  %v4310_v42 = vld [vmem:[%s4789_s5 + $0x188] sm:$0xff]  }
  0x28   : > { %319 = vst.msk [vmem:[#allocation2 + $0x150] sm:$0xff] %vm276_vm2, %v4446_v6  ;;  %320 = vst.msk [vmem:[#allocation2 + $0x158] sm:$0xff] %vm276_vm2, %v4446_v6  ;;  %v4311_v43 = vld [vmem:[%s4789_s5 + $0x90] sm:$0xff]   ;;  %v4313_v45 = vld [vmem:[%s4789_s5 + $0x98] sm:$0xff]  }
  0x29   : > { %321 = vst.msk [vmem:[#allocation2 + $0x160] sm:$0xff] %vm276_vm2, %v4446_v6  ;;  %322 = vst.msk [vmem:[#allocation2 + $0x168] sm:$0xff] %vm276_vm2, %v4446_v6  ;;  %v4312_v44 = vld [vmem:[%s4789_s5 + $0x190] sm:$0xff]   ;;  %v4314_v46 = vld [vmem:[%s4789_s5 + $0x198] sm:$0xff]  }
  0x2a   : > { %323 = vst.msk [vmem:[#allocation2 + $0x170] sm:$0xff] %vm276_vm2, %v4446_v6  ;;  %324 = vst.msk [vmem:[#allocation2 + $0x178] sm:$0xff] %vm276_vm2, %v4446_v6  ;;  %v4315_v47 = vld [vmem:[%s4789_s5 + $0xa0] sm:$0xff]   ;;  %v4317_v49 = vld [vmem:[%s4789_s5 + $0xa8] sm:$0xff]  }
  0x2b   : > { %325 = vst.msk [vmem:[#allocation2 + $0x180] sm:$0xff] %vm276_vm2, %v4446_v6  ;;  %326 = vst.msk [vmem:[#allocation2 + $0x188] sm:$0xff] %vm276_vm2, %v4446_v6  ;;  %v4316_v48 = vld [vmem:[%s4789_s5 + $0x1a0] sm:$0xff]   ;;  %v4318_v50 = vld [vmem:[%s4789_s5 + $0x1a8] sm:$0xff]  }
  0x2c   : > { %327 = vst.msk [vmem:[#allocation2 + $0x190] sm:$0xff] %vm276_vm2, %v4446_v6  ;;  %328 = vst.msk [vmem:[#allocation2 + $0x198] sm:$0xff] %vm276_vm2, %v4446_v6  ;;  %v4319_v51 = vld [vmem:[%s4789_s5 + $0xb0] sm:$0xff]   ;;  %v4321_v53 = vld [vmem:[%s4789_s5 + $0xb8] sm:$0xff]  }
  0x2d   : > { %329 = vst.msk [vmem:[#allocation2 + $0x1a0] sm:$0xff] %vm276_vm2, %v4446_v6  ;;  %330 = vst.msk [vmem:[#allocation2 + $0x1a8] sm:$0xff] %vm276_vm2, %v4446_v6  ;;  %v4320_v52 = vld [vmem:[%s4789_s5 + $0x1b0] sm:$0xff]   ;;  %v4322_v54 = vld [vmem:[%s4789_s5 + $0x1b8] sm:$0xff]  }
  0x2e   : > { %331 = vst.msk [vmem:[#allocation2 + $0x1b0] sm:$0xff] %vm276_vm2, %v4446_v6  ;;  %332 = vst.msk [vmem:[#allocation2 + $0x1b8] sm:$0xff] %vm276_vm2, %v4446_v6  ;;  %4044 = vmatmul.mubr.msk.bf16.gmra.mxu0 %vm996_vm3, %v4285_v17  ;;  %4108 = vmatmul.mubr.msk.bf16.gmra.mxu1 %vm996_vm3, %v4286_v18  ;;  %v4323_v55 = vld [vmem:[%s4789_s5 + $0xc0] sm:$0xff]   ;;  %v4325_v57 = vld [vmem:[%s4789_s5 + $0xc8] sm:$0xff]  }
  0x2f   : > { %333 = vst.msk [vmem:[#allocation2 + $0x1c0] sm:$0xff] %vm276_vm2, %v4446_v6  ;;  %334 = vst.msk [vmem:[#allocation2 + $0x1c8] sm:$0xff] %vm276_vm2, %v4446_v6  ;;  %4047 = vmatprep.mubr.msk.bf16.mxu0 %vm996_vm3, %v4287_v19  ;;  %4111 = vmatprep.mubr.msk.bf16.mxu1 %vm996_vm3, %v4288_v20  ;;  %v4324_v56 = vld [vmem:[%s4789_s5 + $0x1c0] sm:$0xff]   ;;  %v4326_v58 = vld [vmem:[%s4789_s5 + $0x1c8] sm:$0xff]  }
  0x30   : > { %335 = vst.msk [vmem:[#allocation2 + $0x1d0] sm:$0xff] %vm276_vm2, %v4446_v6  ;;  %336 = vst.msk [vmem:[#allocation2 + $0x1d8] sm:$0xff] %vm276_vm2, %v4446_v6  ;;  %v4327_v59 = vld [vmem:[%s4789_s5 + $0xd0] sm:$0xff]   ;;  %v4329_v61 = vld [vmem:[%s4789_s5 + $0xd8] sm:$0xff]  }
  0x31   : > { %337 = vst.msk [vmem:[#allocation2 + $0x1e0] sm:$0xff] %vm276_vm2, %v4446_v6  ;;  %338 = vst.msk [vmem:[#allocation2 + $0x1e8] sm:$0xff] %vm276_vm2, %v4446_v6  ;;  %v4328_v60 = vld [vmem:[%s4789_s5 + $0x1d0] sm:$0xff]   ;;  %v4330_v62 = vld [vmem:[%s4789_s5 + $0x1d8] sm:$0xff]  }
  0x32   : > { %339 = vst.msk [vmem:[#allocation2 + $0x1f0] sm:$0xff] %vm276_vm2, %v4446_v6  ;;  %340 = vst.msk [vmem:[#allocation2 + $0x1f8] sm:$0xff] %vm276_vm2, %v4446_v6  ;;  %v4331_v63 = vld [vmem:[%s4789_s5 + $0xe0] sm:$0xff]   ;;  %v4333_v1 = vld [vmem:[%s4789_s5 + $0xe8] sm:$0xff]  }
  0x33   : > { %341 = vst.msk [vmem:[#allocation2 + $0x200] sm:$0xff] %vm276_vm2, %v4446_v6  ;;  %342 = vst.msk [vmem:[#allocation2 + $0x208] sm:$0xff] %vm276_vm2, %v4446_v6  ;;  %v4332_v0 = vld [vmem:[%s4789_s5 + $0x1e0] sm:$0xff]   ;;  %v4334_v2 = vld [vmem:[%s4789_s5 + $0x1e8] sm:$0xff]  }
  0x34   : > { %343 = vst.msk [vmem:[#allocation2 + $0x210] sm:$0xff] %vm276_vm2, %v4446_v6  ;;  %344 = vst.msk [vmem:[#allocation2 + $0x218] sm:$0xff] %vm276_vm2, %v4446_v6  ;;  %v4335_v3 = vld [vmem:[%s4789_s5 + $0xf0] sm:$0xff]   ;;  %v4337_v5 = vld [vmem:[%s4789_s5 + $0xf8] sm:$0xff]  }
  0x35   : > { %345 = vst.msk [vmem:[#allocation2 + $0x220] sm:$0xff] %vm276_vm2, %v4446_v6  ;;  %346 = vst.msk [vmem:[#allocation2 + $0x228] sm:$0xff] %vm276_vm2, %v4446_v6  ;;  %v4336_v4 = vld [vmem:[%s4789_s5 + $0x1f0] sm:$0xff]   ;;  %v405_v11 = vld [vmem:[#allocation2] sm:$0xff] }
  0x36   : > { %347 = vst.msk [vmem:[#allocation2 + $0x230] sm:$0xff] %vm276_vm2, %v4446_v6  ;;  %348 = vst.msk [vmem:[#allocation2 + $0x238] sm:$0xff] %vm276_vm2, %v4446_v6  ;;  %4048 = vmatmul.mubr.msk.bf16.gmra.mxu0 %vm996_vm3, %v4289_v21  ;;  %4112 = vmatmul.mubr.msk.bf16.gmra.mxu1 %vm996_vm3, %v4290_v22  ;;  %v407_v7 = vld [vmem:[#allocation2 + $0x10] sm:$0xff]  ;;  %v408_v17 = vld [vmem:[#allocation2 + $0x18] sm:$0xff] }
  0x37   : > { %349 = vst.msk [vmem:[#allocation2 + $0x240] sm:$0xff] %vm276_vm2, %v4446_v6  ;;  %350 = vst.msk [vmem:[#allocation2 + $0x248] sm:$0xff] %vm276_vm2, %v4446_v6  ;;  %4051 = vmatprep.mubr.msk.bf16.mxu0 %vm996_vm3, %v4291_v23  ;;  %4115 = vmatprep.mubr.msk.bf16.mxu1 %vm996_vm3, %v4292_v24  ;;  %v406_v23 = vld [vmem:[#allocation2 + $0x8] sm:$0xff] }
  0x38   : > { %351 = vst.msk [vmem:[#allocation2 + $0x250] sm:$0xff] %vm276_vm2, %v4446_v6  ;;  %352 = vst.msk [vmem:[#allocation2 + $0x258] sm:$0xff] %vm276_vm2, %v4446_v6 }
  0x39   : > { %353 = vst.msk [vmem:[#allocation2 + $0x260] sm:$0xff] %vm276_vm2, %v4446_v6  ;;  %354 = vst.msk [vmem:[#allocation2 + $0x268] sm:$0xff] %vm276_vm2, %v4446_v6 }
  0x3a   : > { %355 = vst.msk [vmem:[#allocation2 + $0x270] sm:$0xff] %vm276_vm2, %v4446_v6  ;;  %356 = vst.msk [vmem:[#allocation2 + $0x278] sm:$0xff] %vm276_vm2, %v4446_v6  ;;  %v469_v12 = vld [vmem:[#allocation2 + $0x200] sm:$0xff]  ;;  %v470_v24 = vld [vmem:[#allocation2 + $0x208] sm:$0xff] }
  0x3b   : > { %357 = vst.msk [vmem:[#allocation2 + $0x280] sm:$0xff] %vm276_vm2, %v4446_v6  ;;  %358 = vst.msk [vmem:[#allocation2 + $0x288] sm:$0xff] %vm276_vm2, %v4446_v6  ;;  %v471_v8 = vld [vmem:[#allocation2 + $0x210] sm:$0xff]  ;;  %v472_v18 = vld [vmem:[#allocation2 + $0x218] sm:$0xff] }
  0x3c   : > { %359 = vst.msk [vmem:[#allocation2 + $0x290] sm:$0xff] %vm276_vm2, %v4446_v6  ;;  %360 = vst.msk [vmem:[#allocation2 + $0x298] sm:$0xff] %vm276_vm2, %v4446_v6 }
  0x3d   : > { %361 = vst.msk [vmem:[#allocation2 + $0x2a0] sm:$0xff] %vm276_vm2, %v4446_v6  ;;  %362 = vst.msk [vmem:[#allocation2 + $0x2a8] sm:$0xff] %vm276_vm2, %v4446_v6 }
  0x3e   : > { %363 = vst.msk [vmem:[#allocation2 + $0x2b0] sm:$0xff] %vm276_vm2, %v4446_v6  ;;  %364 = vst.msk [vmem:[#allocation2 + $0x2b8] sm:$0xff] %vm276_vm2, %v4446_v6  ;;  %4052 = vmatmul.mubr.msk.bf16.gmra.mxu0 %vm996_vm3, %v4293_v25  ;;  %4116 = vmatmul.mubr.msk.bf16.gmra.mxu1 %vm996_vm3, %v4294_v26 }
  0x3f   : > { %365 = vst.msk [vmem:[#allocation2 + $0x2c0] sm:$0xff] %vm276_vm2, %v4446_v6  ;;  %366 = vst.msk [vmem:[#allocation2 + $0x2c8] sm:$0xff] %vm276_vm2, %v4446_v6  ;;  %4055 = vmatprep.mubr.msk.bf16.mxu0 %vm996_vm3, %v4295_v27  ;;  %4119 = vmatprep.mubr.msk.bf16.mxu1 %vm996_vm3, %v4296_v28 }
  0x40   : > { %367 = vst.msk [vmem:[#allocation2 + $0x2d0] sm:$0xff] %vm276_vm2, %v4446_v6  ;;  %368 = vst.msk [vmem:[#allocation2 + $0x2d8] sm:$0xff] %vm276_vm2, %v4446_v6 }
  0x41   : > { %369 = vst.msk [vmem:[#allocation2 + $0x2e0] sm:$0xff] %vm276_vm2, %v4446_v6  ;;  %370 = vst.msk [vmem:[#allocation2 + $0x2e8] sm:$0xff] %vm276_vm2, %v4446_v6 }
  0x42   : > { %371 = vst.msk [vmem:[#allocation2 + $0x2f0] sm:$0xff] %vm276_vm2, %v4446_v6  ;;  %372 = vst.msk [vmem:[#allocation2 + $0x2f8] sm:$0xff] %vm276_vm2, %v4446_v6 }
  0x43   : > { %373 = vst.msk [vmem:[#allocation2 + $0x300] sm:$0xff] %vm276_vm2, %v4446_v6  ;;  %374 = vst.msk [vmem:[#allocation2 + $0x308] sm:$0xff] %vm276_vm2, %v4446_v6 }
  0x44   : > { %375 = vst.msk [vmem:[#allocation2 + $0x310] sm:$0xff] %vm276_vm2, %v4446_v6  ;;  %376 = vst.msk [vmem:[#allocation2 + $0x318] sm:$0xff] %vm276_vm2, %v4446_v6 }
  0x45   : > { %377 = vst.msk [vmem:[#allocation2 + $0x320] sm:$0xff] %vm276_vm2, %v4446_v6  ;;  %378 = vst.msk [vmem:[#allocation2 + $0x328] sm:$0xff] %vm276_vm2, %v4446_v6 }
  0x46   : > { %379 = vst.msk [vmem:[#allocation2 + $0x330] sm:$0xff] %vm276_vm2, %v4446_v6  ;;  %380 = vst.msk [vmem:[#allocation2 + $0x338] sm:$0xff] %vm276_vm2, %v4446_v6  ;;  %4056 = vmatmul.mubr.msk.bf16.gmra.mxu0 %vm996_vm3, %v4297_v29  ;;  %4120 = vmatmul.mubr.msk.bf16.gmra.mxu1 %vm996_vm3, %v4298_v30  ;;  %v411_v29 = vld [vmem:[#allocation2 + $0x30] sm:$0xff] }
  0x47   : > { %381 = vst.msk [vmem:[#allocation2 + $0x340] sm:$0xff] %vm276_vm2, %v4446_v6  ;;  %382 = vst.msk [vmem:[#allocation2 + $0x348] sm:$0xff] %vm276_vm2, %v4446_v6  ;;  %4059 = vmatprep.mubr.msk.bf16.mxu0 %vm996_vm3, %v4299_v31  ;;  %4123 = vmatprep.mubr.msk.bf16.mxu1 %vm996_vm3, %v4300_v32  ;;  %v475_v30 = vld [vmem:[#allocation2 + $0x230] sm:$0xff] }
  0x48   : > { %383 = vst.msk [vmem:[#allocation2 + $0x350] sm:$0xff] %vm276_vm2, %v4446_v6  ;;  %384 = vst.msk [vmem:[#allocation2 + $0x358] sm:$0xff] %vm276_vm2, %v4446_v6 }
  0x49   : > { %385 = vst.msk [vmem:[#allocation2 + $0x360] sm:$0xff] %vm276_vm2, %v4446_v6  ;;  %386 = vst.msk [vmem:[#allocation2 + $0x368] sm:$0xff] %vm276_vm2, %v4446_v6 }
  0x4a   : > { %387 = vst.msk [vmem:[#allocation2 + $0x370] sm:$0xff] %vm276_vm2, %v4446_v6  ;;  %388 = vst.msk [vmem:[#allocation2 + $0x378] sm:$0xff] %vm276_vm2, %v4446_v6 }
  0x4b   : > { %389 = vst.msk [vmem:[#allocation2 + $0x380] sm:$0xff] %vm276_vm2, %v4446_v6  ;;  %390 = vst.msk [vmem:[#allocation2 + $0x388] sm:$0xff] %vm276_vm2, %v4446_v6 }
  0x4c   : > { %391 = vst.msk [vmem:[#allocation2 + $0x390] sm:$0xff] %vm276_vm2, %v4446_v6  ;;  %392 = vst.msk [vmem:[#allocation2 + $0x398] sm:$0xff] %vm276_vm2, %v4446_v6 }
  0x4d   : > { %393 = vst.msk [vmem:[#allocation2 + $0x3a0] sm:$0xff] %vm276_vm2, %v4446_v6  ;;  %394 = vst.msk [vmem:[#allocation2 + $0x3a8] sm:$0xff] %vm276_vm2, %v4446_v6 }
  0x4e   : > { %395 = vst.msk [vmem:[#allocation2 + $0x3b0] sm:$0xff] %vm276_vm2, %v4446_v6  ;;  %396 = vst.msk [vmem:[#allocation2 + $0x3b8] sm:$0xff] %vm276_vm2, %v4446_v6  ;;  %4060 = vmatmul.mubr.msk.bf16.gmra.mxu0 %vm996_vm3, %v4301_v33  ;;  %4124 = vmatmul.mubr.msk.bf16.gmra.mxu1 %vm996_vm3, %v4302_v34  ;;  %v4931_v33 = vld [vmem:[%s5744_s2] ss:$0 sm:$0xff] }
  0x4f   : > { %397 = vst.msk [vmem:[#allocation2 + $0x3c0] sm:$0xff] %vm276_vm2, %v4446_v6  ;;  %398 = vst.msk [vmem:[#allocation2 + $0x3c8] sm:$0xff] %vm276_vm2, %v4446_v6  ;;  %4063 = vmatprep.mubr.msk.bf16.mxu0 %vm996_vm3, %v4303_v35  ;;  %4127 = vmatprep.mubr.msk.bf16.mxu1 %vm996_vm3, %v4304_v36  ;;  %v409_v36 = vld [vmem:[#allocation2 + $0x20] sm:$0xff] }
  0x50   : > { %399 = vst.msk [vmem:[#allocation2 + $0x3d0] sm:$0xff] %vm276_vm2, %v4446_v6  ;;  %400 = vst.msk [vmem:[#allocation2 + $0x3d8] sm:$0xff] %vm276_vm2, %v4446_v6 }
  0x51   : > { %401 = vst.msk [vmem:[#allocation2 + $0x3e0] sm:$0xff] %vm276_vm2, %v4446_v6  ;;  %402 = vst.msk [vmem:[#allocation2 + $0x3e8] sm:$0xff] %vm276_vm2, %v4446_v6 }
  0x52   : > { %403 = vst.msk [vmem:[#allocation2 + $0x3f0] sm:$0xff] %vm276_vm2, %v4446_v6  ;;  %404 = vst.msk [vmem:[#allocation2 + $0x3f8] sm:$0xff] %vm276_vm2, %v4446_v6  ;;  %v4338_v6 = vld [vmem:[%s4789_s5 + $0x1f8] sm:$0xff]  }
  0x56   : > { %4064 = vmatmul.mubr.msk.bf16.gmra.mxu0 %vm996_vm3, %v4305_v37  ;;  %4128 = vmatmul.mubr.msk.bf16.gmra.mxu1 %vm996_vm3, %v4306_v38  ;;  %v473_v37 = vld [vmem:[#allocation2 + $0x220] sm:$0xff] }
  0x57   : > { %4067 = vmatprep.mubr.msk.bf16.mxu0 %vm996_vm3, %v4307_v39  ;;  %4131 = vmatprep.mubr.msk.bf16.mxu1 %vm996_vm3, %v4308_v40 }
  0x5e   : > { %4068 = vmatmul.mubr.msk.bf16.gmra.mxu0 %vm996_vm3, %v4309_v41  ;;  %4132 = vmatmul.mubr.msk.bf16.gmra.mxu1 %vm996_vm3, %v4310_v42 }
  0x5f   : > { %4071 = vmatprep.mubr.msk.bf16.mxu0 %vm996_vm3, %v4311_v43  ;;  %4135 = vmatprep.mubr.msk.bf16.mxu1 %vm996_vm3, %v4312_v44 }
  0x66   : > { %4072 = vmatmul.mubr.msk.bf16.gmra.mxu0 %vm996_vm3, %v4313_v45  ;;  %4136 = vmatmul.mubr.msk.bf16.gmra.mxu1 %vm996_vm3, %v4314_v46 }
  0x67   : > { %4075 = vmatprep.mubr.msk.bf16.mxu0 %vm996_vm3, %v4315_v47  ;;  %4139 = vmatprep.mubr.msk.bf16.mxu1 %vm996_vm3, %v4316_v48  ;;  %v412_v48 = vld [vmem:[#allocation2 + $0x38] sm:$0xff] }
  0x6e   : > { %4076 = vmatmul.mubr.msk.bf16.gmra.mxu0 %vm996_vm3, %v4317_v49  ;;  %4140 = vmatmul.mubr.msk.bf16.gmra.mxu1 %vm996_vm3, %v4318_v50  ;;  %v476_v49 = vld [vmem:[#allocation2 + $0x238] sm:$0xff] }
  0x6f   : > { %4079 = vmatprep.mubr.msk.bf16.mxu0 %vm996_vm3, %v4319_v51  ;;  %4143 = vmatprep.mubr.msk.bf16.mxu1 %vm996_vm3, %v4320_v52 }
  0x76   : > { %4080 = vmatmul.mubr.msk.bf16.gmra.mxu0 %vm996_vm3, %v4321_v53  ;;  %4144 = vmatmul.mubr.msk.bf16.gmra.mxu1 %vm996_vm3, %v4322_v54 }
  0x77   : > { %4083 = vmatprep.mubr.msk.bf16.mxu0 %vm996_vm3, %v4323_v55  ;;  %4147 = vmatprep.mubr.msk.bf16.mxu1 %vm996_vm3, %v4324_v56 }
  0x7e   : > { %4084 = vmatmul.mubr.msk.bf16.gmra.mxu0 %vm996_vm3, %v4325_v57  ;;  %4148 = vmatmul.mubr.msk.bf16.gmra.mxu1 %vm996_vm3, %v4326_v58  ;;  %v410_v58 = vld [vmem:[#allocation2 + $0x28] sm:$0xff] }
  0x7f   : > { %4087 = vmatprep.mubr.msk.bf16.mxu0 %vm996_vm3, %v4327_v59  ;;  %4151 = vmatprep.mubr.msk.bf16.mxu1 %vm996_vm3, %v4328_v60  ;;  %v474_v59 = vld [vmem:[#allocation2 + $0x228] sm:$0xff] }
  0x86   : > { %4088 = vmatmul.mubr.msk.bf16.gmra.mxu0 %vm996_vm3, %v4329_v61  ;;  %4152 = vmatmul.mubr.msk.bf16.gmra.mxu1 %vm996_vm3, %v4330_v62 }
  0x87   : > { %4091 = vmatprep.mubr.msk.bf16.mxu0 %vm996_vm3, %v4331_v63  ;;  %4155 = vmatprep.mubr.msk.bf16.mxu1 %vm996_vm3, %v4332_v0 }
  0x8e   : > { %4092 = vmatmul.mubr.msk.bf16.gmra.mxu0 %vm996_vm3, %v4333_v1  ;;  %4156 = vmatmul.mubr.msk.bf16.gmra.mxu1 %vm996_vm3, %v4334_v2 }
  0x8f   : > { %4095 = vmatprep.mubr.msk.bf16.mxu0 %vm996_vm3, %v4335_v3  ;;  %4159 = vmatprep.mubr.msk.bf16.mxu1 %vm996_vm3, %v4336_v4 }
  0x96   : > { %4096 = vmatmul.mubr.msk.bf16.gmra.mxu0 %vm996_vm3, %v4337_v5  ;;  %4160 = vmatmul.mubr.msk.bf16.gmra.mxu1 %vm996_vm3, %v4338_v6  ;;  %v415_v6 = vld [vmem:[#allocation2 + $0x50] sm:$0xff] }
  0xde   : > { %v4037_v9 = vpop.f32.mrf.mxu0  ;;  %v4101_v10 = vpop.f32.mrf.mxu1 }
  0xdf   : > { %v1743_v13 = vadd.f32 %v4037_v9, %v407_v7  ;;  %v1807_v14 = vadd.f32 %v4101_v10, %v471_v8  ;;  %v479_v7 = vld [vmem:[#allocation2 + $0x250] sm:$0xff] }
  0xe0   : > { %v1230_v15 = vpop.f32.mrf.mxu0  ;;  %v1486_v16 = vpop.f32.mrf.mxu1 }
  0xe1   : > { %1872 = vst.msk [vmem:[#allocation2 + $0x10] sm:$0xff] %vm276_vm2, %v1743_v13  ;;  %1936 = vst.msk [vmem:[#allocation2 + $0x210] sm:$0xff] %vm276_vm2, %v1807_v14  ;;  %v1741_v19 = vadd.f32 %v1230_v15, %v405_v11  ;;  %v1805_v20 = vadd.f32 %v1486_v16, %v469_v12 }
  0xe2   : > { %v4038_v21 = vpop.f32.mrf.mxu0  ;;  %v4102_v22 = vpop.f32.mrf.mxu1 }
  0xe3   : > { %1870 = vst.msk [vmem:[#allocation2] sm:$0xff] %vm276_vm2, %v1741_v19  ;;  %1934 = vst.msk [vmem:[#allocation2 + $0x200] sm:$0xff] %vm276_vm2, %v1805_v20  ;;  %v1744_v25 = vadd.f32 %v4038_v21, %v408_v17  ;;  %v1808_v26 = vadd.f32 %v4102_v22, %v472_v18  ;;  %v413_v20 = vld [vmem:[#allocation2 + $0x40] sm:$0xff] }
  0xe4   : > { %v1233_v27 = vpop.f32.mrf.mxu0  ;;  %v1489_v28 = vpop.f32.mrf.mxu1  ;;  %v477_v21 = vld [vmem:[#allocation2 + $0x240] sm:$0xff] }
  0xe5   : > { %1873 = vst.msk [vmem:[#allocation2 + $0x18] sm:$0xff] %vm276_vm2, %v1744_v25  ;;  %1937 = vst.msk [vmem:[#allocation2 + $0x218] sm:$0xff] %vm276_vm2, %v1808_v26  ;;  %v1742_v31 = vadd.f32 %v1233_v27, %v406_v23  ;;  %v1806_v32 = vadd.f32 %v1489_v28, %v470_v24 }
  0xe6   : > { %v4041_v34 = vpop.f32.mrf.mxu0  ;;  %v4105_v35 = vpop.f32.mrf.mxu1 }
  0xe7   : > { %1871 = vst.msk [vmem:[#allocation2 + $0x8] sm:$0xff] %vm276_vm2, %v1742_v31  ;;  %1935 = vst.msk [vmem:[#allocation2 + $0x208] sm:$0xff] %vm276_vm2, %v1806_v32  ;;  %v1747_v38 = vadd.f32 %v4041_v34, %v411_v29  ;;  %v1811_v39 = vadd.f32 %v4105_v35, %v475_v30  ;;  %v416_v35 = vld [vmem:[#allocation2 + $0x58] sm:$0xff] }
  0xe8   : > { %v2003_v40 = vld [vmem:[#allocation2 + $0x10] sm:$0xff]  ;;  %v1246_v42 = vpop.f32.mrf.mxu0  ;;  %v1502_v43 = vpop.f32.mrf.mxu1 }
  0xe9   : > { %v2067_v41 = vld [vmem:[#allocation2 + $0x210] sm:$0xff]  ;;  %v2138_v44 = vadd.f32 %v4931_v33, %v2003_v40  ;;  %1876 = vst.msk [vmem:[#allocation2 + $0x30] sm:$0xff] %vm276_vm2, %v1747_v38  ;;  %1940 = vst.msk [vmem:[#allocation2 + $0x230] sm:$0xff] %vm276_vm2, %v1811_v39  ;;  %v1745_v46 = vadd.f32 %v1246_v42, %v409_v36  ;;  %v1809_v47 = vadd.f32 %v1502_v43, %v473_v37  ;;  %v480_v36 = vld [vmem:[#allocation2 + $0x258] sm:$0xff] }
  0xea   : > { %v2202_v45 = vadd.f32 %v4931_v33, %v2067_v41  ;;  %v2001_v50 = vld [vmem:[#allocation2] sm:$0xff]  ;;  %v4042_v52 = vpop.f32.mrf.mxu0  ;;  %v4106_v53 = vpop.f32.mrf.mxu1  ;;  %v414_v37 = vld [vmem:[#allocation2 + $0x48] sm:$0xff] }
  0xeb   : > { %v2065_v51 = vld [vmem:[#allocation2 + $0x200] sm:$0xff]  ;;  %v2266_v54 = vmax.f32 %v2138_v44, 0.0  ;;  %v2136_v56 = vadd.f32 %v4931_v33, %v2001_v50  ;;  %1874 = vst.msk [vmem:[#allocation2 + $0x20] sm:$0xff] %vm276_vm2, %v1745_v46  ;;  %1938 = vst.msk [vmem:[#allocation2 + $0x220] sm:$0xff] %vm276_vm2, %v1809_v47  ;;  %v1748_v62 = vadd.f32 %v4042_v52, %v412_v48  ;;  %v1812_v63 = vadd.f32 %v4106_v53, %v476_v49  ;;  %v478_v46 = vld [vmem:[#allocation2 + $0x248] sm:$0xff] }
  0xec   : > { %v2330_v55 = vmax.f32 %v2202_v45, 0.0  ;;  %v2200_v57 = vadd.f32 %v4931_v33, %v2065_v51  ;;  %v2004_v60 = vld [vmem:[#allocation2 + $0x18] sm:$0xff]  ;;  %v1249_v0 = vpop.f32.mrf.mxu0  ;;  %v1505_v1 = vpop.f32.mrf.mxu1 }
  0xed   : > { %v2068_v61 = vld [vmem:[#allocation2 + $0x218] sm:$0xff]  ;;  %v3836_v2 = vpack.c.bf16 %v2266_v54, %v2266_v54  ;;  %v2264_v4 = vmax.f32 %v2136_v56, 0.0  ;;  %v2139_v8 = vadd.f32 %v4931_v33, %v2004_v60  ;;  %1877 = vst.msk [vmem:[#allocation2 + $0x38] sm:$0xff] %vm276_vm2, %v1748_v62  ;;  %1941 = vst.msk [vmem:[#allocation2 + $0x238] sm:$0xff] %vm276_vm2, %v1812_v63  ;;  %v1746_v12 = vadd.f32 %v1249_v0, %v410_v58  ;;  %v483_v58 = vld [vmem:[#allocation2 + $0x270] sm:$0xff] }
  0xee   : > { %v3900_v3 = vpack.c.bf16 %v2330_v55, %v2330_v55  ;;  %v2328_v5 = vmax.f32 %v2200_v57, 0.0  ;;  %v2203_v9 = vadd.f32 %v4931_v33, %v2068_v61  ;;  %v2002_v10 = vld [vmem:[#allocation2 + $0x8] sm:$0xff]  ;;  %v1810_v13 = vadd.f32 %v1505_v1, %v474_v59  ;;  %v4045_v14 = vpop.f32.mrf.mxu0  ;;  %v4109_v15 = vpop.f32.mrf.mxu1  ;;  %v419_v57 = vld [vmem:[#allocation2 + $0x70] sm:$0xff] }
  0xef   : > { %v2066_v11 = vld [vmem:[#allocation2 + $0x208] sm:$0xff]  ;;  %2907 = vst.msk [vmem:[%s4950_s10 + $0x8] sm:$0xf] %vm2904_vm4, %v3836_v2  ;;  %v3834_v16 = vpack.c.bf16 %v2264_v4, %v2264_v4  ;;  %v2137_v18 = vadd.f32 %v4931_v33, %v2002_v10  ;;  %v2267_v22 = vmax.f32 %v2139_v8, 0.0  ;;  %v1751_v26 = vadd.f32 %v4045_v14, %v415_v6  ;;  %v481_v8 = vld [vmem:[#allocation2 + $0x260] sm:$0xff] }
  0xf0   : > { %2971 = vst.msk [vmem:[%s4950_s10 + $0x108] sm:$0xf] %vm2904_vm4, %v3900_v3  ;;  %v3898_v17 = vpack.c.bf16 %v2328_v5, %v2328_v5  ;;  %v2201_v19 = vadd.f32 %v4931_v33, %v2066_v11  ;;  %v2331_v23 = vmax.f32 %v2203_v9, 0.0  ;;  %v2007_v24 = vld [vmem:[#allocation2 + $0x30] sm:$0xff]  ;;  %v1815_v27 = vadd.f32 %v4109_v15, %v479_v7  ;;  %v1262_v28 = vpop.f32.mrf.mxu0  ;;  %v1518_v29 = vpop.f32.mrf.mxu1  ;;  %v417_v7 = vld [vmem:[#allocation2 + $0x60] sm:$0xff] }
  0xf1   : > { %v2071_v25 = vld [vmem:[#allocation2 + $0x230] sm:$0xff]  ;;  %1875 = vst.msk [vmem:[#allocation2 + $0x28] sm:$0xff] %vm276_vm2, %v1746_v12  ;;  %1939 = vst.msk [vmem:[#allocation2 + $0x228] sm:$0xff] %vm276_vm2, %v1810_v13  ;;  %v2265_v30 = vmax.f32 %v2137_v18, 0.0  ;;  %v2142_v32 = vadd.f32 %v4931_v33, %v2007_v24  ;;  %v3837_v38 = vpack.c.bf16 %v2267_v22, %v2267_v22  ;;  %v1749_v42 = vadd.f32 %v1262_v28, %v413_v20  ;;  %v484_v20 = vld [vmem:[#allocation2 + $0x278] sm:$0xff] }
  0xf2   : > { %2905 = vst.msk [vmem:[%s4950_s10] sm:$0xf] %vm2904_vm4, %v3834_v16  ;;  %2969 = vst.msk [vmem:[%s4950_s10 + $0x100] sm:$0xf] %vm2904_vm4, %v3898_v17  ;;  %v2329_v31 = vmax.f32 %v2201_v19, 0.0  ;;  %v2206_v34 = vadd.f32 %v4931_v33, %v2071_v25  ;;  %v3901_v39 = vpack.c.bf16 %v2331_v23, %v2331_v23  ;;  %v2005_v40 = vld [vmem:[#allocation2 + $0x20] sm:$0xff]  ;;  %v1813_v43 = vadd.f32 %v1518_v29, %v477_v21  ;;  %v4046_v44 = vpop.f32.mrf.mxu0  ;;  %v4110_v45 = vpop.f32.mrf.mxu1 }
  0xf3   : > { %v2069_v41 = vld [vmem:[#allocation2 + $0x220] sm:$0xff]  ;;  %1880 = vst.msk [vmem:[#allocation2 + $0x50] sm:$0xff] %vm276_vm2, %v1751_v26  ;;  %1944 = vst.msk [vmem:[#allocation2 + $0x250] sm:$0xff] %vm276_vm2, %v1815_v27  ;;  %v3835_v47 = vpack.c.bf16 %v2265_v30, %v2265_v30  ;;  %v2270_v49 = vmax.f32 %v2142_v32, 0.0  ;;  %v2140_v51 = vadd.f32 %v4931_v33, %v2005_v40  ;;  %v1752_v53 = vadd.f32 %v4046_v44, %v416_v35  ;;  %v420_v19 = vld [vmem:[#allocation2 + $0x78] sm:$0xff] }
  0xf4   : > { %v3899_v48 = vpack.c.bf16 %v2329_v31, %v2329_v31  ;;  %v2334_v50 = vmax.f32 %v2206_v34, 0.0  ;;  %2908 = vst.msk [vmem:[%s4950_s10 + $0xc] sm:$0xf] %vm2904_vm4, %v3837_v38  ;;  %2972 = vst.msk [vmem:[%s4950_s10 + $0x10c] sm:$0xf] %vm2904_vm4, %v3901_v39  ;;  %v2204_v52 = vadd.f32 %v4931_v33, %v2069_v41  ;;  %v1816_v54 = vadd.f32 %v4110_v45, %v480_v36  ;;  %v1265_v55 = vpop.f32.mrf.mxu0  ;;  %v1521_v56 = vpop.f32.mrf.mxu1  ;;  %v2008_v61 = vld [vmem:[#allocation2 + $0x38] sm:$0xff] }
  0xf5   : > { %1878 = vst.msk [vmem:[#allocation2 + $0x40] sm:$0xff] %vm276_vm2, %v1749_v42  ;;  %1942 = vst.msk [vmem:[#allocation2 + $0x240] sm:$0xff] %vm276_vm2, %v1813_v43  ;;  %v3840_v59 = vpack.c.bf16 %v2270_v49, %v2270_v49  ;;  %v2072_v62 = vld [vmem:[#allocation2 + $0x238] sm:$0xff]  ;;  %v1750_v63 = vadd.f32 %v1265_v55, %v414_v37  ;;  %v1814_v0 = vadd.f32 %v1521_v56, %v478_v46  ;;  %v2268_v1 = vmax.f32 %v2140_v51, 0.0  ;;  %v418_v34 = vld [vmem:[#allocation2 + $0x68] sm:$0xff] }
  0xf6   : > { %2906 = vst.msk [vmem:[%s4950_s10 + $0x4] sm:$0xf] %vm2904_vm4, %v3835_v47  ;;  %2970 = vst.msk [vmem:[%s4950_s10 + $0x104] sm:$0xf] %vm2904_vm4, %v3899_v48  ;;  %v3904_v60 = vpack.c.bf16 %v2334_v50, %v2334_v50  ;;  %v2332_v2 = vmax.f32 %v2204_v52, 0.0  ;;  %v2143_v3 = vadd.f32 %v4931_v33, %v2008_v61  ;;  %v2207_v4 = vadd.f32 %v4931_v33, %v2072_v62  ;;  %v4049_v5 = vpop.f32.mrf.mxu0  ;;  %v4113_v6 = vpop.f32.mrf.mxu1  ;;  %v482_v35 = vld [vmem:[#allocation2 + $0x268] sm:$0xff] }
  0xf7   : > { %1881 = vst.msk [vmem:[#allocation2 + $0x58] sm:$0xff] %vm276_vm2, %v1752_v53  ;;  %1945 = vst.msk [vmem:[#allocation2 + $0x258] sm:$0xff] %vm276_vm2, %v1816_v54  ;;  %v1755_v11 = vadd.f32 %v4049_v5, %v419_v57  ;;  %v1819_v12 = vadd.f32 %v4113_v6, %v483_v58  ;;  %v3838_v13 = vpack.c.bf16 %v2268_v1, %v2268_v1  ;;  %v423_v48 = vld [vmem:[#allocation2 + $0x90] sm:$0xff]  ;;  %v485_v5 = vld [vmem:[#allocation2 + $0x280] sm:$0xff] }
  0xf8   : > { %2911 = vst.msk [vmem:[%s4950_s10 + $0x18] sm:$0xf] %vm2904_vm4, %v3840_v59  ;;  %2975 = vst.msk [vmem:[%s4950_s10 + $0x118] sm:$0xf] %vm2904_vm4, %v3904_v60  ;;  %v2006_v9 = vld [vmem:[#allocation2 + $0x28] sm:$0xff]  ;;  %v3902_v14 = vpack.c.bf16 %v2332_v2, %v2332_v2  ;;  %v2271_v15 = vmax.f32 %v2143_v3, 0.0  ;;  %v1278_v17 = vpop.f32.mrf.mxu0  ;;  %v1534_v18 = vpop.f32.mrf.mxu1 }
  0xf9   : > { %v2070_v10 = vld [vmem:[#allocation2 + $0x228] sm:$0xff]  ;;  %1879 = vst.msk [vmem:[#allocation2 + $0x48] sm:$0xff] %vm276_vm2, %v1750_v63  ;;  %1943 = vst.msk [vmem:[#allocation2 + $0x248] sm:$0xff] %vm276_vm2, %v1814_v0  ;;  %v2335_v16 = vmax.f32 %v2207_v4, 0.0  ;;  %v2141_v21 = vadd.f32 %v4931_v33, %v2006_v9  ;;  %v1753_v25 = vadd.f32 %v1278_v17, %v417_v7  ;;  %v1817_v26 = vadd.f32 %v1534_v18, %v481_v8  ;;  %v487_v55 = vld [vmem:[#allocation2 + $0x290] sm:$0xff] }
  0xfa   : > { %v2205_v22 = vadd.f32 %v4931_v33, %v2070_v10  ;;  %v2011_v23 = vld [vmem:[#allocation2 + $0x50] sm:$0xff]  ;;  %1884 = vst.msk [vmem:[#allocation2 + $0x70] sm:$0xff] %vm276_vm2, %v1755_v11  ;;  %1948 = vst.msk [vmem:[#allocation2 + $0x270] sm:$0xff] %vm276_vm2, %v1819_v12  ;;  %v3841_v27 = vpack.c.bf16 %v2271_v15, %v2271_v15  ;;  %v4050_v31 = vpop.f32.mrf.mxu0  ;;  %v4114_v32 = vpop.f32.mrf.mxu1  ;;  %v421_v4 = vld [vmem:[#allocation2 + $0x80] sm:$0xff] }
  0xfb   : > { %v2075_v24 = vld [vmem:[#allocation2 + $0x250] sm:$0xff]  ;;  %2909 = vst.msk [vmem:[%s4950_s10 + $0x10] sm:$0xf] %vm2904_vm4, %v3838_v13  ;;  %2973 = vst.msk [vmem:[%s4950_s10 + $0x110] sm:$0xf] %vm2904_vm4, %v3902_v14  ;;  %v3905_v28 = vpack.c.bf16 %v2335_v16, %v2335_v16  ;;  %v2146_v29 = vadd.f32 %v4931_v33, %v2011_v23  ;;  %v2269_v36 = vmax.f32 %v2141_v21, 0.0  ;;  %v1756_v40 = vadd.f32 %v4050_v31, %v420_v19 }
  0xfc   : > { %v2210_v30 = vadd.f32 %v4931_v33, %v2075_v24  ;;  %v2333_v37 = vmax.f32 %v2205_v22, 0.0  ;;  %v2009_v38 = vld [vmem:[#allocation2 + $0x40] sm:$0xff]  ;;  %1882 = vst.msk [vmem:[#allocation2 + $0x60] sm:$0xff] %vm276_vm2, %v1753_v25  ;;  %1946 = vst.msk [vmem:[#allocation2 + $0x260] sm:$0xff] %vm276_vm2, %v1817_v26  ;;  %v1820_v41 = vadd.f32 %v4114_v32, %v484_v20  ;;  %v1281_v46 = vpop.f32.mrf.mxu0  ;;  %v1537_v47 = vpop.f32.mrf.mxu1  ;;  %v424_v18 = vld [vmem:[#allocation2 + $0x98] sm:$0xff] }
  0xfd   : > { %v2073_v39 = vld [vmem:[#allocation2 + $0x240] sm:$0xff]  ;;  %2912 = vst.msk [vmem:[%s4950_s10 + $0x1c] sm:$0xf] %vm2904_vm4, %v3841_v27  ;;  %2976 = vst.msk [vmem:[%s4950_s10 + $0x11c] sm:$0xf] %vm2904_vm4, %v3905_v28  ;;  %v2274_v42 = vmax.f32 %v2146_v29, 0.0  ;;  %v2144_v44 = vadd.f32 %v4931_v33, %v2009_v38  ;;  %v3839_v49 = vpack.c.bf16 %v2269_v36, %v2269_v36  ;;  %v1754_v53 = vadd.f32 %v1281_v46, %v418_v34 }
  0xfe   : > { %v2338_v43 = vmax.f32 %v2210_v30, 0.0  ;;  %v2208_v45 = vadd.f32 %v4931_v33, %v2073_v39  ;;  %v3903_v50 = vpack.c.bf16 %v2333_v37, %v2333_v37  ;;  %v2012_v51 = vld [vmem:[#allocation2 + $0x58] sm:$0xff]  ;;  %1885 = vst.msk [vmem:[#allocation2 + $0x78] sm:$0xff] %vm276_vm2, %v1756_v40  ;;  %1949 = vst.msk [vmem:[#allocation2 + $0x278] sm:$0xff] %vm276_vm2, %v1820_v41  ;;  %v1818_v54 = vadd.f32 %v1537_v47, %v482_v35  ;;  %v4053_v62 = vpop.f32.mrf.mxu0  ;;  %v4117_v63 = vpop.f32.mrf.mxu1  ;;  %v486_v46 = vld [vmem:[#allocation2 + $0x288] sm:$0xff] }
  0xff   : > { %v2076_v52 = vld [vmem:[#allocation2 + $0x258] sm:$0xff]  ;;  %v3844_v56 = vpack.c.bf16 %v2274_v42, %v2274_v42  ;;  %v2272_v58 = vmax.f32 %v2144_v44, 0.0  ;;  %2910 = vst.msk [vmem:[%s4950_s10 + $0x14] sm:$0xf] %vm2904_vm4, %v3839_v49  ;;  %v2147_v0 = vadd.f32 %v4931_v33, %v2012_v51  ;;  %v1759_v10 = vadd.f32 %v4053_v62, %v423_v48 }
 0x100   : > { %v3908_v57 = vpack.c.bf16 %v2338_v43, %v2338_v43  ;;  %v2336_v59 = vmax.f32 %v2208_v45, 0.0  ;;  %v2010_v60 = vld [vmem:[#allocation2 + $0x48] sm:$0xff]  ;;  %2974 = vst.msk [vmem:[%s4950_s10 + $0x114] sm:$0xf] %vm2904_vm4, %v3903_v50  ;;  %v2211_v1 = vadd.f32 %v4931_v33, %v2076_v52  ;;  %v1823_v11 = vadd.f32 %v4117_v63, %v487_v55  ;;  %v1294_v12 = vpop.f32.mrf.mxu0  ;;  %v1550_v13 = vpop.f32.mrf.mxu1  ;;  %v488_v26 = vld [vmem:[#allocation2 + $0x298] sm:$0xff] }
 0x101   : > { %v2074_v61 = vld [vmem:[#allocation2 + $0x248] sm:$0xff]  ;;  %v2145_v2 = vadd.f32 %v4931_v33, %v2010_v60  ;;  %1883 = vst.msk [vmem:[#allocation2 + $0x68] sm:$0xff] %vm276_vm2, %v1754_v53  ;;  %1947 = vst.msk [vmem:[#allocation2 + $0x268] sm:$0xff] %vm276_vm2, %v1818_v54  ;;  %v3842_v6 = vpack.c.bf16 %v2272_v58, %v2272_v58  ;;  %v2015_v8 = vld [vmem:[#allocation2 + $0x70] sm:$0xff]  ;;  %v2275_v14 = vmax.f32 %v2147_v0, 0.0  ;;  %v1757_v23 = vadd.f32 %v1294_v12, %v421_v4 }
 0x102   : > { %v2209_v3 = vadd.f32 %v4931_v33, %v2074_v61  ;;  %2915 = vst.msk [vmem:[%s4950_s10 + $0x28] sm:$0xf] %vm2904_vm4, %v3844_v56  ;;  %2979 = vst.msk [vmem:[%s4950_s10 + $0x128] sm:$0xf] %vm2904_vm4, %v3908_v57  ;;  %v3906_v7 = vpack.c.bf16 %v2336_v59, %v2336_v59  ;;  %v2079_v9 = vld [vmem:[#allocation2 + $0x270] sm:$0xff]  ;;  %v2339_v15 = vmax.f32 %v2211_v1, 0.0  ;;  %v2150_v19 = vadd.f32 %v4931_v33, %v2015_v8  ;;  %v4054_v25 = vpop.f32.mrf.mxu0  ;;  %v4118_v27 = vpop.f32.mrf.mxu1 }
 0x103   : > { %v2273_v16 = vmax.f32 %v2145_v2, 0.0  ;;  %2913 = vst.msk [vmem:[%s4950_s10 + $0x20] sm:$0xf] %vm2904_vm4, %v3842_v6  ;;  %v2214_v20 = vadd.f32 %v4931_v33, %v2079_v9  ;;  %v2013_v21 = vld [vmem:[#allocation2 + $0x60] sm:$0xff]  ;;  %v1821_v24 = vadd.f32 %v1550_v13, %v485_v5  ;;  %v3845_v28 = vpack.c.bf16 %v2275_v14, %v2275_v14  ;;  %v422_v45 = vld [vmem:[#allocation2 + $0x88] sm:$0xff]  ;;  %v427_v59 = vld [vmem:[#allocation2 + $0xb0] sm:$0xff] }
 0x104   : > { %v2337_v17 = vmax.f32 %v2209_v3, 0.0  ;;  %2977 = vst.msk [vmem:[%s4950_s10 + $0x120] sm:$0xf] %vm2904_vm4, %v3906_v7  ;;  %v2077_v22 = vld [vmem:[#allocation2 + $0x260] sm:$0xff]  ;;  %v3909_v29 = vpack.c.bf16 %v2339_v15, %v2339_v15  ;;  %v2278_v32 = vmax.f32 %v2150_v19, 0.0  ;;  %v2148_v35 = vadd.f32 %v4931_v33, %v2013_v21  ;;  %v1297_v39 = vpop.f32.mrf.mxu0  ;;  %v1553_v40 = vpop.f32.mrf.mxu1  ;;  %v491_v60 = vld [vmem:[#allocation2 + $0x2b0] sm:$0xff] }
 0x105   : > { %1888 = vst.msk [vmem:[#allocation2 + $0x90] sm:$0xff] %vm276_vm2, %v1759_v10  ;;  %1952 = vst.msk [vmem:[#allocation2 + $0x290] sm:$0xff] %vm276_vm2, %v1823_v11  ;;  %v3843_v30 = vpack.c.bf16 %v2273_v16, %v2273_v16  ;;  %v2342_v34 = vmax.f32 %v2214_v20, 0.0  ;;  %v2212_v36 = vadd.f32 %v4931_v33, %v2077_v22  ;;  %v2016_v37 = vld [vmem:[#allocation2 + $0x78] sm:$0xff]  ;;  %v1760_v43 = vadd.f32 %v4054_v25, %v424_v18  ;;  %v425_v1 = vld [vmem:[#allocation2 + $0xa0] sm:$0xff] }
 0x106   : > { %v3907_v31 = vpack.c.bf16 %v2337_v17, %v2337_v17  ;;  %v2080_v38 = vld [vmem:[#allocation2 + $0x278] sm:$0xff]  ;;  %1886 = vst.msk [vmem:[#allocation2 + $0x80] sm:$0xff] %vm276_vm2, %v1757_v23  ;;  %1950 = vst.msk [vmem:[#allocation2 + $0x280] sm:$0xff] %vm276_vm2, %v1821_v24  ;;  %v2151_v41 = vadd.f32 %v4931_v33, %v2016_v37  ;;  %v1824_v44 = vadd.f32 %v4118_v27, %v488_v26  ;;  %v2276_v49 = vmax.f32 %v2148_v35, 0.0  ;;  %v4057_v53 = vpop.f32.mrf.mxu0  ;;  %v4121_v54 = vpop.f32.mrf.mxu1  ;;  %v489_v3 = vld [vmem:[#allocation2 + $0x2a0] sm:$0xff] }
 0x107   : > { %2916 = vst.msk [vmem:[%s4950_s10 + $0x2c] sm:$0xf] %vm2904_vm4, %v3845_v28  ;;  %2980 = vst.msk [vmem:[%s4950_s10 + $0x12c] sm:$0xf] %vm2904_vm4, %v3909_v29  ;;  %v2215_v42 = vadd.f32 %v4931_v33, %v2080_v38  ;;  %v3848_v47 = vpack.c.bf16 %v2278_v32, %v2278_v32  ;;  %v3912_v48 = vpack.c.bf16 %v2342_v34, %v2342_v34  ;;  %v2340_v50 = vmax.f32 %v2212_v36, 0.0  ;;  %v428_v11 = vld [vmem:[#allocation2 + $0xb8] sm:$0xff] }
 0x108   : > { %2914 = vst.msk [vmem:[%s4950_s10 + $0x24] sm:$0xf] %vm2904_vm4, %v3843_v30  ;;  %2978 = vst.msk [vmem:[%s4950_s10 + $0x124] sm:$0xf] %vm2904_vm4, %v3907_v31  ;;  %v2014_v51 = vld [vmem:[#allocation2 + $0x68] sm:$0xff]  ;;  %v2279_v55 = vmax.f32 %v2151_v41, 0.0  ;;  %v3846_v61 = vpack.c.bf16 %v2276_v49, %v2276_v49  ;;  %v1758_v63 = vadd.f32 %v1297_v39, %v422_v45  ;;  %v1822_v0 = vadd.f32 %v1553_v40, %v486_v46  ;;  %v1310_v2 = vpop.f32.mrf.mxu0  ;;  %v1566_v4 = vpop.f32.mrf.mxu1 }
 0x109   : > { %v2078_v52 = vld [vmem:[#allocation2 + $0x268] sm:$0xff]  ;;  %v2343_v56 = vmax.f32 %v2215_v42, 0.0  ;;  %v2149_v57 = vadd.f32 %v4931_v33, %v2014_v51  ;;  %1889 = vst.msk [vmem:[#allocation2 + $0x98] sm:$0xff] %vm276_vm2, %v1760_v43  ;;  %1953 = vst.msk [vmem:[#allocation2 + $0x298] sm:$0xff] %vm276_vm2, %v1824_v44  ;;  %v3910_v62 = vpack.c.bf16 %v2340_v50, %v2340_v50  ;;  %v1763_v14 = vadd.f32 %v4057_v53, %v427_v59  ;;  %v492_v17 = vld [vmem:[#allocation2 + $0x2b8] sm:$0xff] }
 0x10a   : > { %v2213_v58 = vadd.f32 %v4931_v33, %v2078_v52  ;;  %2919 = vst.msk [vmem:[%s4950_s10 + $0x38] sm:$0xf] %vm2904_vm4, %v3848_v47  ;;  %2983 = vst.msk [vmem:[%s4950_s10 + $0x138] sm:$0xf] %vm2904_vm4, %v3912_v48  ;;  %v3849_v5 = vpack.c.bf16 %v2279_v55, %v2279_v55  ;;  %v1827_v15 = vadd.f32 %v4121_v54, %v491_v60  ;;  %v4058_v16 = vpop.f32.mrf.mxu0  ;;  %v4122_v18 = vpop.f32.mrf.mxu1  ;;  %v426_v19 = vld [vmem:[#allocation2 + $0xa8] sm:$0xff]  ;;  %v431_v34 = vld [vmem:[#allocation2 + $0xd0] sm:$0xff] }
 0x10b   : > { %v3913_v6 = vpack.c.bf16 %v2343_v56, %v2343_v56  ;;  %v2277_v7 = vmax.f32 %v2149_v57, 0.0  ;;  %2917 = vst.msk [vmem:[%s4950_s10 + $0x30] sm:$0xf] %vm2904_vm4, %v3846_v61  ;;  %2981 = vst.msk [vmem:[%s4950_s10 + $0x130] sm:$0xf] %vm2904_vm4, %v3910_v62  ;;  %v490_v20 = vld [vmem:[#allocation2 + $0x2a8] sm:$0xff]  ;;  %v1761_v25 = vadd.f32 %v1310_v2, %v425_v1  ;;  %v1825_v26 = vadd.f32 %v1566_v4, %v489_v3 }
 0x10c   : > { %v2341_v8 = vmax.f32 %v2213_v58, 0.0  ;;  %v2019_v9 = vld [vmem:[#allocation2 + $0x90] sm:$0xff]  ;;  %1887 = vst.msk [vmem:[#allocation2 + $0x88] sm:$0xff] %vm276_vm2, %v1758_v63  ;;  %1951 = vst.msk [vmem:[#allocation2 + $0x288] sm:$0xff] %vm276_vm2, %v1822_v0  ;;  %v1313_v31 = vpop.f32.mrf.mxu0  ;;  %v1569_v32 = vpop.f32.mrf.mxu1  ;;  %v1764_v36 = vadd.f32 %v4058_v16, %v428_v11  ;;  %v1828_v37 = vadd.f32 %v4122_v18, %v492_v17  ;;  %v429_v40 = vld [vmem:[#allocation2 + $0xc0] sm:$0xff] }
 0x10d   : > { %v2083_v10 = vld [vmem:[#allocation2 + $0x290] sm:$0xff]  ;;  %v2154_v12 = vadd.f32 %v4931_v33, %v2019_v9  ;;  %2920 = vst.msk [vmem:[%s4950_s10 + $0x3c] sm:$0xf] %vm2904_vm4, %v3849_v5  ;;  %2984 = vst.msk [vmem:[%s4950_s10 + $0x13c] sm:$0xf] %vm2904_vm4, %v3913_v6  ;;  %v3847_v21 = vpack.c.bf16 %v2277_v7, %v2277_v7  ;;  %v2017_v23 = vld [vmem:[#allocation2 + $0x80] sm:$0xff]  ;;  %v1762_v38 = vadd.f32 %v1313_v31, %v426_v19 }
 0x10e   : > { %v2218_v13 = vadd.f32 %v4931_v33, %v2083_v10  ;;  %v3911_v22 = vpack.c.bf16 %v2341_v8, %v2341_v8  ;;  %v2081_v24 = vld [vmem:[#allocation2 + $0x280] sm:$0xff]  ;;  %v2152_v29 = vadd.f32 %v4931_v33, %v2017_v23  ;;  %1892 = vst.msk [vmem:[#allocation2 + $0xb0] sm:$0xff] %vm276_vm2, %v1763_v14  ;;  %1956 = vst.msk [vmem:[#allocation2 + $0x2b0] sm:$0xff] %vm276_vm2, %v1827_v15  ;;  %v495_v35 = vld [vmem:[#allocation2 + $0x2d0] sm:$0xff]  ;;  %v4061_v47 = vpop.f32.mrf.mxu0  ;;  %v4125_v48 = vpop.f32.mrf.mxu1 }
 0x10f   : > { %v2282_v27 = vmax.f32 %v2154_v12, 0.0  ;;  %v2216_v30 = vadd.f32 %v4931_v33, %v2081_v24  ;;  %2918 = vst.msk [vmem:[%s4950_s10 + $0x34] sm:$0xf] %vm2904_vm4, %v3847_v21  ;;  %v1826_v39 = vadd.f32 %v1569_v32, %v490_v20  ;;  %v493_v49 = vld [vmem:[#allocation2 + $0x2c0] sm:$0xff]  ;;  %v1767_v52 = vadd.f32 %v4061_v47, %v431_v34  ;;  %v432_v58 = vld [vmem:[#allocation2 + $0xd8] sm:$0xff]  ;;  %v430_v6 = vld [vmem:[#allocation2 + $0xc8] sm:$0xff] }
 0x110   : > { %v2346_v28 = vmax.f32 %v2218_v13, 0.0  ;;  %2982 = vst.msk [vmem:[%s4950_s10 + $0x134] sm:$0xf] %vm2904_vm4, %v3911_v22  ;;  %v2280_v43 = vmax.f32 %v2152_v29, 0.0  ;;  %v2020_v45 = vld [vmem:[#allocation2 + $0x98] sm:$0xff]  ;;  %v1831_v53 = vadd.f32 %v4125_v48, %v495_v35  ;;  %v1326_v56 = vpop.f32.mrf.mxu0  ;;  %v1582_v57 = vpop.f32.mrf.mxu1  ;;  %v494_v7 = vld [vmem:[#allocation2 + $0x2c8] sm:$0xff] }
 0x111   : > { %1890 = vst.msk [vmem:[#allocation2 + $0xa0] sm:$0xff] %vm276_vm2, %v1761_v25  ;;  %1954 = vst.msk [vmem:[#allocation2 + $0x2a0] sm:$0xff] %vm276_vm2, %v1825_v26  ;;  %v3852_v41 = vpack.c.bf16 %v2282_v27, %v2282_v27  ;;  %v2344_v44 = vmax.f32 %v2216_v30, 0.0  ;;  %v2084_v46 = vld [vmem:[#allocation2 + $0x298] sm:$0xff]  ;;  %v2155_v50 = vadd.f32 %v4931_v33, %v2020_v45  ;;  %v1765_v0 = vadd.f32 %v1326_v56, %v429_v40 }
 0x112   : > { %v3916_v42 = vpack.c.bf16 %v2346_v28, %v2346_v28  ;;  %v2219_v51 = vadd.f32 %v4931_v33, %v2084_v46  ;;  %1893 = vst.msk [vmem:[#allocation2 + $0xb8] sm:$0xff] %vm276_vm2, %v1764_v36  ;;  %1957 = vst.msk [vmem:[#allocation2 + $0x2b8] sm:$0xff] %vm276_vm2, %v1828_v37  ;;  %v3850_v54 = vpack.c.bf16 %v2280_v43, %v2280_v43  ;;  %v496_v59 = vld [vmem:[#allocation2 + $0x2d8] sm:$0xff]  ;;  %v4062_v4 = vpop.f32.mrf.mxu0  ;;  %v4126_v5 = vpop.f32.mrf.mxu1 }
 0x113   : > { %1891 = vst.msk [vmem:[#allocation2 + $0xa8] sm:$0xff] %vm276_vm2, %v1762_v38  ;;  %1955 = vst.msk [vmem:[#allocation2 + $0x2a8] sm:$0xff] %vm276_vm2, %v1826_v39  ;;  %v3914_v55 = vpack.c.bf16 %v2344_v44, %v2344_v44  ;;  %v2283_v60 = vmax.f32 %v2155_v50, 0.0  ;;  %v2018_v62 = vld [vmem:[#allocation2 + $0x88] sm:$0xff]  ;;  %v1829_v1 = vadd.f32 %v1582_v57, %v493_v49  ;;  %v1768_v12 = vadd.f32 %v4062_v4, %v432_v58 }
 0x114   : > { %2923 = vst.msk [vmem:[%s4950_s10 + $0x48] sm:$0xf] %vm2904_vm4, %v3852_v41  ;;  %2987 = vst.msk [vmem:[%s4950_s10 + $0x148] sm:$0xf] %vm2904_vm4, %v3916_v42  ;;  %v2347_v61 = vmax.f32 %v2219_v51, 0.0  ;;  %v2082_v63 = vld [vmem:[#allocation2 + $0x288] sm:$0xff]  ;;  %v2153_v2 = vadd.f32 %v4931_v33, %v2018_v62  ;;  %v1832_v13 = vadd.f32 %v4126_v5, %v496_v59  ;;  %v1329_v20 = vpop.f32.mrf.mxu0  ;;  %v1585_v21 = vpop.f32.mrf.mxu1 }
 0x115   : > { %1896 = vst.msk [vmem:[#allocation2 + $0xd0] sm:$0xff] %vm276_vm2, %v1767_v52  ;;  %1960 = vst.msk [vmem:[#allocation2 + $0x2d0] sm:$0xff] %vm276_vm2, %v1831_v53  ;;  %v2217_v3 = vadd.f32 %v4931_v33, %v2082_v63  ;;  %v3853_v8 = vpack.c.bf16 %v2283_v60, %v2283_v60  ;;  %v2023_v10 = vld [vmem:[#allocation2 + $0xb0] sm:$0xff]  ;;  %v1766_v24 = vadd.f32 %v1329_v20, %v430_v6 }
 0x116   : > { %2921 = vst.msk [vmem:[%s4950_s10 + $0x40] sm:$0xf] %vm2904_vm4, %v3850_v54  ;;  %2985 = vst.msk [vmem:[%s4950_s10 + $0x140] sm:$0xf] %vm2904_vm4, %v3914_v55  ;;  %v3917_v9 = vpack.c.bf16 %v2347_v61, %v2347_v61  ;;  %v2087_v11 = vld [vmem:[#allocation2 + $0x2b0] sm:$0xff]  ;;  %v2281_v14 = vmax.f32 %v2153_v2, 0.0  ;;  %v2158_v16 = vadd.f32 %v4931_v33, %v2023_v10  ;;  %v1830_v25 = vadd.f32 %v1585_v21, %v494_v7  ;;  %v5106_v34 = vpop.f32.mrf.mxu0  ;;  %v5108_v35 = vpop.f32.mrf.mxu1 }
 0x117   : > { %1894 = vst.msk [vmem:[#allocation2 + $0xc0] sm:$0xff] %vm276_vm2, %v1765_v0  ;;  %1958 = vst.msk [vmem:[#allocation2 + $0x2c0] sm:$0xff] %vm276_vm2, %v1829_v1  ;;  %v2345_v15 = vmax.f32 %v2217_v3, 0.0  ;;  %v2222_v17 = vadd.f32 %v4931_v33, %v2087_v11  ;;  %v435_v1 = vld [vmem:[#allocation2 + $0xf0] sm:$0xff] }
 0x118   : > { %v2021_v18 = vld [vmem:[#allocation2 + $0xa0] sm:$0xff]  ;;  %2924 = vst.msk [vmem:[%s4950_s10 + $0x4c] sm:$0xf] %vm2904_vm4, %v3853_v8  ;;  %2988 = vst.msk [vmem:[%s4950_s10 + $0x14c] sm:$0xf] %vm2904_vm4, %v3917_v9  ;;  %v3851_v26 = vpack.c.bf16 %v2281_v14, %v2281_v14  ;;  %v2286_v28 = vmax.f32 %v2158_v16, 0.0  ;;  %v5120_v47 = vpop.f32.mrf.mxu0  ;;  %v5122_v48 = vpop.f32.mrf.mxu1 }
 0x119   : > { %v2085_v19 = vld [vmem:[#allocation2 + $0x2a0] sm:$0xff]  ;;  %v2156_v22 = vadd.f32 %v4931_v33, %v2021_v18  ;;  %1897 = vst.msk [vmem:[#allocation2 + $0xd8] sm:$0xff] %vm276_vm2, %v1768_v12  ;;  %1961 = vst.msk [vmem:[#allocation2 + $0x2d8] sm:$0xff] %vm276_vm2, %v1832_v13  ;;  %v3915_v27 = vpack.c.bf16 %v2345_v15, %v2345_v15  ;;  %v2350_v29 = vmax.f32 %v2222_v17, 0.0  ;;  %v2024_v30 = vld [vmem:[#allocation2 + $0xb8] sm:$0xff] }
 0x11a   : > { %v2220_v23 = vadd.f32 %v4931_v33, %v2085_v19  ;;  %v2088_v31 = vld [vmem:[#allocation2 + $0x2b8] sm:$0xff]  ;;  %v2022_v32 = vld [vmem:[#allocation2 + $0xa8] sm:$0xff]  ;;  %v2159_v38 = vadd.f32 %v4931_v33, %v2024_v30  ;;  %1895 = vst.msk [vmem:[#allocation2 + $0xc8] sm:$0xff] %vm276_vm2, %v1766_v24  ;;  %1959 = vst.msk [vmem:[#allocation2 + $0x2c8] sm:$0xff] %vm276_vm2, %v1830_v25  ;;  %v3856_v41 = vpack.c.bf16 %v2286_v28, %v2286_v28  ;;  %v4066_v59 = vpop.f32.mrf.mxu0  ;;  %v4130_v60 = vpop.f32.mrf.mxu1 }
 0x11b   : > { %v2284_v36 = vmax.f32 %v2156_v22, 0.0  ;;  %v2223_v39 = vadd.f32 %v4931_v33, %v2088_v31  ;;  %v2086_v40 = vld [vmem:[#allocation2 + $0x2a8] sm:$0xff]  ;;  %2922 = vst.msk [vmem:[%s4950_s10 + $0x44] sm:$0xf] %vm2904_vm4, %v3851_v26  ;;  %2986 = vst.msk [vmem:[%s4950_s10 + $0x144] sm:$0xf] %vm2904_vm4, %v3915_v27  ;;  %v3920_v42 = vpack.c.bf16 %v2350_v29, %v2350_v29  ;;  %v2157_v43 = vadd.f32 %v4931_v33, %v2022_v32 }
 0x11c   : > { %v2348_v37 = vmax.f32 %v2220_v23, 0.0  ;;  %v2221_v44 = vadd.f32 %v4931_v33, %v2086_v40  ;;  %v2027_v45 = vld [vmem:[#allocation2 + $0xd0] sm:$0xff]  ;;  %v2287_v51 = vmax.f32 %v2159_v38, 0.0  ;;  %2927 = vst.msk [vmem:[%s4950_s10 + $0x58] sm:$0xf] %vm2904_vm4, %v3856_v41  ;;  %v1345_v9 = vpop.f32.mrf.mxu0  ;;  %v1601_v10 = vpop.f32.mrf.mxu1  ;;  %v433_v15 = vld [vmem:[#allocation2 + $0xe0] sm:$0xff]  ;;  %v1771_v22 = vadd.f32 %v5106_v34, %v435_v1 }
 0x11d   : > { %v2091_v46 = vld [vmem:[#allocation2 + $0x2d0] sm:$0xff]  ;;  %v3854_v49 = vpack.c.bf16 %v2284_v36, %v2284_v36  ;;  %v2351_v52 = vmax.f32 %v2223_v39, 0.0  ;;  %2991 = vst.msk [vmem:[%s4950_s10 + $0x158] sm:$0xf] %vm2904_vm4, %v3920_v42  ;;  %v2285_v53 = vmax.f32 %v2157_v43, 0.0  ;;  %v2162_v55 = vadd.f32 %v4931_v33, %v2027_v45  ;;  %v497_v16 = vld [vmem:[#allocation2 + $0x2e0] sm:$0xff] }
 0x11e   : > { %v3918_v50 = vpack.c.bf16 %v2348_v37, %v2348_v37  ;;  %v2349_v54 = vmax.f32 %v2221_v44, 0.0  ;;  %v2226_v56 = vadd.f32 %v4931_v33, %v2091_v46  ;;  %v2025_v57 = vld [vmem:[#allocation2 + $0xc0] sm:$0xff]  ;;  %v3857_v61 = vpack.c.bf16 %v2287_v51, %v2287_v51  ;;  %v499_v2 = vld [vmem:[#allocation2 + $0x2f0] sm:$0xff]  ;;  %v436_v17 = vld [vmem:[#allocation2 + $0xf8] sm:$0xff]  ;;  %v4069_v25 = vpop.f32.mrf.mxu0  ;;  %v4133_v26 = vpop.f32.mrf.mxu1  ;;  %1900 = vst.msk [vmem:[#allocation2 + $0xf0] sm:$0xff] %vm276_vm2, %v1771_v22 }
 0x11f   : > { %v2089_v58 = vld [vmem:[#allocation2 + $0x2c0] sm:$0xff]  ;;  %2925 = vst.msk [vmem:[%s4950_s10 + $0x50] sm:$0xf] %vm2904_vm4, %v3854_v49  ;;  %v3921_v62 = vpack.c.bf16 %v2351_v52, %v2351_v52  ;;  %v2160_v63 = vadd.f32 %v4931_v33, %v2025_v57  ;;  %v3855_v3 = vpack.c.bf16 %v2285_v53, %v2285_v53  ;;  %v2290_v5 = vmax.f32 %v2162_v55, 0.0  ;;  %v500_v24 = vld [vmem:[#allocation2 + $0x2f8] sm:$0xff]  ;;  %v434_v31 = vld [vmem:[#allocation2 + $0xe8] sm:$0xff] }
 0x120   : > { %2989 = vst.msk [vmem:[%s4950_s10 + $0x150] sm:$0xf] %vm2904_vm4, %v3918_v50  ;;  %v2224_v0 = vadd.f32 %v4931_v33, %v2089_v58  ;;  %v3919_v4 = vpack.c.bf16 %v2349_v54, %v2349_v54  ;;  %v2354_v6 = vmax.f32 %v2226_v56, 0.0  ;;  %v2028_v7 = vld [vmem:[#allocation2 + $0xd8] sm:$0xff]  ;;  %2928 = vst.msk [vmem:[%s4950_s10 + $0x5c] sm:$0xf] %vm2904_vm4, %v3857_v61  ;;  %v1835_v23 = vadd.f32 %v5108_v35, %v499_v2  ;;  %v1358_v41 = vpop.f32.mrf.mxu0  ;;  %v1614_v43 = vpop.f32.mrf.mxu1 }
 0x121   : > { %v2092_v8 = vld [vmem:[#allocation2 + $0x2d8] sm:$0xff]  ;;  %2992 = vst.msk [vmem:[%s4950_s10 + $0x15c] sm:$0xf] %vm2904_vm4, %v3921_v62  ;;  %v2288_v11 = vmax.f32 %v2160_v63, 0.0  ;;  %v2163_v13 = vadd.f32 %v4931_v33, %v2028_v7  ;;  %2926 = vst.msk [vmem:[%s4950_s10 + $0x54] sm:$0xf] %vm2904_vm4, %v3855_v3  ;;  %v3860_v18 = vpack.c.bf16 %v2290_v5, %v2290_v5  ;;  %v1769_v37 = vadd.f32 %v5120_v47, %v433_v15 }
 0x122   : > { %v2352_v12 = vmax.f32 %v2224_v0, 0.0  ;;  %v2227_v14 = vadd.f32 %v4931_v33, %v2092_v8  ;;  %2990 = vst.msk [vmem:[%s4950_s10 + $0x154] sm:$0xf] %vm2904_vm4, %v3919_v4  ;;  %v3924_v19 = vpack.c.bf16 %v2354_v6, %v2354_v6  ;;  %v2026_v20 = vld [vmem:[#allocation2 + $0xc8] sm:$0xff]  ;;  %v439_v36 = vld [vmem:[#allocation2 + $0x110] sm:$0xff]  ;;  %v1833_v38 = vadd.f32 %v5122_v48, %v497_v16  ;;  %v437_v40 = vld [vmem:[#allocation2 + $0x100] sm:$0xff]  ;;  %v4070_v53 = vpop.f32.mrf.mxu0  ;;  %v4134_v54 = vpop.f32.mrf.mxu1 }
 0x123   : > { %v2090_v21 = vld [vmem:[#allocation2 + $0x2c8] sm:$0xff]  ;;  %v3858_v27 = vpack.c.bf16 %v2288_v11, %v2288_v11  ;;  %v2291_v29 = vmax.f32 %v2163_v13, 0.0  ;;  %2931 = vst.msk [vmem:[%s4950_s10 + $0x68] sm:$0xf] %vm2904_vm4, %v3860_v18  ;;  %v2161_v34 = vadd.f32 %v4931_v33, %v2026_v20  ;;  %v503_v39 = vld [vmem:[#allocation2 + $0x310] sm:$0xff]  ;;  %v501_v42 = vld [vmem:[#allocation2 + $0x300] sm:$0xff]  ;;  %v1772_v45 = vadd.f32 %v4066_v59, %v436_v17 }
 0x124   : > { %v3922_v28 = vpack.c.bf16 %v2352_v12, %v2352_v12  ;;  %v2355_v30 = vmax.f32 %v2227_v14, 0.0  ;;  %v498_v32 = vld [vmem:[#allocation2 + $0x2e8] sm:$0xff]  ;;  %2995 = vst.msk [vmem:[%s4950_s10 + $0x168] sm:$0xf] %vm2904_vm4, %v3924_v19  ;;  %v2225_v35 = vadd.f32 %v4931_v33, %v2090_v21  ;;  %v1836_v46 = vadd.f32 %v4130_v60, %v500_v24  ;;  %v440_v49 = vld [vmem:[#allocation2 + $0x118] sm:$0xff]  ;;  %v1361_v1 = vpop.f32.mrf.mxu0  ;;  %v1617_v2 = vpop.f32.mrf.mxu1  ;;  %v443_v3 = vld [vmem:[#allocation2 + $0x130] sm:$0xff] }
 0x125   : > { %1964 = vst.msk [vmem:[#allocation2 + $0x2f0] sm:$0xff] %vm276_vm2, %v1835_v23  ;;  %v3861_v44 = vpack.c.bf16 %v2291_v29, %v2291_v29  ;;  %v504_v50 = vld [vmem:[#allocation2 + $0x318] sm:$0xff]  ;;  %v2289_v47 = vmax.f32 %v2161_v34, 0.0  ;;  %1898 = vst.msk [vmem:[#allocation2 + $0xe0] sm:$0xff] %vm276_vm2, %v1769_v37  ;;  %v1770_v48 = vadd.f32 %v1345_v9, %v434_v31  ;;  %v1834_v52 = vadd.f32 %v1601_v10, %v498_v32  ;;  %v438_v55 = vld [vmem:[#allocation2 + $0x108] sm:$0xff] }
 0x126   : > { %2929 = vst.msk [vmem:[%s4950_s10 + $0x60] sm:$0xf] %vm2904_vm4, %v3858_v27  ;;  %2993 = vst.msk [vmem:[%s4950_s10 + $0x160] sm:$0xf] %vm2904_vm4, %v3922_v28  ;;  %v3925_v33 = vpack.c.bf16 %v2355_v30, %v2355_v30  ;;  %v2353_v51 = vmax.f32 %v2225_v35, 0.0  ;;  %v502_v56 = vld [vmem:[#allocation2 + $0x308] sm:$0xff]  ;;  %v1775_v57 = vadd.f32 %v4069_v25, %v439_v36  ;;  %v1839_v58 = vadd.f32 %v4133_v26, %v503_v39  ;;  %v4073_v7 = vpop.f32.mrf.mxu0  ;;  %v4137_v8 = vpop.f32.mrf.mxu1 }
 0x127   : > { %1962 = vst.msk [vmem:[#allocation2 + $0x2e0] sm:$0xff] %vm276_vm2, %v1833_v38  ;;  %1901 = vst.msk [vmem:[#allocation2 + $0xf8] sm:$0xff] %vm276_vm2, %v1772_v45  ;;  %v1773_v59 = vadd.f32 %v1358_v41, %v437_v40  ;;  %v1837_v60 = vadd.f32 %v1614_v43, %v501_v42  ;;  %v3859_v61 = vpack.c.bf16 %v2289_v47, %v2289_v47  ;;  %v507_v4 = vld [vmem:[#allocation2 + $0x330] sm:$0xff]  ;;  %v441_v9 = vld [vmem:[#allocation2 + $0x120] sm:$0xff] }
 0x128   : > { %2932 = vst.msk [vmem:[%s4950_s10 + $0x6c] sm:$0xf] %vm2904_vm4, %v3861_v44  ;;  %2996 = vst.msk [vmem:[%s4950_s10 + $0x16c] sm:$0xf] %vm2904_vm4, %v3925_v33  ;;  %v3923_v62 = vpack.c.bf16 %v2353_v51, %v2353_v51  ;;  %v1776_v63 = vadd.f32 %v4070_v53, %v440_v49  ;;  %v1840_v0 = vadd.f32 %v4134_v54, %v504_v50  ;;  %v505_v10 = vld [vmem:[#allocation2 + $0x320] sm:$0xff]  ;;  %v2031_v11 = vld [vmem:[#allocation2 + $0xf0] sm:$0xff]  ;;  %v1374_v18 = vpop.f32.mrf.mxu0  ;;  %v1630_v19 = vpop.f32.mrf.mxu1 }
 0x129   : > { %1965 = vst.msk [vmem:[#allocation2 + $0x2f8] sm:$0xff] %vm276_vm2, %v1836_v46  ;;  %1899 = vst.msk [vmem:[#allocation2 + $0xe8] sm:$0xff] %vm276_vm2, %v1770_v48  ;;  %v1774_v5 = vadd.f32 %v1361_v1, %v438_v55  ;;  %v1838_v6 = vadd.f32 %v1617_v2, %v502_v56  ;;  %v1779_v13 = vadd.f32 %v4073_v7, %v443_v3  ;;  %v5187_v15 = vld [vmem:[%s5744_s2] ss:$0 sm:$0xff]  ;;  %v444_v20 = vld [vmem:[#allocation2 + $0x138] sm:$0xff] }
 0x12a   : > { %1963 = vst.msk [vmem:[#allocation2 + $0x2e8] sm:$0xff] %vm276_vm2, %v1834_v52  ;;  %1904 = vst.msk [vmem:[#allocation2 + $0x110] sm:$0xff] %vm276_vm2, %v1775_v57  ;;  %v1843_v14 = vadd.f32 %v4137_v8, %v507_v4  ;;  %v2166_v16 = vadd.f32 %v5187_v15, %v2031_v11  ;;  %v508_v21 = vld [vmem:[#allocation2 + $0x338] sm:$0xff]  ;;  %v1777_v24 = vadd.f32 %v1374_v18, %v441_v9  ;;  %v4074_v32 = vpop.f32.mrf.mxu0  ;;  %v4138_v36 = vpop.f32.mrf.mxu1 }
 0x12b   : > { %1968 = vst.msk [vmem:[#allocation2 + $0x310] sm:$0xff] %vm276_vm2, %v1839_v58  ;;  %1902 = vst.msk [vmem:[#allocation2 + $0x100] sm:$0xff] %vm276_vm2, %v1773_v59  ;;  %v1841_v25 = vadd.f32 %v1630_v19, %v505_v10  ;;  %v1780_v39 = vadd.f32 %v4074_v32, %v444_v20  ;;  %v1844_v40 = vadd.f32 %v4138_v36, %v508_v21 }
 0x12c   : > { %1966 = vst.msk [vmem:[#allocation2 + $0x300] sm:$0xff] %vm276_vm2, %v1837_v60  ;;  %1905 = vst.msk [vmem:[#allocation2 + $0x118] sm:$0xff] %vm276_vm2, %v1776_v63  ;;  %v2095_v12 = vld [vmem:[#allocation2 + $0x2f0] sm:$0xff]  ;;  %v2029_v22 = vld [vmem:[#allocation2 + $0xe0] sm:$0xff]  ;;  %v2294_v26 = vmax.f32 %v2166_v16, 0.0  ;;  %v5199_v46 = vpop.f32.mrf.mxu0  ;;  %v5201_v49 = vpop.f32.mrf.mxu1 }
 0x12d   : > { %2930 = vst.msk [vmem:[%s4950_s10 + $0x64] sm:$0xf] %vm2904_vm4, %v3859_v61  ;;  %2994 = vst.msk [vmem:[%s4950_s10 + $0x164] sm:$0xf] %vm2904_vm4, %v3923_v62  ;;  %v2230_v17 = vadd.f32 %v5187_v15, %v2095_v12  ;;  %v2164_v28 = vadd.f32 %v5187_v15, %v2029_v22 }
 0x12e   : > { %1969 = vst.msk [vmem:[#allocation2 + $0x318] sm:$0xff] %vm276_vm2, %v1840_v0  ;;  %1903 = vst.msk [vmem:[#allocation2 + $0x108] sm:$0xff] %vm276_vm2, %v1774_v5  ;;  %v2093_v23 = vld [vmem:[#allocation2 + $0x2e0] sm:$0xff]  ;;  %v2032_v30 = vld [vmem:[#allocation2 + $0xf8] sm:$0xff]  ;;  %v3864_v41 = vpack.c.bf16 %v2294_v26, %v2294_v26  ;;  %v5213_v60 = vpop.f32.mrf.mxu0  ;;  %v5215_v61 = vpop.f32.mrf.mxu1 }
 0x12f   : > { %1967 = vst.msk [vmem:[#allocation2 + $0x308] sm:$0xff] %vm276_vm2, %v1838_v6  ;;  %1908 = vst.msk [vmem:[#allocation2 + $0x130] sm:$0xff] %vm276_vm2, %v1779_v13  ;;  %v2358_v27 = vmax.f32 %v2230_v17, 0.0  ;;  %v2228_v29 = vadd.f32 %v5187_v15, %v2093_v23  ;;  %v2167_v34 = vadd.f32 %v5187_v15, %v2032_v30  ;;  %v2292_v43 = vmax.f32 %v2164_v28, 0.0 }
 0x130   : > { %1972 = vst.msk [vmem:[#allocation2 + $0x330] sm:$0xff] %vm276_vm2, %v1843_v14  ;;  %v2096_v31 = vld [vmem:[#allocation2 + $0x2f8] sm:$0xff]  ;;  %v2030_v37 = vld [vmem:[#allocation2 + $0xe8] sm:$0xff]  ;;  %1906 = vst.msk [vmem:[#allocation2 + $0x120] sm:$0xff] %vm276_vm2, %v1777_v24  ;;  %v5223_v8 = vpop.f32.mrf.mxu0  ;;  %v5225_v9 = vpop.f32.mrf.mxu1 }
 0x131   : > { %v2231_v35 = vadd.f32 %v5187_v15, %v2096_v31  ;;  %v2094_v38 = vld [vmem:[#allocation2 + $0x2e8] sm:$0xff]  ;;  %1970 = vst.msk [vmem:[#allocation2 + $0x320] sm:$0xff] %vm276_vm2, %v1841_v25  ;;  %v3928_v42 = vpack.c.bf16 %v2358_v27, %v2358_v27  ;;  %v2356_v44 = vmax.f32 %v2228_v29, 0.0  ;;  %v2035_v33 = vld [vmem:[#allocation2 + $0x110] sm:$0xff]  ;;  %v2295_v50 = vmax.f32 %v2167_v34, 0.0  ;;  %1909 = vst.msk [vmem:[#allocation2 + $0x138] sm:$0xff] %vm276_vm2, %v1780_v39 }
 0x132   : > { %v2099_v45 = vld [vmem:[#allocation2 + $0x310] sm:$0xff]  ;;  %v2165_v51 = vadd.f32 %v5187_v15, %v2030_v37  ;;  %v2229_v48 = vadd.f32 %v5187_v15, %v2094_v38  ;;  %v2033_v52 = vld [vmem:[#allocation2 + $0x100] sm:$0xff]  ;;  %1973 = vst.msk [vmem:[#allocation2 + $0x338] sm:$0xff] %vm276_vm2, %v1844_v40  ;;  %v3862_v54 = vpack.c.bf16 %v2292_v43, %v2292_v43  ;;  %v2170_v56 = vadd.f32 %v5187_v15, %v2035_v33  ;;  %v5233_v21 = vpop.f32.mrf.mxu0  ;;  %v5235_v22 = vpop.f32.mrf.mxu1 }
 0x133   : > { %v2359_v47 = vmax.f32 %v2231_v35, 0.0  ;;  %v2097_v53 = vld [vmem:[#allocation2 + $0x300] sm:$0xff]  ;;  %2935 = vst.msk [vmem:[%s4950_s10 + $0x78] sm:$0xf] %vm2904_vm4, %v3864_v41  ;;  %2999 = vst.msk [vmem:[%s4950_s10 + $0x178] sm:$0xf] %vm2904_vm4, %v3928_v42  ;;  %v3926_v55 = vpack.c.bf16 %v2356_v44, %v2356_v44  ;;  %v2234_v57 = vadd.f32 %v5187_v15, %v2099_v45  ;;  %v3865_v62 = vpack.c.bf16 %v2295_v50, %v2295_v50 }
 0x134   : > { %v2036_v58 = vld [vmem:[#allocation2 + $0x118] sm:$0xff]  ;;  %v2293_v0 = vmax.f32 %v2165_v51, 0.0  ;;  %v2357_v1 = vmax.f32 %v2229_v48, 0.0  ;;  %2933 = vst.msk [vmem:[%s4950_s10 + $0x70] sm:$0xf] %vm2904_vm4, %v3862_v54  ;;  %v2298_v2 = vmax.f32 %v2170_v56, 0.0  ;;  %v2168_v4 = vadd.f32 %v5187_v15, %v2033_v52  ;;  %v5249_v35 = vpop.f32.mrf.mxu0  ;;  %v5251_v37 = vpop.f32.mrf.mxu1 }
 0x135   : > { %v2100_v59 = vld [vmem:[#allocation2 + $0x318] sm:$0xff]  ;;  %v3929_v63 = vpack.c.bf16 %v2359_v47, %v2359_v47  ;;  %2997 = vst.msk [vmem:[%s4950_s10 + $0x170] sm:$0xf] %vm2904_vm4, %v3926_v55  ;;  %v2362_v3 = vmax.f32 %v2234_v57, 0.0  ;;  %v2232_v5 = vadd.f32 %v5187_v15, %v2097_v53  ;;  %v2034_v6 = vld [vmem:[#allocation2 + $0x108] sm:$0xff]  ;;  %v2171_v12 = vadd.f32 %v5187_v15, %v2036_v58  ;;  %v447_v47 = vld [vmem:[#allocation2 + $0x150] sm:$0xff] }
 0x136   : > { %v2098_v7 = vld [vmem:[#allocation2 + $0x308] sm:$0xff]  ;;  %2936 = vst.msk [vmem:[%s4950_s10 + $0x7c] sm:$0xf] %vm2904_vm4, %v3865_v62  ;;  %v3863_v10 = vpack.c.bf16 %v2293_v0, %v2293_v0  ;;  %v3927_v11 = vpack.c.bf16 %v2357_v1, %v2357_v1  ;;  %v2235_v13 = vadd.f32 %v5187_v15, %v2100_v59  ;;  %v2039_v14 = vld [vmem:[#allocation2 + $0x130] sm:$0xff]  ;;  %v3868_v17 = vpack.c.bf16 %v2298_v2, %v2298_v2  ;;  %v5259_v51 = vpop.f32.mrf.mxu0  ;;  %v5261_v48 = vpop.f32.mrf.mxu1  ;;  %v445_v57 = vld [vmem:[#allocation2 + $0x140] sm:$0xff] }
 0x137   : > { %3000 = vst.msk [vmem:[%s4950_s10 + $0x17c] sm:$0xf] %vm2904_vm4, %v3929_v63  ;;  %v2103_v16 = vld [vmem:[#allocation2 + $0x330] sm:$0xff]  ;;  %v3932_v18 = vpack.c.bf16 %v2362_v3, %v2362_v3  ;;  %v2296_v19 = vmax.f32 %v2168_v4, 0.0  ;;  %v2360_v20 = vmax.f32 %v2232_v5, 0.0  ;;  %v2299_v23 = vmax.f32 %v2171_v12, 0.0 }
 0x138   : > { %2934 = vst.msk [vmem:[%s4950_s10 + $0x74] sm:$0xf] %vm2904_vm4, %v3863_v10  ;;  %2998 = vst.msk [vmem:[%s4950_s10 + $0x174] sm:$0xf] %vm2904_vm4, %v3927_v11  ;;  %v2363_v24 = vmax.f32 %v2235_v13, 0.0  ;;  %v2169_v25 = vadd.f32 %v5187_v15, %v2034_v6  ;;  %v2233_v26 = vadd.f32 %v5187_v15, %v2098_v7  ;;  %v2037_v27 = vld [vmem:[#allocation2 + $0x120] sm:$0xff]  ;;  %v2174_v31 = vadd.f32 %v5187_v15, %v2039_v14  ;;  %v1406_v4 = vpop.f32.mrf.mxu0  ;;  %v1662_v5 = vpop.f32.mrf.mxu1 }
 0x139   : > { %v2101_v28 = vld [vmem:[#allocation2 + $0x320] sm:$0xff]  ;;  %2939 = vst.msk [vmem:[%s4950_s10 + $0x88] sm:$0xf] %vm2904_vm4, %v3868_v17  ;;  %3003 = vst.msk [vmem:[%s4950_s10 + $0x188] sm:$0xf] %vm2904_vm4, %v3932_v18  ;;  %v3866_v29 = vpack.c.bf16 %v2296_v19, %v2296_v19  ;;  %v3930_v30 = vpack.c.bf16 %v2360_v20, %v2360_v20  ;;  %v2238_v32 = vadd.f32 %v5187_v15, %v2103_v16  ;;  %v2040_v36 = vld [vmem:[#allocation2 + $0x138] sm:$0xff] }
 0x13a   : > { %v2104_v34 = vld [vmem:[#allocation2 + $0x338] sm:$0xff]  ;;  %v3869_v38 = vpack.c.bf16 %v2299_v23, %v2299_v23  ;;  %v3933_v39 = vpack.c.bf16 %v2363_v24, %v2363_v24  ;;  %v2297_v40 = vmax.f32 %v2169_v25, 0.0  ;;  %v2361_v41 = vmax.f32 %v2233_v26, 0.0  ;;  %v442_v45 = vld [vmem:[#allocation2 + $0x128] sm:$0xff]  ;;  %v511_v56 = vld [vmem:[#allocation2 + $0x350] sm:$0xff]  ;;  %v4082_v24 = vpop.f32.mrf.mxu0 }
 0x13b   : > { %2937 = vst.msk [vmem:[%s4950_s10 + $0x80] sm:$0xf] %vm2904_vm4, %v3866_v29  ;;  %3001 = vst.msk [vmem:[%s4950_s10 + $0x180] sm:$0xf] %vm2904_vm4, %v3930_v30  ;;  %v2302_v42 = vmax.f32 %v2174_v31, 0.0  ;;  %v2366_v43 = vmax.f32 %v2238_v32, 0.0  ;;  %v2172_v44 = vadd.f32 %v5187_v15, %v2037_v27  ;;  %v2236_v33 = vadd.f32 %v5187_v15, %v2101_v28 }
 0x13c   : > { %v506_v50 = vld [vmem:[#allocation2 + $0x328] sm:$0xff]  ;;  %2940 = vst.msk [vmem:[%s4950_s10 + $0x8c] sm:$0xf] %vm2904_vm4, %v3869_v38  ;;  %3004 = vst.msk [vmem:[%s4950_s10 + $0x18c] sm:$0xf] %vm2904_vm4, %v3933_v39  ;;  %v3867_v52 = vpack.c.bf16 %v2297_v40, %v2297_v40  ;;  %v3931_v53 = vpack.c.bf16 %v2361_v41, %v2361_v41  ;;  %v2175_v54 = vadd.f32 %v5187_v15, %v2040_v36  ;;  %v509_v58 = vld [vmem:[#allocation2 + $0x340] sm:$0xff]  ;;  %v1409_v32 = vpop.f32.mrf.mxu0 }
 0x13d   : > { %v2239_v55 = vadd.f32 %v5187_v15, %v2104_v34  ;;  %v3872_v59 = vpack.c.bf16 %v2302_v42, %v2302_v42  ;;  %v3936_v62 = vpack.c.bf16 %v2366_v43, %v2366_v43  ;;  %v2300_v63 = vmax.f32 %v2172_v44, 0.0  ;;  %v448_v1 = vld [vmem:[#allocation2 + $0x158] sm:$0xff]  ;;  %v446_v3 = vld [vmem:[#allocation2 + $0x148] sm:$0xff]  ;;  %v451_v13 = vld [vmem:[#allocation2 + $0x170] sm:$0xff] }
 0x13e   : > { %v2364_v0 = vmax.f32 %v2236_v33, 0.0  ;;  %v512_v2 = vld [vmem:[#allocation2 + $0x358] sm:$0xff]  ;;  %2938 = vst.msk [vmem:[%s4950_s10 + $0x84] sm:$0xf] %vm2904_vm4, %v3867_v52  ;;  %3002 = vst.msk [vmem:[%s4950_s10 + $0x184] sm:$0xf] %vm2904_vm4, %v3931_v53  ;;  %v1778_v10 = vadd.f32 %v5199_v46, %v442_v45  ;;  %v1842_v11 = vadd.f32 %v5201_v49, %v506_v50  ;;  %v1783_v18 = vadd.f32 %v5213_v60, %v447_v47  ;;  %v4146_v49 = vpop.f32.mrf.mxu1  ;;  %v4085_v43 = vpop.f32.mrf.mxu0 }
 0x13f   : > { %v2303_v6 = vmax.f32 %v2175_v54, 0.0  ;;  %v2367_v7 = vmax.f32 %v2239_v55, 0.0  ;;  %v510_v12 = vld [vmem:[#allocation2 + $0x348] sm:$0xff]  ;;  %v515_v14 = vld [vmem:[#allocation2 + $0x370] sm:$0xff]  ;;  %2943 = vst.msk [vmem:[%s4950_s10 + $0x98] sm:$0xf] %vm2904_vm4, %v3872_v59  ;;  %v3870_v16 = vpack.c.bf16 %v2300_v63, %v2300_v63  ;;  %v1847_v19 = vadd.f32 %v5215_v61, %v511_v56 }
 0x140   : > { %3007 = vst.msk [vmem:[%s4950_s10 + $0x198] sm:$0xf] %vm2904_vm4, %v3936_v62  ;;  %v3934_v17 = vpack.c.bf16 %v2364_v0, %v2364_v0  ;;  %v449_v20 = vld [vmem:[#allocation2 + $0x160] sm:$0xff]  ;;  %v452_v46 = vld [vmem:[#allocation2 + $0x178] sm:$0xff]  ;;  %v1781_v27 = vadd.f32 %v5223_v8, %v445_v57  ;;  %v1845_v28 = vadd.f32 %v5225_v9, %v509_v58  ;;  %v450_v61 = vld [vmem:[#allocation2 + $0x168] sm:$0xff]  ;;  %v1784_v30 = vadd.f32 %v5233_v21, %v448_v1  ;;  %v1665_v36 = vpop.f32.mrf.mxu1 }
 0x141   : > { %v513_v23 = vld [vmem:[#allocation2 + $0x360] sm:$0xff]  ;;  %v3873_v25 = vpack.c.bf16 %v2303_v6, %v2303_v6  ;;  %v3937_v26 = vpack.c.bf16 %v2367_v7, %v2367_v7  ;;  %1907 = vst.msk [vmem:[#allocation2 + $0x128] sm:$0xff] %vm276_vm2, %v1778_v10  ;;  %1971 = vst.msk [vmem:[#allocation2 + $0x328] sm:$0xff] %vm276_vm2, %v1842_v11  ;;  %v516_v60 = vld [vmem:[#allocation2 + $0x378] sm:$0xff]  ;;  %v1848_v31 = vadd.f32 %v5235_v22, %v512_v2 }
 0x142   : > { %v514_v29 = vld [vmem:[#allocation2 + $0x368] sm:$0xff]  ;;  %2941 = vst.msk [vmem:[%s4950_s10 + $0x90] sm:$0xf] %vm2904_vm4, %v3870_v16  ;;  %3005 = vst.msk [vmem:[%s4950_s10 + $0x190] sm:$0xf] %vm2904_vm4, %v3934_v17  ;;  %v1782_v8 = vadd.f32 %v5249_v35, %v446_v3  ;;  %v1846_v9 = vadd.f32 %v5251_v37, %v510_v12  ;;  %v455_v34 = vld [vmem:[#allocation2 + $0x190] sm:$0xff]  ;;  %v1787_v21 = vadd.f32 %v5259_v51, %v451_v13  ;;  %v4149_v44 = vpop.f32.mrf.mxu1  ;;  %v1422_v51 = vpop.f32.mrf.mxu0 }
 0x143   : > { %1912 = vst.msk [vmem:[#allocation2 + $0x150] sm:$0xff] %vm276_vm2, %v1783_v18  ;;  %1976 = vst.msk [vmem:[#allocation2 + $0x350] sm:$0xff] %vm276_vm2, %v1847_v19  ;;  %v519_v38 = vld [vmem:[#allocation2 + $0x390] sm:$0xff]  ;;  %v1851_v22 = vadd.f32 %v5261_v48, %v515_v14  ;;  %v1785_v39 = vadd.f32 %v1406_v4, %v449_v20  ;;  %v1849_v35 = vadd.f32 %v1662_v5, %v513_v23  ;;  %v453_v33 = vld [vmem:[#allocation2 + $0x180] sm:$0xff] }
 0x144   : > { %2944 = vst.msk [vmem:[%s4950_s10 + $0x9c] sm:$0xf] %vm2904_vm4, %v3873_v25  ;;  %3008 = vst.msk [vmem:[%s4950_s10 + $0x19c] sm:$0xf] %vm2904_vm4, %v3937_v26  ;;  %v1788_v37 = vadd.f32 %v4082_v24, %v452_v46  ;;  %v1852_v40 = vadd.f32 %v4146_v49, %v516_v60  ;;  %v1786_v41 = vadd.f32 %v1409_v32, %v450_v61  ;;  %v517_v45 = vld [vmem:[#allocation2 + $0x380] sm:$0xff]  ;;  %v1678_v48 = vpop.f32.mrf.mxu1  ;;  %v456_v52 = vld [vmem:[#allocation2 + $0x198] sm:$0xff]  ;;  %v4086_v58 = vpop.f32.mrf.mxu0 }
 0x145   : > { %1910 = vst.msk [vmem:[#allocation2 + $0x140] sm:$0xff] %vm276_vm2, %v1781_v27  ;;  %1974 = vst.msk [vmem:[#allocation2 + $0x340] sm:$0xff] %vm276_vm2, %v1845_v28  ;;  %v1850_v42 = vadd.f32 %v1665_v36, %v514_v29  ;;  %v1791_v50 = vadd.f32 %v4085_v43, %v455_v34  ;;  %v1855_v47 = vadd.f32 %v4149_v44, %v519_v38  ;;  %v520_v53 = vld [vmem:[#allocation2 + $0x398] sm:$0xff] }
 0x146   : > { %1913 = vst.msk [vmem:[#allocation2 + $0x158] sm:$0xff] %vm276_vm2, %v1784_v30  ;;  %1977 = vst.msk [vmem:[#allocation2 + $0x358] sm:$0xff] %vm276_vm2, %v1848_v31  ;;  %v1789_v54 = vadd.f32 %v1422_v51, %v453_v33  ;;  %v1853_v55 = vadd.f32 %v1678_v48, %v517_v45  ;;  %v4150_v59 = vpop.f32.mrf.mxu1  ;;  %v1792_v2 = vadd.f32 %v4086_v58, %v456_v52  ;;  %v5323_v10 = vpop.f32.mrf.mxu0 }
 0x147   : > { %1911 = vst.msk [vmem:[#allocation2 + $0x148] sm:$0xff] %vm276_vm2, %v1782_v8  ;;  %1975 = vst.msk [vmem:[#allocation2 + $0x348] sm:$0xff] %vm276_vm2, %v1846_v9  ;;  %v1856_v3 = vadd.f32 %v4150_v59, %v520_v53 }
 0x148   : > { %1916 = vst.msk [vmem:[#allocation2 + $0x170] sm:$0xff] %vm276_vm2, %v1787_v21  ;;  %1980 = vst.msk [vmem:[#allocation2 + $0x370] sm:$0xff] %vm276_vm2, %v1851_v22  ;;  %v2038_v56 = vld [vmem:[#allocation2 + $0x128] sm:$0xff]  ;;  %v5325_v11 = vpop.f32.mrf.mxu1  ;;  %v5333_v25 = vpop.f32.mrf.mxu0 }
 0x149   : > { %1914 = vst.msk [vmem:[#allocation2 + $0x160] sm:$0xff] %vm276_vm2, %v1785_v39  ;;  %1978 = vst.msk [vmem:[#allocation2 + $0x360] sm:$0xff] %vm276_vm2, %v1849_v35  ;;  %v2102_v57 = vld [vmem:[#allocation2 + $0x328] sm:$0xff]  ;;  %v2173_v62 = vadd.f32 %v5187_v15, %v2038_v56 }
 0x14a   : > { %1917 = vst.msk [vmem:[#allocation2 + $0x178] sm:$0xff] %vm276_vm2, %v1788_v37  ;;  %1981 = vst.msk [vmem:[#allocation2 + $0x378] sm:$0xff] %vm276_vm2, %v1852_v40  ;;  %v2237_v63 = vadd.f32 %v5187_v15, %v2102_v57  ;;  %v2043_v0 = vld [vmem:[#allocation2 + $0x150] sm:$0xff]  ;;  %v5335_v26 = vpop.f32.mrf.mxu1  ;;  %v5337_v38 = vpop.f32.mrf.mxu0 }
 0x14b   : > { %1915 = vst.msk [vmem:[#allocation2 + $0x168] sm:$0xff] %vm276_vm2, %v1786_v41  ;;  %1979 = vst.msk [vmem:[#allocation2 + $0x368] sm:$0xff] %vm276_vm2, %v1850_v42  ;;  %v2107_v1 = vld [vmem:[#allocation2 + $0x350] sm:$0xff]  ;;  %v2178_v4 = vadd.f32 %v5187_v15, %v2043_v0  ;;  %v2301_v12 = vmax.f32 %v2173_v62, 0.0 }
 0x14c   : > { %1920 = vst.msk [vmem:[#allocation2 + $0x190] sm:$0xff] %vm276_vm2, %v1791_v50  ;;  %1984 = vst.msk [vmem:[#allocation2 + $0x390] sm:$0xff] %vm276_vm2, %v1855_v47  ;;  %v2242_v5 = vadd.f32 %v5187_v15, %v2107_v1  ;;  %v2041_v6 = vld [vmem:[#allocation2 + $0x140] sm:$0xff]  ;;  %v2365_v13 = vmax.f32 %v2237_v63, 0.0  ;;  %v5339_v21 = vpop.f32.mrf.mxu1  ;;  %v5353_v45 = vpop.f32.mrf.mxu0 }
 0x14d   : > { %1918 = vst.msk [vmem:[#allocation2 + $0x180] sm:$0xff] %vm276_vm2, %v1789_v54  ;;  %1982 = vst.msk [vmem:[#allocation2 + $0x380] sm:$0xff] %vm276_vm2, %v1853_v55  ;;  %v2105_v7 = vld [vmem:[#allocation2 + $0x340] sm:$0xff]  ;;  %v2176_v14 = vadd.f32 %v5187_v15, %v2041_v6  ;;  %v2044_v17 = vld [vmem:[#allocation2 + $0x158] sm:$0xff]  ;;  %v2306_v19 = vmax.f32 %v2178_v4, 0.0  ;;  %v3871_v27 = vpack.c.bf16 %v2301_v12, %v2301_v12 }
 0x14e   : > { %v2240_v16 = vadd.f32 %v5187_v15, %v2105_v7  ;;  %v2108_v18 = vld [vmem:[#allocation2 + $0x358] sm:$0xff]  ;;  %1921 = vst.msk [vmem:[#allocation2 + $0x198] sm:$0xff] %vm276_vm2, %v1792_v2  ;;  %1985 = vst.msk [vmem:[#allocation2 + $0x398] sm:$0xff] %vm276_vm2, %v1856_v3  ;;  %v2370_v20 = vmax.f32 %v2242_v5, 0.0  ;;  %v2179_v23 = vadd.f32 %v5187_v15, %v2044_v17  ;;  %v2042_v24 = vld [vmem:[#allocation2 + $0x148] sm:$0xff]  ;;  %v3935_v28 = vpack.c.bf16 %v2365_v13, %v2365_v13  ;;  %v5355_v50 = vpop.f32.mrf.mxu1  ;;  %v5369_v59 = vpop.f32.mrf.mxu0 }
 0x14f   : > { %v2243_v46 = vadd.f32 %v5187_v15, %v2108_v18  ;;  %v2106_v49 = vld [vmem:[#allocation2 + $0x348] sm:$0xff]  ;;  %v2304_v60 = vmax.f32 %v2176_v14, 0.0  ;;  %v2047_v29 = vld [vmem:[#allocation2 + $0x170] sm:$0xff]  ;;  %v3876_v31 = vpack.c.bf16 %v2306_v19, %v2306_v19  ;;  %2942 = vst.msk [vmem:[%s4950_s10 + $0x94] sm:$0xf] %vm2904_vm4, %v3871_v27  ;;  %v2177_v35 = vadd.f32 %v5187_v15, %v2042_v24 }
 0x150   : > { %v2368_v61 = vmax.f32 %v2240_v16, 0.0  ;;  %v2111_v30 = vld [vmem:[#allocation2 + $0x370] sm:$0xff]  ;;  %v3940_v8 = vpack.c.bf16 %v2370_v20, %v2370_v20  ;;  %v2307_v9 = vmax.f32 %v2179_v23, 0.0  ;;  %v2045_v36 = vld [vmem:[#allocation2 + $0x160] sm:$0xff]  ;;  %3006 = vst.msk [vmem:[%s4950_s10 + $0x194] sm:$0xf] %vm2904_vm4, %v3935_v28  ;;  %v2241_v37 = vadd.f32 %v5187_v15, %v2106_v49  ;;  %v5371_v62 = vpop.f32.mrf.mxu1  ;;  %v5373_v16 = vpop.f32.mrf.mxu0 }
 0x151   : > { %v2371_v32 = vmax.f32 %v2243_v46, 0.0  ;;  %v2109_v34 = vld [vmem:[#allocation2 + $0x360] sm:$0xff]  ;;  %v3874_v22 = vpack.c.bf16 %v2304_v60, %v2304_v60  ;;  %v2048_v40 = vld [vmem:[#allocation2 + $0x178] sm:$0xff]  ;;  %2947 = vst.msk [vmem:[%s4950_s10 + $0xa8] sm:$0xf] %vm2904_vm4, %v3876_v31  ;;  %v2182_v44 = vadd.f32 %v5187_v15, %v2047_v29  ;;  %v2246_v33 = vadd.f32 %v5187_v15, %v2111_v30 }
 0x152   : > { %v3938_v39 = vpack.c.bf16 %v2368_v61, %v2368_v61  ;;  %v2112_v41 = vld [vmem:[#allocation2 + $0x378] sm:$0xff]  ;;  %3011 = vst.msk [vmem:[%s4950_s10 + $0x1a8] sm:$0xf] %vm2904_vm4, %v3940_v8  ;;  %v3877_v42 = vpack.c.bf16 %v2307_v9, %v2307_v9  ;;  %v2305_v47 = vmax.f32 %v2177_v35, 0.0  ;;  %v2369_v51 = vmax.f32 %v2241_v37, 0.0  ;;  %v2046_v57 = vld [vmem:[#allocation2 + $0x168] sm:$0xff]  ;;  %v5375_v17 = vpop.f32.mrf.mxu1  ;;  %v5389_v61 = vpop.f32.mrf.mxu0 }
 0x153   : > { %v3941_v43 = vpack.c.bf16 %v2371_v32, %v2371_v32  ;;  %2945 = vst.msk [vmem:[%s4950_s10 + $0xa0] sm:$0xf] %vm2904_vm4, %v3874_v22  ;;  %v2180_v48 = vadd.f32 %v5187_v15, %v2045_v36  ;;  %v2244_v52 = vadd.f32 %v5187_v15, %v2109_v34  ;;  %v2310_v53 = vmax.f32 %v2182_v44, 0.0  ;;  %v2110_v58 = vld [vmem:[#allocation2 + $0x368] sm:$0xff]  ;;  %v2051_v3 = vld [vmem:[#allocation2 + $0x190] sm:$0xff] }
 0x154   : > { %3009 = vst.msk [vmem:[%s4950_s10 + $0x1a0] sm:$0xf] %vm2904_vm4, %v3938_v39  ;;  %2948 = vst.msk [vmem:[%s4950_s10 + $0xac] sm:$0xf] %vm2904_vm4, %v3877_v42  ;;  %v2374_v54 = vmax.f32 %v2246_v33, 0.0  ;;  %v2183_v55 = vadd.f32 %v5187_v15, %v2048_v40  ;;  %v2247_v56 = vadd.f32 %v5187_v15, %v2112_v41  ;;  %v3875_v63 = vpack.c.bf16 %v2305_v47, %v2305_v47  ;;  %v2115_v4 = vld [vmem:[#allocation2 + $0x390] sm:$0xff]  ;;  %v5391_v29 = vpop.f32.mrf.mxu1 }
 0x155   : > { %3012 = vst.msk [vmem:[%s4950_s10 + $0x1ac] sm:$0xf] %vm2904_vm4, %v3941_v43  ;;  %v3939_v0 = vpack.c.bf16 %v2369_v51, %v2369_v51  ;;  %v2308_v1 = vmax.f32 %v2180_v48, 0.0  ;;  %v2372_v2 = vmax.f32 %v2244_v52, 0.0  ;;  %v3880_v5 = vpack.c.bf16 %v2310_v53, %v2310_v53  ;;  %v2049_v13 = vld [vmem:[#allocation2 + $0x180] sm:$0xff]  ;;  %v2052_v46 = vld [vmem:[#allocation2 + $0x198] sm:$0xff]  ;;  %v5405_v43 = vpop.f32.mrf.mxu0 }
 0x156   : > { %v3944_v6 = vpack.c.bf16 %v2374_v54, %v2374_v54  ;;  %v2311_v7 = vmax.f32 %v2183_v55, 0.0  ;;  %v2375_v12 = vmax.f32 %v2247_v56, 0.0  ;;  %v2113_v14 = vld [vmem:[#allocation2 + $0x380] sm:$0xff]  ;;  %2946 = vst.msk [vmem:[%s4950_s10 + $0xa4] sm:$0xf] %vm2904_vm4, %v3875_v63  ;;  %v2181_v20 = vadd.f32 %v5187_v15, %v2046_v57  ;;  %v2116_v24 = vld [vmem:[#allocation2 + $0x398] sm:$0xff]  ;;  %v5407_v44 = vpop.f32.mrf.mxu1 }
 0x157   : > { %3010 = vst.msk [vmem:[%s4950_s10 + $0x1a4] sm:$0xf] %vm2904_vm4, %v3939_v0  ;;  %v3878_v18 = vpack.c.bf16 %v2308_v1, %v2308_v1  ;;  %v3942_v19 = vpack.c.bf16 %v2372_v2, %v2372_v2  ;;  %v2245_v23 = vadd.f32 %v5187_v15, %v2110_v58  ;;  %2951 = vst.msk [vmem:[%s4950_s10 + $0xb8] sm:$0xf] %vm2904_vm4, %v3880_v5  ;;  %v454_v32 = vld [vmem:[#allocation2 + $0x188] sm:$0xff]  ;;  %v459_v34 = vld [vmem:[#allocation2 + $0x1b0] sm:$0xff]  ;;  %v1457_v2 = vpop.f32.mrf.mxu0 }
 0x158   : > { %3015 = vst.msk [vmem:[%s4950_s10 + $0x1b8] sm:$0xf] %vm2904_vm4, %v3944_v6  ;;  %v3881_v49 = vpack.c.bf16 %v2311_v7, %v2311_v7  ;;  %v3945_v27 = vpack.c.bf16 %v2375_v12, %v2375_v12  ;;  %v2186_v28 = vadd.f32 %v5187_v15, %v2051_v3  ;;  %v2250_v60 = vadd.f32 %v5187_v15, %v2115_v4  ;;  %v518_v36 = vld [vmem:[#allocation2 + $0x388] sm:$0xff]  ;;  %v523_v40 = vld [vmem:[#allocation2 + $0x3b0] sm:$0xff]  ;;  %v457_v41 = vld [vmem:[#allocation2 + $0x1a0] sm:$0xff]  ;;  %v1713_v3 = vpop.f32.mrf.mxu1 }
 0x159   : > { %2949 = vst.msk [vmem:[%s4950_s10 + $0xb0] sm:$0xf] %vm2904_vm4, %v3878_v18  ;;  %3013 = vst.msk [vmem:[%s4950_s10 + $0x1b0] sm:$0xf] %vm2904_vm4, %v3942_v19  ;;  %v2309_v30 = vmax.f32 %v2181_v20, 0.0  ;;  %v2373_v31 = vmax.f32 %v2245_v23, 0.0  ;;  %v2184_v8 = vadd.f32 %v5187_v15, %v2049_v13  ;;  %v2248_v9 = vadd.f32 %v5187_v15, %v2113_v14 }
 0x15a   : > { %2952 = vst.msk [vmem:[%s4950_s10 + $0xbc] sm:$0xf] %vm2904_vm4, %v3881_v49  ;;  %3016 = vst.msk [vmem:[%s4950_s10 + $0x1bc] sm:$0xf] %vm2904_vm4, %v3945_v27  ;;  %v2314_v22 = vmax.f32 %v2186_v28, 0.0  ;;  %v2378_v39 = vmax.f32 %v2250_v60, 0.0  ;;  %v2187_v35 = vadd.f32 %v5187_v15, %v2052_v46  ;;  %v2251_v37 = vadd.f32 %v5187_v15, %v2116_v24  ;;  %v4161_v49 = vpop.f32.mrf.mxu1 }
 0x15b   : > { %v521_v42 = vld [vmem:[#allocation2 + $0x3a0] sm:$0xff]  ;;  %v3879_v33 = vpack.c.bf16 %v2309_v30, %v2309_v30  ;;  %v3943_v47 = vpack.c.bf16 %v2373_v31, %v2373_v31  ;;  %v2312_v51 = vmax.f32 %v2184_v8, 0.0  ;;  %v2376_v48 = vmax.f32 %v2248_v9, 0.0  ;;  %v460_v52 = vld [vmem:[#allocation2 + $0x1b8] sm:$0xff]  ;;  %v458_v54 = vld [vmem:[#allocation2 + $0x1a8] sm:$0xff] }
 0x15c   : > { %v524_v53 = vld [vmem:[#allocation2 + $0x3b8] sm:$0xff]  ;;  %v3884_v55 = vpack.c.bf16 %v2314_v22, %v2314_v22  ;;  %v3948_v56 = vpack.c.bf16 %v2378_v39, %v2378_v39  ;;  %v2315_v57 = vmax.f32 %v2187_v35, 0.0  ;;  %v2379_v58 = vmax.f32 %v2251_v37, 0.0  ;;  %v522_v63 = vld [vmem:[#allocation2 + $0x3a8] sm:$0xff]  ;;  %v463_v0 = vld [vmem:[#allocation2 + $0x1d0] sm:$0xff] }
 0x15d   : > { %v527_v1 = vld [vmem:[#allocation2 + $0x3d0] sm:$0xff]  ;;  %2950 = vst.msk [vmem:[%s4950_s10 + $0xb4] sm:$0xf] %vm2904_vm4, %v3879_v33  ;;  %3014 = vst.msk [vmem:[%s4950_s10 + $0x1b4] sm:$0xf] %vm2904_vm4, %v3943_v47  ;;  %v3882_v4 = vpack.c.bf16 %v2312_v51, %v2312_v51  ;;  %v3946_v5 = vpack.c.bf16 %v2376_v48, %v2376_v48  ;;  %v1790_v6 = vadd.f32 %v5323_v10, %v454_v32  ;;  %v461_v12 = vld [vmem:[#allocation2 + $0x1c0] sm:$0xff]  ;;  %v1726_v32 = vpop.f32.mrf.mxu1 }
 0x15e   : > { %v1854_v7 = vadd.f32 %v5325_v11, %v518_v36  ;;  %v525_v13 = vld [vmem:[#allocation2 + $0x3c0] sm:$0xff]  ;;  %v464_v14 = vld [vmem:[#allocation2 + $0x1d8] sm:$0xff]  ;;  %2955 = vst.msk [vmem:[%s4950_s10 + $0xc8] sm:$0xf] %vm2904_vm4, %v3884_v55  ;;  %3019 = vst.msk [vmem:[%s4950_s10 + $0x1c8] sm:$0xf] %vm2904_vm4, %v3948_v56  ;;  %v3885_v18 = vpack.c.bf16 %v2315_v57, %v2315_v57  ;;  %v3949_v19 = vpack.c.bf16 %v2379_v58, %v2379_v58  ;;  %v4097_v11 = vpop.f32.mrf.mxu0 }
 0x15f   : > { %v1795_v20 = vadd.f32 %v5333_v25, %v459_v34  ;;  %v1859_v23 = vadd.f32 %v5335_v26, %v523_v40  ;;  %v528_v46 = vld [vmem:[#allocation2 + $0x3d8] sm:$0xff]  ;;  %v462_v10 = vld [vmem:[#allocation2 + $0x1c8] sm:$0xff]  ;;  %2953 = vst.msk [vmem:[%s4950_s10 + $0xc0] sm:$0xf] %vm2904_vm4, %v3882_v4  ;;  %3017 = vst.msk [vmem:[%s4950_s10 + $0x1c0] sm:$0xf] %vm2904_vm4, %v3946_v5  ;;  %v1793_v27 = vadd.f32 %v5337_v38, %v457_v41 }
 0x160   : > { %v526_v24 = vld [vmem:[#allocation2 + $0x3c8] sm:$0xff]  ;;  %1919 = vst.msk [vmem:[#allocation2 + $0x188] sm:$0xff] %vm276_vm2, %v1790_v6  ;;  %1983 = vst.msk [vmem:[#allocation2 + $0x388] sm:$0xff] %vm276_vm2, %v1854_v7  ;;  %v1857_v25 = vadd.f32 %v5339_v21, %v521_v42  ;;  %v1796_v26 = vadd.f32 %v5353_v45, %v460_v52  ;;  %v1860_v28 = vadd.f32 %v5355_v50, %v524_v53  ;;  %v467_v60 = vld [vmem:[#allocation2 + $0x1f0] sm:$0xff]  ;;  %v1470_v50 = vpop.f32.mrf.mxu0 }
 0x161   : > { %v531_v30 = vld [vmem:[#allocation2 + $0x3f0] sm:$0xff]  ;;  %v465_v31 = vld [vmem:[#allocation2 + $0x1e0] sm:$0xff]  ;;  %2956 = vst.msk [vmem:[%s4950_s10 + $0xcc] sm:$0xf] %vm2904_vm4, %v3885_v18  ;;  %3020 = vst.msk [vmem:[%s4950_s10 + $0x1cc] sm:$0xf] %vm2904_vm4, %v3949_v19  ;;  %v1794_v8 = vadd.f32 %v5369_v59, %v458_v54  ;;  %v1858_v38 = vadd.f32 %v5371_v62, %v522_v63  ;;  %v1799_v21 = vadd.f32 %v5373_v16, %v463_v0 }
 0x162   : > { %1924 = vst.msk [vmem:[#allocation2 + $0x1b0] sm:$0xff] %vm276_vm2, %v1795_v20  ;;  %1988 = vst.msk [vmem:[#allocation2 + $0x3b0] sm:$0xff] %vm276_vm2, %v1859_v23  ;;  %v1863_v45 = vadd.f32 %v5375_v17, %v527_v1  ;;  %v529_v9 = vld [vmem:[#allocation2 + $0x3e0] sm:$0xff]  ;;  %v468_v36 = vld [vmem:[#allocation2 + $0x1f8] sm:$0xff]  ;;  %v1797_v59 = vadd.f32 %v5389_v61, %v461_v12  ;;  %v1861_v62 = vadd.f32 %v5391_v29, %v525_v13  ;;  %v4098_v40 = vpop.f32.mrf.mxu0  ;;  %v4162_v61 = vpop.f32.mrf.mxu1 }
 0x163   : > { %v532_v34 = vld [vmem:[#allocation2 + $0x3f8] sm:$0xff]  ;;  %1922 = vst.msk [vmem:[#allocation2 + $0x1a0] sm:$0xff] %vm276_vm2, %v1793_v27  ;;  %1986 = vst.msk [vmem:[#allocation2 + $0x3a0] sm:$0xff] %vm276_vm2, %v1857_v25  ;;  %v1800_v16 = vadd.f32 %v5405_v43, %v464_v14  ;;  %v1864_v17 = vadd.f32 %v5407_v44, %v528_v46  ;;  %v1798_v22 = vadd.f32 %v1457_v2, %v462_v10  ;;  %v466_v41 = vld [vmem:[#allocation2 + $0x1e8] sm:$0xff] }
 0x164   : > { %1925 = vst.msk [vmem:[#allocation2 + $0x1b8] sm:$0xff] %vm276_vm2, %v1796_v26  ;;  %1989 = vst.msk [vmem:[#allocation2 + $0x3b8] sm:$0xff] %vm276_vm2, %v1860_v28  ;;  %v1862_v39 = vadd.f32 %v1713_v3, %v526_v24  ;;  %v1803_v35 = vadd.f32 %v4097_v11, %v467_v60  ;;  %v1867_v37 = vadd.f32 %v4161_v49, %v531_v30  ;;  %v530_v29 = vld [vmem:[#allocation2 + $0x3e8] sm:$0xff]  ;;  %v1473_v47 = vpop.f32.mrf.mxu0  ;;  %v1729_v51 = vpop.f32.mrf.mxu1 }
 0x165   : > { %1923 = vst.msk [vmem:[#allocation2 + $0x1a8] sm:$0xff] %vm276_vm2, %v1794_v8  ;;  %1987 = vst.msk [vmem:[#allocation2 + $0x3a8] sm:$0xff] %vm276_vm2, %v1858_v38  ;;  %v1801_v42 = vadd.f32 %v1470_v50, %v465_v31  ;;  %v1865_v43 = vadd.f32 %v1726_v32, %v529_v9  ;;  %v1804_v44 = vadd.f32 %v4098_v40, %v468_v36 }
 0x166   : > { %1928 = vst.msk [vmem:[#allocation2 + $0x1d0] sm:$0xff] %vm276_vm2, %v1799_v21  ;;  %1992 = vst.msk [vmem:[#allocation2 + $0x3d0] sm:$0xff] %vm276_vm2, %v1863_v45  ;;  %v1868_v33 = vadd.f32 %v4162_v61, %v532_v34  ;;  %v1802_v48 = vadd.f32 %v1473_v47, %v466_v41  ;;  %v1866_v52 = vadd.f32 %v1729_v51, %v530_v29 }
 0x167   : > { %1926 = vst.msk [vmem:[#allocation2 + $0x1c0] sm:$0xff] %vm276_vm2, %v1797_v59  ;;  %1990 = vst.msk [vmem:[#allocation2 + $0x3c0] sm:$0xff] %vm276_vm2, %v1861_v62  ;;  %v2050_v53 = vld [vmem:[#allocation2 + $0x188] sm:$0xff] }
 0x168   : > { %1929 = vst.msk [vmem:[#allocation2 + $0x1d8] sm:$0xff] %vm276_vm2, %v1800_v16  ;;  %1993 = vst.msk [vmem:[#allocation2 + $0x3d8] sm:$0xff] %vm276_vm2, %v1864_v17  ;;  %v2114_v54 = vld [vmem:[#allocation2 + $0x388] sm:$0xff]  ;;  %v2185_v55 = vadd.f32 %v5187_v15, %v2050_v53 }
 0x169   : > { %1927 = vst.msk [vmem:[#allocation2 + $0x1c8] sm:$0xff] %vm276_vm2, %v1798_v22  ;;  %1991 = vst.msk [vmem:[#allocation2 + $0x3c8] sm:$0xff] %vm276_vm2, %v1862_v39  ;;  %v2249_v56 = vadd.f32 %v5187_v15, %v2114_v54  ;;  %v2055_v57 = vld [vmem:[#allocation2 + $0x1b0] sm:$0xff] }
 0x16a   : > { %1932 = vst.msk [vmem:[#allocation2 + $0x1f0] sm:$0xff] %vm276_vm2, %v1803_v35  ;;  %1996 = vst.msk [vmem:[#allocation2 + $0x3f0] sm:$0xff] %vm276_vm2, %v1867_v37  ;;  %v2119_v58 = vld [vmem:[#allocation2 + $0x3b0] sm:$0xff]  ;;  %v2190_v63 = vadd.f32 %v5187_v15, %v2055_v57  ;;  %v2053_v1 = vld [vmem:[#allocation2 + $0x1a0] sm:$0xff]  ;;  %v2313_v4 = vmax.f32 %v2185_v55, 0.0 }
 0x16b   : > { %1930 = vst.msk [vmem:[#allocation2 + $0x1e0] sm:$0xff] %vm276_vm2, %v1801_v42  ;;  %1994 = vst.msk [vmem:[#allocation2 + $0x3e0] sm:$0xff] %vm276_vm2, %v1865_v43  ;;  %v2254_v0 = vadd.f32 %v5187_v15, %v2119_v58  ;;  %v2117_v2 = vld [vmem:[#allocation2 + $0x3a0] sm:$0xff]  ;;  %v2056_v3 = vld [vmem:[#allocation2 + $0x1b8] sm:$0xff]  ;;  %v2377_v5 = vmax.f32 %v2249_v56, 0.0  ;;  %v2188_v6 = vadd.f32 %v5187_v15, %v2053_v1 }
 0x16c   : > { %1933 = vst.msk [vmem:[#allocation2 + $0x1f8] sm:$0xff] %vm276_vm2, %v1804_v44  ;;  %1997 = vst.msk [vmem:[#allocation2 + $0x3f8] sm:$0xff] %vm276_vm2, %v1868_v33  ;;  %v2252_v7 = vadd.f32 %v5187_v15, %v2117_v2  ;;  %v2120_v12 = vld [vmem:[#allocation2 + $0x3b8] sm:$0xff]  ;;  %v2318_v13 = vmax.f32 %v2190_v63, 0.0  ;;  %v2191_v18 = vadd.f32 %v5187_v15, %v2056_v3  ;;  %v2054_v20 = vld [vmem:[#allocation2 + $0x1a8] sm:$0xff]  ;;  %v3883_v46 = vpack.c.bf16 %v2313_v4, %v2313_v4 }
 0x16d   : > { %1931 = vst.msk [vmem:[#allocation2 + $0x1e8] sm:$0xff] %vm276_vm2, %v1802_v48  ;;  %1995 = vst.msk [vmem:[#allocation2 + $0x3e8] sm:$0xff] %vm276_vm2, %v1866_v52  ;;  %v2382_v14 = vmax.f32 %v2254_v0, 0.0  ;;  %v2255_v19 = vadd.f32 %v5187_v15, %v2120_v12  ;;  %v2118_v23 = vld [vmem:[#allocation2 + $0x3a8] sm:$0xff]  ;;  %v3947_v10 = vpack.c.bf16 %v2377_v5, %v2377_v5  ;;  %v2316_v24 = vmax.f32 %v2188_v6, 0.0  ;;  %v2059_v49 = vld [vmem:[#allocation2 + $0x1d0] sm:$0xff] }
 0x16e   : > { %v2380_v11 = vmax.f32 %v2252_v7, 0.0  ;;  %v2123_v27 = vld [vmem:[#allocation2 + $0x3d0] sm:$0xff]  ;;  %v3888_v25 = vpack.c.bf16 %v2318_v13, %v2318_v13  ;;  %v2319_v28 = vmax.f32 %v2191_v18, 0.0  ;;  %v2057_v30 = vld [vmem:[#allocation2 + $0x1c0] sm:$0xff]  ;;  %2954 = vst.msk [vmem:[%s4950_s10 + $0xc4] sm:$0xf] %vm2904_vm4, %v3883_v46  ;;  %v2189_v21 = vadd.f32 %v5187_v15, %v2054_v20 }
 0x16f   : > { %v3952_v26 = vpack.c.bf16 %v2382_v14, %v2382_v14  ;;  %v2383_v60 = vmax.f32 %v2255_v19, 0.0  ;;  %v2121_v31 = vld [vmem:[#allocation2 + $0x3c0] sm:$0xff]  ;;  %3018 = vst.msk [vmem:[%s4950_s10 + $0x1c4] sm:$0xf] %vm2904_vm4, %v3947_v10  ;;  %v3886_v8 = vpack.c.bf16 %v2316_v24, %v2316_v24  ;;  %v2253_v45 = vadd.f32 %v5187_v15, %v2118_v23  ;;  %v2060_v50 = vld [vmem:[#allocation2 + $0x1d8] sm:$0xff] }
 0x170   : > { %v3950_v38 = vpack.c.bf16 %v2380_v11, %v2380_v11  ;;  %v2124_v9 = vld [vmem:[#allocation2 + $0x3d8] sm:$0xff]  ;;  %2959 = vst.msk [vmem:[%s4950_s10 + $0xd8] sm:$0xf] %vm2904_vm4, %v3888_v25  ;;  %v3889_v32 = vpack.c.bf16 %v2319_v28, %v2319_v28  ;;  %v2194_v34 = vadd.f32 %v5187_v15, %v2059_v49  ;;  %v2258_v59 = vadd.f32 %v5187_v15, %v2123_v27  ;;  %v2058_v61 = vld [vmem:[#allocation2 + $0x1c8] sm:$0xff]  ;;  %v4340_v57 = vld [vmem:[%s5744_s2] ss:$0 sm:$0xff] }
 0x171   : > { %3023 = vst.msk [vmem:[%s4950_s10 + $0x1d8] sm:$0xf] %vm2904_vm4, %v3952_v26  ;;  %v3953_v36 = vpack.c.bf16 %v2383_v60, %v2383_v60  ;;  %2957 = vst.msk [vmem:[%s4950_s10 + $0xd0] sm:$0xf] %vm2904_vm4, %v3886_v8  ;;  %v2317_v62 = vmax.f32 %v2189_v21, 0.0  ;;  %v2381_v16 = vmax.f32 %v2253_v45, 0.0  ;;  %v2192_v17 = vadd.f32 %v5187_v15, %v2057_v30 }
 0x172   : > { %3021 = vst.msk [vmem:[%s4950_s10 + $0x1d0] sm:$0xf] %vm2904_vm4, %v3950_v38  ;;  %v2256_v22 = vadd.f32 %v5187_v15, %v2121_v31  ;;  %2960 = vst.msk [vmem:[%s4950_s10 + $0xdc] sm:$0xf] %vm2904_vm4, %v3889_v32  ;;  %v2322_v39 = vmax.f32 %v2194_v34, 0.0  ;;  %v2386_v35 = vmax.f32 %v2258_v59, 0.0  ;;  %v2195_v37 = vadd.f32 %v5187_v15, %v2060_v50 }
 0x173   : > { %3024 = vst.msk [vmem:[%s4950_s10 + $0x1dc] sm:$0xf] %vm2904_vm4, %v3953_v36  ;;  %v2259_v40 = vadd.f32 %v5187_v15, %v2124_v9  ;;  %v2122_v41 = vld [vmem:[#allocation2 + $0x3c8] sm:$0xff]  ;;  %v3887_v29 = vpack.c.bf16 %v2317_v62, %v2317_v62  ;;  %v3951_v42 = vpack.c.bf16 %v2381_v16, %v2381_v16  ;;  %v2320_v43 = vmax.f32 %v2192_v17, 0.0  ;;  %v2063_v33 = vld [vmem:[#allocation2 + $0x1f0] sm:$0xff]  ;;  %v2061_v54 = vld [vmem:[#allocation2 + $0x1e0] sm:$0xff] }
 0x174   : > { %v2384_v44 = vmax.f32 %v2256_v22, 0.0  ;;  %v2127_v47 = vld [vmem:[#allocation2 + $0x3f0] sm:$0xff]  ;;  %v3892_v51 = vpack.c.bf16 %v2322_v39, %v2322_v39  ;;  %v3956_v48 = vpack.c.bf16 %v2386_v35, %v2386_v35  ;;  %v2323_v52 = vmax.f32 %v2195_v37, 0.0  ;;  %v2125_v55 = vld [vmem:[#allocation2 + $0x3e0] sm:$0xff]  ;;  %v2064_v0 = vld [vmem:[#allocation2 + $0x1f8] sm:$0xff] }
 0x175   : > { %v2387_v53 = vmax.f32 %v2259_v40, 0.0  ;;  %2958 = vst.msk [vmem:[%s4950_s10 + $0xd4] sm:$0xf] %vm2904_vm4, %v3887_v29  ;;  %3022 = vst.msk [vmem:[%s4950_s10 + $0x1d4] sm:$0xf] %vm2904_vm4, %v3951_v42  ;;  %v3890_v15 = vpack.c.bf16 %v2320_v43, %v2320_v43  ;;  %v2193_v58 = vadd.f32 %v4340_v57, %v2058_v61  ;;  %v2257_v63 = vadd.f32 %v4340_v57, %v2122_v41  ;;  %v2128_v1 = vld [vmem:[#allocation2 + $0x3f8] sm:$0xff] }
 0x176   : > { %v3954_v56 = vpack.c.bf16 %v2384_v44, %v2384_v44  ;;  %2963 = vst.msk [vmem:[%s4950_s10 + $0xe8] sm:$0xf] %vm2904_vm4, %v3892_v51  ;;  %3027 = vst.msk [vmem:[%s4950_s10 + $0x1e8] sm:$0xf] %vm2904_vm4, %v3956_v48  ;;  %v3893_v2 = vpack.c.bf16 %v2323_v52, %v2323_v52  ;;  %v2198_v4 = vadd.f32 %v4340_v57, %v2063_v33  ;;  %v2062_v23 = vld [vmem:[#allocation2 + $0x1e8] sm:$0xff] }
 0x177   : > { %v3957_v3 = vpack.c.bf16 %v2387_v53, %v2387_v53  ;;  %v2262_v5 = vadd.f32 %v4340_v57, %v2127_v47  ;;  %2961 = vst.msk [vmem:[%s4950_s10 + $0xe0] sm:$0xf] %vm2904_vm4, %v3890_v15  ;;  %v2321_v6 = vmax.f32 %v2193_v58, 0.0  ;;  %v2385_v7 = vmax.f32 %v2257_v63, 0.0  ;;  %v2126_v46 = vld [vmem:[#allocation2 + $0x3e8] sm:$0xff] }
 0x178   : > { %3025 = vst.msk [vmem:[%s4950_s10 + $0x1e0] sm:$0xf] %vm2904_vm4, %v3954_v56  ;;  %v2196_v12 = vadd.f32 %v4340_v57, %v2061_v54  ;;  %v2260_v13 = vadd.f32 %v4340_v57, %v2125_v55  ;;  %2964 = vst.msk [vmem:[%s4950_s10 + $0xec] sm:$0xf] %vm2904_vm4, %v3893_v2  ;;  %v2326_v14 = vmax.f32 %v2198_v4, 0.0  ;;  %v2199_v19 = vadd.f32 %v4340_v57, %v2064_v0 }
 0x179   : > { %3028 = vst.msk [vmem:[%s4950_s10 + $0x1ec] sm:$0xf] %vm2904_vm4, %v3957_v3  ;;  %v2390_v18 = vmax.f32 %v2262_v5, 0.0  ;;  %v2263_v20 = vadd.f32 %v4340_v57, %v2128_v1  ;;  %v3891_v10 = vpack.c.bf16 %v2321_v6, %v2321_v6  ;;  %v3955_v24 = vpack.c.bf16 %v2385_v7, %v2385_v7 }
 0x17a   : > { %v2324_v11 = vmax.f32 %v2196_v12, 0.0  ;;  %v2388_v49 = vmax.f32 %v2260_v13, 0.0  ;;  %v3896_v27 = vpack.c.bf16 %v2326_v14, %v2326_v14  ;;  %v2327_v26 = vmax.f32 %v2199_v19, 0.0 }
 0x17b   : > { %v3960_v25 = vpack.c.bf16 %v2390_v18, %v2390_v18  ;;  %v2391_v28 = vmax.f32 %v2263_v20, 0.0  ;;  %2962 = vst.msk [vmem:[%s4950_s10 + $0xe4] sm:$0xf] %vm2904_vm4, %v3891_v10  ;;  %3026 = vst.msk [vmem:[%s4950_s10 + $0x1e4] sm:$0xf] %vm2904_vm4, %v3955_v24  ;;  %v2197_v31 = vadd.f32 %v4340_v57, %v2062_v23  ;;  %v2261_v8 = vadd.f32 %v4340_v57, %v2126_v46 }
 0x17c   : > { %v3894_v60 = vpack.c.bf16 %v2324_v11, %v2324_v11  ;;  %v3958_v30 = vpack.c.bf16 %v2388_v49, %v2388_v49  ;;  %2967 = vst.msk [vmem:[%s4950_s10 + $0xf8] sm:$0xf] %vm2904_vm4, %v3896_v27  ;;  %v3897_v38 = vpack.c.bf16 %v2327_v26, %v2327_v26 }
 0x17d   : > { %3031 = vst.msk [vmem:[%s4950_s10 + $0x1f8] sm:$0xf] %vm2904_vm4, %v3960_v25  ;;  %v3961_v21 = vpack.c.bf16 %v2391_v28, %v2391_v28  ;;  %v2325_v45 = vmax.f32 %v2197_v31, 0.0  ;;  %v2389_v50 = vmax.f32 %v2261_v8, 0.0  ;;  %3039 = sbr.rel (!%p4499_p3) target bundleno = 467 (0x1d3), region = 44 }
 0x17e   : > { %2965 = vst.msk [vmem:[%s4950_s10 + $0xf0] sm:$0xf] %vm2904_vm4, %v3894_v60  ;;  %3029 = vst.msk [vmem:[%s4950_s10 + $0x1f0] sm:$0xf] %vm2904_vm4, %v3958_v30 }
 0x17f   : > { %2968 = vst.msk [vmem:[%s4950_s10 + $0xfc] sm:$0xf] %vm2904_vm4, %v3897_v38  ;;  %3032 = vst.msk [vmem:[%s4950_s10 + $0x1fc] sm:$0xf] %vm2904_vm4, %v3961_v21  ;;  %v3895_v9 = vpack.c.bf16 %v2325_v45, %v2325_v45  ;;  %v3959_v32 = vpack.c.bf16 %v2389_v50, %v2389_v50 }
 0x181   : > { %2966 = vst.msk [vmem:[%s4950_s10 + $0xf4] sm:$0xf] %vm2904_vm4, %v3895_v9  ;;  %3030 = vst.msk [vmem:[%s4950_s10 + $0x1f4] sm:$0xf] %vm2904_vm4, %v3959_v32 }
 0x182   : > { %s5757_s21 = smov (!%p3042_p9, %s3041_s21), 128 }
 0x183   : > { %s3819_s28 = sshll.u32 %s5757_s21, 6 }
 0x184   : > { %p3822_p10 = scmp.eq.s32.totalorder %s3819_s28, 0 }
 0x185   : > { %s5551_s29 = sshrl.u32 (!%p3822_p10), %s5757_s21, 6 }
 0x186   : > { %3051 = sbr.rel (%p3822_p10) target bundleno = 467 (0x1d3), region = 48  ;;  %p3823_p11 = scmp.le.s32.totalorder (!%p3822_p10), %s5551_s29, 0 }
 0x18b   : > { %3475 = sbr.rel (%p3823_p11) target bundleno = 450 (0x1c2), region = 126  ;;  %s5747_s14 = smov (!%p3823_p11), %s5545_s27 }
 0x18c   : > { %s5748_s20 = smov (!%p3823_p11), %s4950_s10  ;;  %s5560_s25 = smov (!%p3823_p11), 0  }
 0x18d   : > { %s5562_s30 = smov (!%p3823_p11), 0  }
 0x190 LB: >> { %v3068_v36 = vld [vmem:[%s4419_s20] sm:$0xf]  ;;  %v3070_v34 = vld [vmem:[%s4419_s20 + $0x4] sm:$0xf]  ;;  %v3072_v59 = vld [vmem:[%s4419_s20 + $0x8] sm:$0xf]  ;;  %s4427_s30 = sphi %s5562_s30, %s3062_s30   ;;  %s4423_s25 = sphi %s5560_s25, %s5749_s25   ;;  %s4419_s20 = sphi %s5748_s20, %s3201_s20   ;;  %s4415_s14 = sphi %s5747_s14, %s3202_s14  }
 0x191   : >> { %3069 = vst [vmem:[%s4415_s14] sm:$0xf] %v3068_v36  ;;  %3071 = vst [vmem:[%s4415_s14 + $0x4] sm:$0xf] %v3070_v34  ;;  %v3074_v62 = vld [vmem:[%s4419_s20 + $0xc] sm:$0xf]  ;;  %s3196_s4 = sadd.s32 1, %s4423_s25 }
 0x192   : >> { %3073 = vst [vmem:[%s4415_s14 + $0x8] sm:$0xf] %v3072_v59  ;;  %v3076_v16 = vld [vmem:[%s4419_s20 + $0x10] sm:$0xf]  ;;  %v3078_v17 = vld [vmem:[%s4419_s20 + $0x14] sm:$0xf]  ;;  %p3197_p12 = scmp.ge.s32.totalorder %s3196_s4, %s5551_s29 }
 0x193   : >> { %3075 = vst [vmem:[%s4415_s14 + $0xc] sm:$0xf] %v3074_v62  ;;  %3077 = vst [vmem:[%s4415_s14 + $0x10] sm:$0xf] %v3076_v16  ;;  %v3080_v22 = vld [vmem:[%s4419_s20 + $0x18] sm:$0xf] }
 0x194   : >> { %3079 = vst [vmem:[%s4415_s14 + $0x14] sm:$0xf] %v3078_v17  ;;  %v3082_v39 = vld [vmem:[%s4419_s20 + $0x1c] sm:$0xf]  ;;  %v3084_v35 = vld [vmem:[%s4419_s20 + $0x20] sm:$0xf] }
 0x195   : >> { %3081 = vst [vmem:[%s4415_s14 + $0x18] sm:$0xf] %v3080_v22  ;;  %3083 = vst [vmem:[%s4415_s14 + $0x1c] sm:$0xf] %v3082_v39  ;;  %v3086_v37 = vld [vmem:[%s4419_s20 + $0x24] sm:$0xf] }
 0x196   : >> { %3085 = vst [vmem:[%s4415_s14 + $0x20] sm:$0xf] %v3084_v35  ;;  %v3088_v40 = vld [vmem:[%s4419_s20 + $0x28] sm:$0xf]  ;;  %v3090_v61 = vld [vmem:[%s4419_s20 + $0x2c] sm:$0xf] }
 0x197   : >> { %3087 = vst [vmem:[%s4415_s14 + $0x24] sm:$0xf] %v3086_v37  ;;  %3089 = vst [vmem:[%s4415_s14 + $0x28] sm:$0xf] %v3088_v40  ;;  %v3092_v41 = vld [vmem:[%s4419_s20 + $0x30] sm:$0xf] }
 0x198   : >> { %3091 = vst [vmem:[%s4415_s14 + $0x2c] sm:$0xf] %v3090_v61  ;;  %v3094_v29 = vld [vmem:[%s4419_s20 + $0x34] sm:$0xf]  ;;  %v3096_v42 = vld [vmem:[%s4419_s20 + $0x38] sm:$0xf] }
 0x199   : >> { %3093 = vst [vmem:[%s4415_s14 + $0x30] sm:$0xf] %v3092_v41  ;;  %3095 = vst [vmem:[%s4415_s14 + $0x34] sm:$0xf] %v3094_v29  ;;  %v3098_v43 = vld [vmem:[%s4419_s20 + $0x3c] sm:$0xf] }
 0x19a   : >> { %3097 = vst [vmem:[%s4415_s14 + $0x38] sm:$0xf] %v3096_v42  ;;  %v3100_v44 = vld [vmem:[%s4419_s20 + $0x40] sm:$0xf]  ;;  %v3102_v33 = vld [vmem:[%s4419_s20 + $0x44] sm:$0xf] }
 0x19b   : >> { %3099 = vst [vmem:[%s4415_s14 + $0x3c] sm:$0xf] %v3098_v43  ;;  %3101 = vst [vmem:[%s4415_s14 + $0x40] sm:$0xf] %v3100_v44  ;;  %v3104_v47 = vld [vmem:[%s4419_s20 + $0x48] sm:$0xf] }
 0x19c   : >> { %3103 = vst [vmem:[%s4415_s14 + $0x44] sm:$0xf] %v3102_v33  ;;  %v3106_v51 = vld [vmem:[%s4419_s20 + $0x4c] sm:$0xf]  ;;  %v3108_v48 = vld [vmem:[%s4419_s20 + $0x50] sm:$0xf] }
 0x19d   : >> { %3105 = vst [vmem:[%s4415_s14 + $0x48] sm:$0xf] %v3104_v47  ;;  %3107 = vst [vmem:[%s4415_s14 + $0x4c] sm:$0xf] %v3106_v51  ;;  %v3110_v52 = vld [vmem:[%s4419_s20 + $0x54] sm:$0xf] }
 0x19e   : >> { %3109 = vst [vmem:[%s4415_s14 + $0x50] sm:$0xf] %v3108_v48  ;;  %v3112_v53 = vld [vmem:[%s4419_s20 + $0x58] sm:$0xf]  ;;  %v3114_v54 = vld [vmem:[%s4419_s20 + $0x5c] sm:$0xf] }
 0x19f   : >> { %3111 = vst [vmem:[%s4415_s14 + $0x54] sm:$0xf] %v3110_v52  ;;  %3113 = vst [vmem:[%s4415_s14 + $0x58] sm:$0xf] %v3112_v53  ;;  %v3116_v55 = vld [vmem:[%s4419_s20 + $0x60] sm:$0xf] }
 0x1a0   : >> { %3115 = vst [vmem:[%s4415_s14 + $0x5c] sm:$0xf] %v3114_v54  ;;  %v3118_v15 = vld [vmem:[%s4419_s20 + $0x64] sm:$0xf]  ;;  %v3120_v56 = vld [vmem:[%s4419_s20 + $0x68] sm:$0xf] }
 0x1a1   : >> { %3117 = vst [vmem:[%s4415_s14 + $0x60] sm:$0xf] %v3116_v55  ;;  %3119 = vst [vmem:[%s4415_s14 + $0x64] sm:$0xf] %v3118_v15  ;;  %v3122_v57 = vld [vmem:[%s4419_s20 + $0x6c] sm:$0xf] }
 0x1a2   : >> { %3121 = vst [vmem:[%s4415_s14 + $0x68] sm:$0xf] %v3120_v56  ;;  %v3124_v58 = vld [vmem:[%s4419_s20 + $0x70] sm:$0xf]  ;;  %v3126_v63 = vld [vmem:[%s4419_s20 + $0x74] sm:$0xf] }
 0x1a3   : >> { %3123 = vst [vmem:[%s4415_s14 + $0x6c] sm:$0xf] %v3122_v57  ;;  %3125 = vst [vmem:[%s4415_s14 + $0x70] sm:$0xf] %v3124_v58  ;;  %v3128_v0 = vld [vmem:[%s4419_s20 + $0x78] sm:$0xf] }
 0x1a4   : >> { %3127 = vst [vmem:[%s4415_s14 + $0x74] sm:$0xf] %v3126_v63  ;;  %v3130_v1 = vld [vmem:[%s4419_s20 + $0x7c] sm:$0xf]  ;;  %v3132_v2 = vld [vmem:[%s4419_s20 + $0x80] sm:$0xf] }
 0x1a5   : >> { %3129 = vst [vmem:[%s4415_s14 + $0x78] sm:$0xf] %v3128_v0  ;;  %3131 = vst [vmem:[%s4415_s14 + $0x7c] sm:$0xf] %v3130_v1  ;;  %v3134_v3 = vld [vmem:[%s4419_s20 + $0x84] sm:$0xf] }
 0x1a6   : >> { %3133 = vst [vmem:[%s4415_s14 + $0x80] sm:$0xf] %v3132_v2  ;;  %v3136_v4 = vld [vmem:[%s4419_s20 + $0x88] sm:$0xf]  ;;  %v3138_v5 = vld [vmem:[%s4419_s20 + $0x8c] sm:$0xf] }
 0x1a7   : >> { %3135 = vst [vmem:[%s4415_s14 + $0x84] sm:$0xf] %v3134_v3  ;;  %3137 = vst [vmem:[%s4415_s14 + $0x88] sm:$0xf] %v3136_v4  ;;  %v3140_v6 = vld [vmem:[%s4419_s20 + $0x90] sm:$0xf] }
 0x1a8   : >> { %3139 = vst [vmem:[%s4415_s14 + $0x8c] sm:$0xf] %v3138_v5  ;;  %v3142_v7 = vld [vmem:[%s4419_s20 + $0x94] sm:$0xf]  ;;  %v3144_v12 = vld [vmem:[%s4419_s20 + $0x98] sm:$0xf] }
 0x1a9   : >> { %3141 = vst [vmem:[%s4415_s14 + $0x90] sm:$0xf] %v3140_v6  ;;  %3143 = vst [vmem:[%s4415_s14 + $0x94] sm:$0xf] %v3142_v7  ;;  %v3146_v13 = vld [vmem:[%s4419_s20 + $0x9c] sm:$0xf] }
 0x1aa   : >> { %3145 = vst [vmem:[%s4415_s14 + $0x98] sm:$0xf] %v3144_v12  ;;  %v3148_v14 = vld [vmem:[%s4419_s20 + $0xa0] sm:$0xf]  ;;  %v3150_v18 = vld [vmem:[%s4419_s20 + $0xa4] sm:$0xf] }
 0x1ab   : >> { %3147 = vst [vmem:[%s4415_s14 + $0x9c] sm:$0xf] %v3146_v13  ;;  %3149 = vst [vmem:[%s4415_s14 + $0xa0] sm:$0xf] %v3148_v14  ;;  %v3152_v19 = vld [vmem:[%s4419_s20 + $0xa8] sm:$0xf] }
 0x1ac   : >> { %3151 = vst [vmem:[%s4415_s14 + $0xa4] sm:$0xf] %v3150_v18  ;;  %v3154_v20 = vld [vmem:[%s4419_s20 + $0xac] sm:$0xf]  ;;  %v3156_v23 = vld [vmem:[%s4419_s20 + $0xb0] sm:$0xf] }
 0x1ad   : >> { %3153 = vst [vmem:[%s4415_s14 + $0xa8] sm:$0xf] %v3152_v19  ;;  %3155 = vst [vmem:[%s4415_s14 + $0xac] sm:$0xf] %v3154_v20  ;;  %v3158_v46 = vld [vmem:[%s4419_s20 + $0xb4] sm:$0xf] }
 0x1ae   : >> { %3157 = vst [vmem:[%s4415_s14 + $0xb0] sm:$0xf] %v3156_v23  ;;  %v3160_v10 = vld [vmem:[%s4419_s20 + $0xb8] sm:$0xf]  ;;  %v3162_v24 = vld [vmem:[%s4419_s20 + $0xbc] sm:$0xf] }
 0x1af   : >> { %3159 = vst [vmem:[%s4415_s14 + $0xb4] sm:$0xf] %v3158_v46  ;;  %3161 = vst [vmem:[%s4415_s14 + $0xb8] sm:$0xf] %v3160_v10  ;;  %v3164_v11 = vld [vmem:[%s4419_s20 + $0xc0] sm:$0xf] }
 0x1b0   : >> { %3163 = vst [vmem:[%s4415_s14 + $0xbc] sm:$0xf] %v3162_v24  ;;  %v3166_v49 = vld [vmem:[%s4419_s20 + $0xc4] sm:$0xf]  ;;  %v3168_v27 = vld [vmem:[%s4419_s20 + $0xc8] sm:$0xf] }
 0x1b1   : >> { %3165 = vst [vmem:[%s4415_s14 + $0xc0] sm:$0xf] %v3164_v11  ;;  %3167 = vst [vmem:[%s4415_s14 + $0xc4] sm:$0xf] %v3166_v49  ;;  %v3170_v25 = vld [vmem:[%s4419_s20 + $0xcc] sm:$0xf] }
 0x1b2   : >> { %3169 = vst [vmem:[%s4415_s14 + $0xc8] sm:$0xf] %v3168_v27  ;;  %v3172_v26 = vld [vmem:[%s4419_s20 + $0xd0] sm:$0xf]  ;;  %v3174_v28 = vld [vmem:[%s4419_s20 + $0xd4] sm:$0xf] }
 0x1b3   : >> { %3171 = vst [vmem:[%s4415_s14 + $0xcc] sm:$0xf] %v3170_v25  ;;  %3173 = vst [vmem:[%s4415_s14 + $0xd0] sm:$0xf] %v3172_v26  ;;  %v3176_v60 = vld [vmem:[%s4419_s20 + $0xd8] sm:$0xf] }
 0x1b4   : >> { %3175 = vst [vmem:[%s4415_s14 + $0xd4] sm:$0xf] %v3174_v28  ;;  %v3178_v30 = vld [vmem:[%s4419_s20 + $0xdc] sm:$0xf]  ;;  %v3180_v31 = vld [vmem:[%s4419_s20 + $0xe0] sm:$0xf] }
 0x1b5   : >> { %3177 = vst [vmem:[%s4415_s14 + $0xd8] sm:$0xf] %v3176_v60  ;;  %3179 = vst [vmem:[%s4415_s14 + $0xdc] sm:$0xf] %v3178_v30  ;;  %v3182_v8 = vld [vmem:[%s4419_s20 + $0xe4] sm:$0xf] }
 0x1b6   : >> { %3181 = vst [vmem:[%s4415_s14 + $0xe0] sm:$0xf] %v3180_v31  ;;  %v3184_v38 = vld [vmem:[%s4419_s20 + $0xe8] sm:$0xf]  ;;  %v3186_v21 = vld [vmem:[%s4419_s20 + $0xec] sm:$0xf] }
 0x1b7   : >> { %3183 = vst [vmem:[%s4415_s14 + $0xe4] sm:$0xf] %v3182_v8  ;;  %3185 = vst [vmem:[%s4415_s14 + $0xe8] sm:$0xf] %v3184_v38  ;;  %v3188_v45 = vld [vmem:[%s4419_s20 + $0xf0] sm:$0xf] }
 0x1b8   : >> { %3187 = vst [vmem:[%s4415_s14 + $0xec] sm:$0xf] %v3186_v21  ;;  %v3190_v50 = vld [vmem:[%s4419_s20 + $0xf4] sm:$0xf]  ;;  %v3192_v9 = vld [vmem:[%s4419_s20 + $0xf8] sm:$0xf] }
 0x1b9   : >> { %3189 = vst [vmem:[%s4415_s14 + $0xf0] sm:$0xf] %v3188_v45  ;;  %3191 = vst [vmem:[%s4415_s14 + $0xf4] sm:$0xf] %v3190_v50  ;;  %v3194_v32 = vld [vmem:[%s4419_s20 + $0xfc] sm:$0xf] }
 0x1ba   : >> { %3193 = vst [vmem:[%s4415_s14 + $0xf8] sm:$0xf] %v3192_v9  ;;  %3195 = vst [vmem:[%s4415_s14 + $0xfc] sm:$0xf] %v3194_v32  ;;  %s5759_s4 = smov (%p3197_p12, %s3196_s4), 0  ;;  %s3062_s30 = sadd.s32 1, %s4427_s30  }
 0x1bb   : >> { %s3824_s5 = sshll.u32 %s5759_s4, 8  ;;  %p3061_p13 = scmp.ge.s32.totalorder %s3062_s30, %s5551_s29 }
 0x1bc   : >> { %s3201_s20 = scalar_lea.vmem %s4950_s10, %s3824_s5 [#allocation3]   ;;  %s3202_s14 = scalar_lea.vmem %s5545_s27, %s3824_s5  }
 0x1bd   : >> { %s5749_s25 = smov %s5759_s4  ;;  %3064 = sbr.rel (!%p3061_p13) target bundleno = 400 (0x190), region = 132 }
 0x1c2 PF: > { %s5719_s6 = sand.u32 63, %s5757_s21   ;;  %s3963_s7 = sshll.u32 %s5551_s29, 8 }
 0x1c3   : > { %s3207_s8 = scalar_lea.vmem %s4950_s10, %s3963_s7 [#allocation3]   ;;  %s3209_s9 = scalar_lea.vmem %s5545_s27, %s3963_s7  }
 0x1c4   : > { %p3829_p0 = scmp.le.s32.totalorder %s5719_s6, 0 }
 0x1c5   : > { %s4429_s11 = smov (!%p3829_p0), %s3209_s9   ;;  %s4433_s12 = smov (!%p3829_p0), %s3207_s8  }
 0x1c6   : > { %3489 = sbr.rel (%p3829_p0) target bundleno = 467 (0x1d3), region = 137  ;;  %s4437_s17 = smov (!%p3829_p0), 0  }
 0x1c7   : > { %s4441_s19 = smov (!%p3829_p0), 0  }
 0x1cb LB: >> { %v3219_v36 = vld [vmem:[%s4435_s12] sm:$0xf]  ;;  %s3221_s21 = sadd.s32 1, %s4439_s17  ;;  %s3213_s19 = sadd.s32 1, %s4443_s19   ;;  %s4443_s19 = sphi %s4441_s19, %s3213_s19   ;;  %s4439_s17 = sphi %s4437_s17, %s4438_s17   ;;  %s4435_s12 = sphi %s4433_s12, %s3226_s12   ;;  %s4431_s11 = sphi %s4429_s11, %s3227_s11  }
 0x1cc   : >> { %3220 = vst [vmem:[%s4431_s11] sm:$0xf] %v3219_v36  ;;  %p3222_p1 = scmp.ge.s32.totalorder %s3221_s21, %s5719_s6  ;;  %p3212_p2 = scmp.ge.s32.totalorder %s3213_s19, %s5719_s6 }
 0x1ce   : >> { %s5761_s21 = smov (%p3222_p1, %s3221_s21), 0  ;;  %3215 = sbr.rel (!%p3212_p2) target bundleno = 459 (0x1cb), region = 143 }
 0x1cf   : >> { %s3830_s10 = sshll.u32 %s5761_s21, 2  ;;  %s4438_s17 = smov %s5761_s21  }
 0x1d0   : >> { %s3226_s12 = scalar_lea.vmem %s3207_s8, %s3830_s10 [#allocation3]   ;;  %s3227_s11 = scalar_lea.vmem %s3209_s9, %s3830_s10  }
 0x1d3 PF: > { %s13_s16 = sadd.s32 1, %s4411_s16   ;;  %s5750_s12 = smov %s4399_s13 }
 0x1d4   : > { %p10_p3 = scmp.ge.s32.totalorder %s13_s16, 47   ;;  %s5751_s13 = smov %s4508_s22 }
 0x1d5   : > { %s5752_s14 = smov %s4407_s15  ;;  %s5753_s15 = smov %s5755_s18 }
 0x1d6   :  { %12 = sbr.rel (!%p10_p3) target bundleno = 3 (0x3), region = 154 }

</bundles_post_ra>
